<compile_context>
chip_gen: v6e
topology: v6e:2x2x1
jax: 0.10.0
libtpu: 0.0.40
codegen_flags: <defaults>
</compile_context>

<pallas_src>
import math

import jax
import jax.numpy as jnp
from jax.experimental import pallas as pl
from jax.experimental.pallas import tpu as pltpu

D_MODEL = 32
NUM_HEADS = 4
NUM_DECODERS = 2
D_FF = 2048                       # DecoderLayer default d_ff
HEAD_DIM = D_MODEL // NUM_HEADS
LN_EPS = 1e-5


# ----------------------------- in-kernel helpers -----------------------------

def _attention(x, kv, mask_add, w_ref, b_ref, layer):
    """Multi-headed attention for one batch element.

    x: (T, D) query source, kv: (S, D) key/value source,
    mask_add: (1, S) additive mask (0 / -inf),
    w_ref: (L, 4, D, D) stacked [Wq, Wk, Wv, Wo], b_ref: (L, 4, 1, D).
    """
    wq = w_ref[layer, 0]
    wk = w_ref[layer, 1]
    wv = w_ref[layer, 2]
    wo = w_ref[layer, 3]
    bq = b_ref[layer, 0]
    bk = b_ref[layer, 1]
    bv = b_ref[layer, 2]
    bo = b_ref[layer, 3]

    # Full-width projections: 3 (D,D) matmuls instead of 12 per-head ones.
    q = jnp.dot(x, wq, preferred_element_type=jnp.float32) + bq      # (T, D)
    k = jnp.dot(kv, wk, preferred_element_type=jnp.float32) + bk     # (S, D)
    v = jnp.dot(kv, wv, preferred_element_type=jnp.float32) + bv     # (S, D)

    sqrt_dk = jnp.float32(math.sqrt(HEAD_DIM))
    acc = jnp.zeros(x.shape, jnp.float32)                            # (T, D)
    for h in range(NUM_HEADS):                                       # static unroll (tiny)
        lo, hi = h * HEAD_DIM, (h + 1) * HEAD_DIM
        qh = q[:, lo:hi]                                             # (T, hd)
        kh = k[:, lo:hi]                                             # (S, hd)
        vh = v[:, lo:hi]                                             # (S, hd)
        raw = jax.lax.dot_general(qh, kh, (((1,), (1,)), ((), ())),
                                  preferred_element_type=jnp.float32)   # (T, S)
        # floor-division by sqrt(dk) as in the reference, then additive mask.
        scores = jnp.floor(raw / sqrt_dk) + mask_add
        mx = jnp.max(scores, axis=-1, keepdims=True)
        e = jnp.exp(scores - mx)
        wgt = e * pl.reciprocal(jnp.sum(e, axis=-1, keepdims=True), approx=True)
        ctx = jnp.dot(wgt, vh, preferred_element_type=jnp.float32)       # (T, hd)
        # concat(head_outs) @ Wo  ==  sum_h ctx_h @ Wo[h*hd:(h+1)*hd, :]
        acc = acc + jnp.dot(ctx, wo[lo:hi, :], preferred_element_type=jnp.float32)
    return acc + bo


def _layer_norm(v, g, b):
    mu = jnp.mean(v, axis=-1, keepdims=True)
    var = jnp.mean(jnp.square(v - mu), axis=-1, keepdims=True)
    return (v - mu) * jax.lax.rsqrt(var + LN_EPS) * g + b


# ----------------------------- fused kernel ----------------------------------

def _decoder_stack_kernel(x_ref, enc_ref, tmask_ref, emask_ref,
                          mw_ref, mb_ref, aw_ref, ab_ref,
                          w1_ref, b1_ref, w2_ref, b2_ref,
                          lng_ref, lnb_ref, o_ref):
    x = x_ref[0]          # (T, D)
    enc = enc_ref[0]      # (S, D)
    tmask = tmask_ref[0]  # (1, T) additive
    emask = emask_ref[0]  # (1, S) additive

    for l in range(NUM_DECODERS):                                   # static unroll
        # masked self-attention + residual + LayerNorm
        attn = _attention(x, x, tmask, mw_ref, mb_ref, l)
        x = _layer_norm(x + attn, lng_ref[l, 0], lnb_ref[l, 0])
        # cross-attention + residual + LayerNorm
        attn = _attention(x, enc, emask, aw_ref, ab_ref, l)
        x = _layer_norm(x + attn, lng_ref[l, 1], lnb_ref[l, 1])
        # feed-forward (dropout = identity) + residual + LayerNorm
        h = jnp.dot(x, w1_ref[l], preferred_element_type=jnp.float32) + b1_ref[l]
        h = jnp.maximum(h, 0.0)
        ff = jnp.dot(h, w2_ref[l], preferred_element_type=jnp.float32) + b2_ref[l]
        x = _layer_norm(x + ff, lng_ref[l, 2], lnb_ref[l, 2])

    o_ref[0] = x


# ----------------------------- wrapper ----------------------------------------

def decoder_forward(target, encoding, target_mask, encoding_mask, params):
    B, T, D = target.shape
    S = encoding.shape[1]
    L = NUM_DECODERS
    F = D_FF

    # additive masks: 0 where attended, -inf where masked (computed once).
    tmask_add = jnp.where(target_mask == 0, -jnp.inf, 0.0).astype(jnp.float32).reshape(B, 1, T)
    emask_add = jnp.where(encoding_mask == 0, -jnp.inf, 0.0).astype(jnp.float32).reshape(B, 1, S)

    def batch_spec(t, d):
        return pl.BlockSpec((1, t, d), lambda b: (b, 0, 0))

    def const_spec(shape):
        n = len(shape)
        return pl.BlockSpec(shape, lambda b, _n=n: (0,) * _n)

    return pl.pallas_call(
        _decoder_stack_kernel,
        out_shape=jax.ShapeDtypeStruct((B, T, D), jnp.float32),
        grid_spec=pltpu.PrefetchScalarGridSpec(
            num_scalar_prefetch=0,
            grid=(B,),
            in_specs=[
                batch_spec(T, D),            # target
                batch_spec(S, D),            # encoding
                batch_spec(1, T),            # additive target mask
                batch_spec(1, S),            # additive encoding mask
                const_spec((L, 4, D, D)),    # masked-attn [Wq,Wk,Wv,Wo]
                const_spec((L, 4, 1, D)),    # masked-attn biases
                const_spec((L, 4, D, D)),    # cross-attn  [Wq,Wk,Wv,Wo]
                const_spec((L, 4, 1, D)),    # cross-attn  biases
                const_spec((L, D, F)),       # ffn W1
                const_spec((L, 1, F)),       # ffn b1
                const_spec((L, F, D)),       # ffn W2
                const_spec((L, 1, D)),       # ffn b2
                const_spec((L, 3, 1, D)),    # LayerNorm gammas
                const_spec((L, 3, 1, D)),    # LayerNorm betas
            ],
            out_specs=batch_spec(T, D),
        ),
        compiler_params=pltpu.CompilerParams(dimension_semantics=("parallel",)),
    )(target, encoding, tmask_add, emask_add,
      params["mw"], params["mb"], params["aw"], params["ab"],
      params["w1"], params["b1"], params["w2"], params["b2"],
      params["ln_g"], params["ln_b"])


# ----------------------------- deterministic init ----------------------------

def _init_linear(key, fan_in, fan_out):
    kw, kb = jax.random.split(key)
    bound = 1.0 / math.sqrt(fan_in)
    w = jax.random.uniform(kw, (fan_in, fan_out), jnp.float32, -bound, bound)
    b = jax.random.uniform(kb, (1, fan_out), jnp.float32, -bound, bound)
    return w, b


def _init_mha(key, d_model, num_heads):
    hd = d_model // num_heads
    keys = jax.random.split(key, 3 * num_heads + 1)
    wq, bq, wk, bk, wv, bv = [], [], [], [], [], []
    for h in range(num_heads):
        w, b = _init_linear(keys[3 * h + 0], d_model, hd); wq.append(w); bq.append(b)
        w, b = _init_linear(keys[3 * h + 1], d_model, hd); wk.append(w); bk.append(b)
        w, b = _init_linear(keys[3 * h + 2], d_model, hd); wv.append(w); bv.append(b)
    wo, bo = _init_linear(keys[-1], d_model, d_model)
    w = jnp.stack([jnp.concatenate(wq, axis=1), jnp.concatenate(wk, axis=1),
                   jnp.concatenate(wv, axis=1), wo])                      # (4, D, D)
    b = jnp.stack([jnp.concatenate(bq, axis=1), jnp.concatenate(bk, axis=1),
                   jnp.concatenate(bv, axis=1), bo])                      # (4, 1, D)
    return w, b


def _init_params(key, d_model, num_heads, d_ff, num_layers):
    mw, mb, aw, ab, w1s, b1s, w2s, b2s = [], [], [], [], [], [], [], []
    for lk in jax.random.split(key, num_layers):
        k = jax.random.split(lk, 4)
        w, b = _init_mha(k[0], d_model, num_heads); mw.append(w); mb.append(b)
        w, b = _init_mha(k[1], d_model, num_heads); aw.append(w); ab.append(b)
        w1, b1 = _init_linear(k[2], d_model, d_ff); w1s.append(w1); b1s.append(b1)
        w2, b2 = _init_linear(k[3], d_ff, d_model); w2s.append(w2); b2s.append(b2)
    return {"mw": jnp.stack(mw), "mb": jnp.stack(mb),
            "aw": jnp.stack(aw), "ab": jnp.stack(ab),
            "w1": jnp.stack(w1s), "b1": jnp.stack(b1s),
            "w2": jnp.stack(w2s), "b2": jnp.stack(b2s),
            "ln_g": jnp.ones((num_layers, 3, 1, d_model), jnp.float32),
            "ln_b": jnp.zeros((num_layers, 3, 1, d_model), jnp.float32)}


# ----------------------------- main ------------------------------------------

if __name__ == "__main__":
    B, T, S = 2, 8, 8
    key = jax.random.PRNGKey(0)
    k_t, k_e, k_p = jax.random.split(key, 3)

    target = jax.random.normal(k_t, (B, T, D_MODEL), jnp.float32)
    encoding = jax.random.normal(k_e, (B, S, D_MODEL), jnp.float32)
    target_mask = jnp.ones((B, T), jnp.int32)
    encoding_mask = jnp.ones((B, S), jnp.int32).at[1, S - 2:].set(0)

    params = _init_params(k_p, D_MODEL, NUM_HEADS, D_FF, NUM_DECODERS)

    fwd = jax.jit(lambda t, e, tm, em: decoder_forward(t, e, tm, em, params))
    out = jax.block_until_ready(fwd(target, encoding, target_mask, encoding_mask))

    assert out.shape == (B, T, D_MODEL)
    assert bool(jnp.all(jnp.isfinite(out)))
    print("KERNEL_OK")
</pallas_src>

<mosaic_0001>
module attributes {stable_mosaic.version = 11 : i64} {
  func.func @_decoder_stack_kernel(%arg0: i32, %arg1: memref<1x8x32xf32, #tpu.memory_space<vmem>>, %arg2: memref<1x8x32xf32, #tpu.memory_space<vmem>>, %arg3: memref<1x1x8xf32, #tpu.memory_space<vmem>>, %arg4: memref<1x1x8xf32, #tpu.memory_space<vmem>>, %arg5: memref<2x4x32x32xf32, #tpu.memory_space<vmem>>, %arg6: memref<2x4x1x32xf32, #tpu.memory_space<vmem>>, %arg7: memref<2x4x32x32xf32, #tpu.memory_space<vmem>>, %arg8: memref<2x4x1x32xf32, #tpu.memory_space<vmem>>, %arg9: memref<2x32x2048xf32, #tpu.memory_space<vmem>>, %arg10: memref<2x1x2048xf32, #tpu.memory_space<vmem>>, %arg11: memref<2x2048x32xf32, #tpu.memory_space<vmem>>, %arg12: memref<2x1x32xf32, #tpu.memory_space<vmem>>, %arg13: memref<2x3x1x32xf32, #tpu.memory_space<vmem>>, %arg14: memref<2x3x1x32xf32, #tpu.memory_space<vmem>>, %arg15: memref<1x8x32xf32, #tpu.memory_space<vmem>>) attributes {dimension_semantics = [#tpu.dimension_semantics<parallel>], iteration_bounds = array<i64: 2>, scalar_prefetch = 0 : i64, scratch_operands = 0 : i64, tpu.core_type = #tpu.core_type<tc>, window_params = [{transform_indices = @transform_0, window_bounds = array<i64: 1, 8, 32>}, {transform_indices = @transform_1, window_bounds = array<i64: 1, 8, 32>}, {transform_indices = @transform_2, window_bounds = array<i64: 1, 1, 8>}, {transform_indices = @transform_3, window_bounds = array<i64: 1, 1, 8>}, {pipeline_mode = #tpu.pipeline_mode<synchronous>, transform_indices = @transform_4, window_bounds = array<i64: 2, 4, 32, 32>}, {pipeline_mode = #tpu.pipeline_mode<synchronous>, transform_indices = @transform_5, window_bounds = array<i64: 2, 4, 1, 32>}, {pipeline_mode = #tpu.pipeline_mode<synchronous>, transform_indices = @transform_6, window_bounds = array<i64: 2, 4, 32, 32>}, {pipeline_mode = #tpu.pipeline_mode<synchronous>, transform_indices = @transform_7, window_bounds = array<i64: 2, 4, 1, 32>}, {pipeline_mode = #tpu.pipeline_mode<synchronous>, transform_indices = @transform_8, window_bounds = array<i64: 2, 32, 2048>}, {pipeline_mode = #tpu.pipeline_mode<synchronous>, transform_indices = @transform_9, window_bounds = array<i64: 2, 1, 2048>}, {pipeline_mode = #tpu.pipeline_mode<synchronous>, transform_indices = @transform_10, window_bounds = array<i64: 2, 2048, 32>}, {pipeline_mode = #tpu.pipeline_mode<synchronous>, transform_indices = @transform_11, window_bounds = array<i64: 2, 1, 32>}, {pipeline_mode = #tpu.pipeline_mode<synchronous>, transform_indices = @transform_12, window_bounds = array<i64: 2, 3, 1, 32>}, {pipeline_mode = #tpu.pipeline_mode<synchronous>, transform_indices = @transform_13, window_bounds = array<i64: 2, 3, 1, 32>}, {transform_indices = @transform_14, window_bounds = array<i64: 1, 8, 32>}]} {
    %c0 = arith.constant 0 : index
    %c0_0 = arith.constant 0 : index
    %c0_1 = arith.constant 0 : index
    %0 = vector.load %arg1[%c0, %c0_0, %c0_1] : memref<1x8x32xf32, #tpu.memory_space<vmem>>, vector<1x8x32xf32>
    %1 = vector.shape_cast %0 : vector<1x8x32xf32> to vector<8x32xf32>
    %c0_2 = arith.constant 0 : index
    %c0_3 = arith.constant 0 : index
    %c0_4 = arith.constant 0 : index
    %2 = vector.load %arg2[%c0_2, %c0_3, %c0_4] : memref<1x8x32xf32, #tpu.memory_space<vmem>>, vector<1x8x32xf32>
    %3 = vector.shape_cast %2 : vector<1x8x32xf32> to vector<8x32xf32>
    %c0_5 = arith.constant 0 : index
    %c0_6 = arith.constant 0 : index
    %c0_7 = arith.constant 0 : index
    %4 = vector.load %arg3[%c0_5, %c0_6, %c0_7] : memref<1x1x8xf32, #tpu.memory_space<vmem>>, vector<1x1x8xf32>
    %5 = vector.shape_cast %4 : vector<1x1x8xf32> to vector<1x8xf32>
    %c0_8 = arith.constant 0 : index
    %c0_9 = arith.constant 0 : index
    %c0_10 = arith.constant 0 : index
    %6 = vector.load %arg4[%c0_8, %c0_9, %c0_10] : memref<1x1x8xf32, #tpu.memory_space<vmem>>, vector<1x1x8xf32>
    %7 = vector.shape_cast %6 : vector<1x1x8xf32> to vector<1x8xf32>
    %c0_11 = arith.constant 0 : index
    %c0_12 = arith.constant 0 : index
    %c0_13 = arith.constant 0 : index
    %c0_14 = arith.constant 0 : index
    %8 = vector.load %arg5[%c0_11, %c0_12, %c0_13, %c0_14] : memref<2x4x32x32xf32, #tpu.memory_space<vmem>>, vector<1x1x32x32xf32>
    %9 = vector.shape_cast %8 : vector<1x1x32x32xf32> to vector<32x32xf32>
    %c0_15 = arith.constant 0 : index
    %c1 = arith.constant 1 : index
    %c0_16 = arith.constant 0 : index
    %c0_17 = arith.constant 0 : index
    %10 = vector.load %arg5[%c0_15, %c1, %c0_16, %c0_17] : memref<2x4x32x32xf32, #tpu.memory_space<vmem>>, vector<1x1x32x32xf32>
    %11 = vector.shape_cast %10 : vector<1x1x32x32xf32> to vector<32x32xf32>
    %c0_18 = arith.constant 0 : index
    %c2 = arith.constant 2 : index
    %c0_19 = arith.constant 0 : index
    %c0_20 = arith.constant 0 : index
    %12 = vector.load %arg5[%c0_18, %c2, %c0_19, %c0_20] : memref<2x4x32x32xf32, #tpu.memory_space<vmem>>, vector<1x1x32x32xf32>
    %13 = vector.shape_cast %12 : vector<1x1x32x32xf32> to vector<32x32xf32>
    %c0_21 = arith.constant 0 : index
    %c3 = arith.constant 3 : index
    %c0_22 = arith.constant 0 : index
    %c0_23 = arith.constant 0 : index
    %14 = vector.load %arg5[%c0_21, %c3, %c0_22, %c0_23] : memref<2x4x32x32xf32, #tpu.memory_space<vmem>>, vector<1x1x32x32xf32>
    %15 = vector.shape_cast %14 : vector<1x1x32x32xf32> to vector<32x32xf32>
    %c0_24 = arith.constant 0 : index
    %c0_25 = arith.constant 0 : index
    %c0_26 = arith.constant 0 : index
    %c0_27 = arith.constant 0 : index
    %16 = vector.load %arg6[%c0_24, %c0_25, %c0_26, %c0_27] : memref<2x4x1x32xf32, #tpu.memory_space<vmem>>, vector<1x1x1x32xf32>
    %17 = vector.shape_cast %16 : vector<1x1x1x32xf32> to vector<1x32xf32>
    %c0_28 = arith.constant 0 : index
    %c1_29 = arith.constant 1 : index
    %c0_30 = arith.constant 0 : index
    %c0_31 = arith.constant 0 : index
    %18 = vector.load %arg6[%c0_28, %c1_29, %c0_30, %c0_31] : memref<2x4x1x32xf32, #tpu.memory_space<vmem>>, vector<1x1x1x32xf32>
    %19 = vector.shape_cast %18 : vector<1x1x1x32xf32> to vector<1x32xf32>
    %c0_32 = arith.constant 0 : index
    %c2_33 = arith.constant 2 : index
    %c0_34 = arith.constant 0 : index
    %c0_35 = arith.constant 0 : index
    %20 = vector.load %arg6[%c0_32, %c2_33, %c0_34, %c0_35] : memref<2x4x1x32xf32, #tpu.memory_space<vmem>>, vector<1x1x1x32xf32>
    %21 = vector.shape_cast %20 : vector<1x1x1x32xf32> to vector<1x32xf32>
    %c0_36 = arith.constant 0 : index
    %c3_37 = arith.constant 3 : index
    %c0_38 = arith.constant 0 : index
    %c0_39 = arith.constant 0 : index
    %22 = vector.load %arg6[%c0_36, %c3_37, %c0_38, %c0_39] : memref<2x4x1x32xf32, #tpu.memory_space<vmem>>, vector<1x1x1x32xf32>
    %23 = vector.shape_cast %22 : vector<1x1x1x32xf32> to vector<1x32xf32>
    %cst = arith.constant dense<0.000000e+00> : vector<8x32xf32>
    %24 = tpu.matmul %1, %9, %cst {dimension_numbers = #tpu.dot_dimension_numbers<[1], [0], [0], [1], [0, 0, 1, 1], [], []>} : vector<8x32xf32>, vector<32x32xf32>, vector<8x32xf32> -> vector<8x32xf32>
    %25 = vector.broadcast %17 : vector<1x32xf32> to vector<8x32xf32>
    %26 = arith.addf %24, %25 : vector<8x32xf32>
    %cst_40 = arith.constant dense<0.000000e+00> : vector<8x32xf32>
    %27 = tpu.matmul %1, %11, %cst_40 {dimension_numbers = #tpu.dot_dimension_numbers<[1], [0], [0], [1], [0, 0, 1, 1], [], []>} : vector<8x32xf32>, vector<32x32xf32>, vector<8x32xf32> -> vector<8x32xf32>
    %28 = vector.broadcast %19 : vector<1x32xf32> to vector<8x32xf32>
    %29 = arith.addf %27, %28 : vector<8x32xf32>
    %cst_41 = arith.constant dense<0.000000e+00> : vector<8x32xf32>
    %30 = tpu.matmul %1, %13, %cst_41 {dimension_numbers = #tpu.dot_dimension_numbers<[1], [0], [0], [1], [0, 0, 1, 1], [], []>} : vector<8x32xf32>, vector<32x32xf32>, vector<8x32xf32> -> vector<8x32xf32>
    %31 = vector.broadcast %21 : vector<1x32xf32> to vector<8x32xf32>
    %32 = arith.addf %30, %31 : vector<8x32xf32>
    %cst_42 = arith.constant 0.000000e+00 : f32
    %33 = vector.broadcast %cst_42 : f32 to vector<8x32xf32>
    %34 = vector.extract_strided_slice %26 {offsets = [0, 0], sizes = [8, 8], strides = [1, 1]} : vector<8x32xf32> to vector<8x8xf32>
    %35 = vector.extract_strided_slice %29 {offsets = [0, 0], sizes = [8, 8], strides = [1, 1]} : vector<8x32xf32> to vector<8x8xf32>
    %36 = vector.extract_strided_slice %32 {offsets = [0, 0], sizes = [8, 8], strides = [1, 1]} : vector<8x32xf32> to vector<8x8xf32>
    %cst_43 = arith.constant dense<0.000000e+00> : vector<8x8xf32>
    %37 = tpu.matmul %34, %35, %cst_43 {dimension_numbers = #tpu.dot_dimension_numbers<[1], [1], [0], [0], [0, 0, 1, 0], [], []>} : vector<8x8xf32>, vector<8x8xf32>, vector<8x8xf32> -> vector<8x8xf32>
    %cst_44 = arith.constant 2.82842708 : f32
    %38 = vector.broadcast %cst_44 : f32 to vector<8x8xf32>
    %39 = arith.divf %37, %38 : vector<8x8xf32>
    %40 = math.floor %39 : vector<8x8xf32>
    %41 = vector.broadcast %5 : vector<1x8xf32> to vector<8x8xf32>
    %42 = arith.addf %40, %41 : vector<8x8xf32>
    %cst_45 = arith.constant dense<0xFF800000> : vector<8xf32>
    %43 = vector.multi_reduction <maximumf>, %42, %cst_45 [1] : vector<8x8xf32> to vector<8xf32>
    %44 = vector.shape_cast %43 : vector<8xf32> to vector<8x1xf32>
    %45 = vector.broadcast %44 : vector<8x1xf32> to vector<8x8xf32>
    %46 = arith.subf %42, %45 : vector<8x8xf32>
    %47 = math.exp %46 : vector<8x8xf32>
    %cst_46 = arith.constant dense<0.000000e+00> : vector<8xf32>
    %48 = vector.multi_reduction <add>, %47, %cst_46 [1] : vector<8x8xf32> to vector<8xf32>
    %49 = vector.shape_cast %48 : vector<8xf32> to vector<8x1xf32>
    %50 = tpu.reciprocal %49 {approx = true} : vector<8x1xf32> -> vector<8x1xf32>
    %51 = vector.broadcast %50 : vector<8x1xf32> to vector<8x8xf32>
    %52 = arith.mulf %47, %51 : vector<8x8xf32>
    %cst_47 = arith.constant dense<0.000000e+00> : vector<8x8xf32>
    %53 = tpu.matmul %52, %36, %cst_47 {dimension_numbers = #tpu.dot_dimension_numbers<[1], [0], [0], [1], [0, 0, 1, 1], [], []>} : vector<8x8xf32>, vector<8x8xf32>, vector<8x8xf32> -> vector<8x8xf32>
    %54 = vector.extract_strided_slice %15 {offsets = [0, 0], sizes = [8, 32], strides = [1, 1]} : vector<32x32xf32> to vector<8x32xf32>
    %cst_48 = arith.constant dense<0.000000e+00> : vector<8x32xf32>
    %55 = tpu.matmul %53, %54, %cst_48 {dimension_numbers = #tpu.dot_dimension_numbers<[1], [0], [0], [1], [0, 0, 1, 1], [], []>} : vector<8x8xf32>, vector<8x32xf32>, vector<8x32xf32> -> vector<8x32xf32>
    %56 = arith.addf %33, %55 : vector<8x32xf32>
    %57 = vector.extract_strided_slice %26 {offsets = [0, 8], sizes = [8, 8], strides = [1, 1]} : vector<8x32xf32> to vector<8x8xf32>
    %58 = vector.extract_strided_slice %29 {offsets = [0, 8], sizes = [8, 8], strides = [1, 1]} : vector<8x32xf32> to vector<8x8xf32>
    %59 = vector.extract_strided_slice %32 {offsets = [0, 8], sizes = [8, 8], strides = [1, 1]} : vector<8x32xf32> to vector<8x8xf32>
    %cst_49 = arith.constant dense<0.000000e+00> : vector<8x8xf32>
    %60 = tpu.matmul %57, %58, %cst_49 {dimension_numbers = #tpu.dot_dimension_numbers<[1], [1], [0], [0], [0, 0, 1, 0], [], []>} : vector<8x8xf32>, vector<8x8xf32>, vector<8x8xf32> -> vector<8x8xf32>
    %cst_50 = arith.constant 2.82842708 : f32
    %61 = vector.broadcast %cst_50 : f32 to vector<8x8xf32>
    %62 = arith.divf %60, %61 : vector<8x8xf32>
    %63 = math.floor %62 : vector<8x8xf32>
    %64 = vector.broadcast %5 : vector<1x8xf32> to vector<8x8xf32>
    %65 = arith.addf %63, %64 : vector<8x8xf32>
    %cst_51 = arith.constant dense<0xFF800000> : vector<8xf32>
    %66 = vector.multi_reduction <maximumf>, %65, %cst_51 [1] : vector<8x8xf32> to vector<8xf32>
    %67 = vector.shape_cast %66 : vector<8xf32> to vector<8x1xf32>
    %68 = vector.broadcast %67 : vector<8x1xf32> to vector<8x8xf32>
    %69 = arith.subf %65, %68 : vector<8x8xf32>
    %70 = math.exp %69 : vector<8x8xf32>
    %cst_52 = arith.constant dense<0.000000e+00> : vector<8xf32>
    %71 = vector.multi_reduction <add>, %70, %cst_52 [1] : vector<8x8xf32> to vector<8xf32>
    %72 = vector.shape_cast %71 : vector<8xf32> to vector<8x1xf32>
    %73 = tpu.reciprocal %72 {approx = true} : vector<8x1xf32> -> vector<8x1xf32>
    %74 = vector.broadcast %73 : vector<8x1xf32> to vector<8x8xf32>
    %75 = arith.mulf %70, %74 : vector<8x8xf32>
    %cst_53 = arith.constant dense<0.000000e+00> : vector<8x8xf32>
    %76 = tpu.matmul %75, %59, %cst_53 {dimension_numbers = #tpu.dot_dimension_numbers<[1], [0], [0], [1], [0, 0, 1, 1], [], []>} : vector<8x8xf32>, vector<8x8xf32>, vector<8x8xf32> -> vector<8x8xf32>
    %77 = vector.extract_strided_slice %15 {offsets = [8, 0], sizes = [8, 32], strides = [1, 1]} : vector<32x32xf32> to vector<8x32xf32>
    %cst_54 = arith.constant dense<0.000000e+00> : vector<8x32xf32>
    %78 = tpu.matmul %76, %77, %cst_54 {dimension_numbers = #tpu.dot_dimension_numbers<[1], [0], [0], [1], [0, 0, 1, 1], [], []>} : vector<8x8xf32>, vector<8x32xf32>, vector<8x32xf32> -> vector<8x32xf32>
    %79 = arith.addf %56, %78 : vector<8x32xf32>
    %80 = vector.extract_strided_slice %26 {offsets = [0, 16], sizes = [8, 8], strides = [1, 1]} : vector<8x32xf32> to vector<8x8xf32>
    %81 = vector.extract_strided_slice %29 {offsets = [0, 16], sizes = [8, 8], strides = [1, 1]} : vector<8x32xf32> to vector<8x8xf32>
    %82 = vector.extract_strided_slice %32 {offsets = [0, 16], sizes = [8, 8], strides = [1, 1]} : vector<8x32xf32> to vector<8x8xf32>
    %cst_55 = arith.constant dense<0.000000e+00> : vector<8x8xf32>
    %83 = tpu.matmul %80, %81, %cst_55 {dimension_numbers = #tpu.dot_dimension_numbers<[1], [1], [0], [0], [0, 0, 1, 0], [], []>} : vector<8x8xf32>, vector<8x8xf32>, vector<8x8xf32> -> vector<8x8xf32>
    %cst_56 = arith.constant 2.82842708 : f32
    %84 = vector.broadcast %cst_56 : f32 to vector<8x8xf32>
    %85 = arith.divf %83, %84 : vector<8x8xf32>
    %86 = math.floor %85 : vector<8x8xf32>
    %87 = vector.broadcast %5 : vector<1x8xf32> to vector<8x8xf32>
    %88 = arith.addf %86, %87 : vector<8x8xf32>
    %cst_57 = arith.constant dense<0xFF800000> : vector<8xf32>
    %89 = vector.multi_reduction <maximumf>, %88, %cst_57 [1] : vector<8x8xf32> to vector<8xf32>
    %90 = vector.shape_cast %89 : vector<8xf32> to vector<8x1xf32>
    %91 = vector.broadcast %90 : vector<8x1xf32> to vector<8x8xf32>
    %92 = arith.subf %88, %91 : vector<8x8xf32>
    %93 = math.exp %92 : vector<8x8xf32>
    %cst_58 = arith.constant dense<0.000000e+00> : vector<8xf32>
    %94 = vector.multi_reduction <add>, %93, %cst_58 [1] : vector<8x8xf32> to vector<8xf32>
    %95 = vector.shape_cast %94 : vector<8xf32> to vector<8x1xf32>
    %96 = tpu.reciprocal %95 {approx = true} : vector<8x1xf32> -> vector<8x1xf32>
    %97 = vector.broadcast %96 : vector<8x1xf32> to vector<8x8xf32>
    %98 = arith.mulf %93, %97 : vector<8x8xf32>
    %cst_59 = arith.constant dense<0.000000e+00> : vector<8x8xf32>
    %99 = tpu.matmul %98, %82, %cst_59 {dimension_numbers = #tpu.dot_dimension_numbers<[1], [0], [0], [1], [0, 0, 1, 1], [], []>} : vector<8x8xf32>, vector<8x8xf32>, vector<8x8xf32> -> vector<8x8xf32>
    %100 = vector.extract_strided_slice %15 {offsets = [16, 0], sizes = [8, 32], strides = [1, 1]} : vector<32x32xf32> to vector<8x32xf32>
    %cst_60 = arith.constant dense<0.000000e+00> : vector<8x32xf32>
    %101 = tpu.matmul %99, %100, %cst_60 {dimension_numbers = #tpu.dot_dimension_numbers<[1], [0], [0], [1], [0, 0, 1, 1], [], []>} : vector<8x8xf32>, vector<8x32xf32>, vector<8x32xf32> -> vector<8x32xf32>
    %102 = arith.addf %79, %101 : vector<8x32xf32>
    %103 = vector.extract_strided_slice %26 {offsets = [0, 24], sizes = [8, 8], strides = [1, 1]} : vector<8x32xf32> to vector<8x8xf32>
    %104 = vector.extract_strided_slice %29 {offsets = [0, 24], sizes = [8, 8], strides = [1, 1]} : vector<8x32xf32> to vector<8x8xf32>
    %105 = vector.extract_strided_slice %32 {offsets = [0, 24], sizes = [8, 8], strides = [1, 1]} : vector<8x32xf32> to vector<8x8xf32>
    %cst_61 = arith.constant dense<0.000000e+00> : vector<8x8xf32>
    %106 = tpu.matmul %103, %104, %cst_61 {dimension_numbers = #tpu.dot_dimension_numbers<[1], [1], [0], [0], [0, 0, 1, 0], [], []>} : vector<8x8xf32>, vector<8x8xf32>, vector<8x8xf32> -> vector<8x8xf32>
    %cst_62 = arith.constant 2.82842708 : f32
    %107 = vector.broadcast %cst_62 : f32 to vector<8x8xf32>
    %108 = arith.divf %106, %107 : vector<8x8xf32>
    %109 = math.floor %108 : vector<8x8xf32>
    %110 = vector.broadcast %5 : vector<1x8xf32> to vector<8x8xf32>
    %111 = arith.addf %109, %110 : vector<8x8xf32>
    %cst_63 = arith.constant dense<0xFF800000> : vector<8xf32>
    %112 = vector.multi_reduction <maximumf>, %111, %cst_63 [1] : vector<8x8xf32> to vector<8xf32>
    %113 = vector.shape_cast %112 : vector<8xf32> to vector<8x1xf32>
    %114 = vector.broadcast %113 : vector<8x1xf32> to vector<8x8xf32>
    %115 = arith.subf %111, %114 : vector<8x8xf32>
    %116 = math.exp %115 : vector<8x8xf32>
    %cst_64 = arith.constant dense<0.000000e+00> : vector<8xf32>
    %117 = vector.multi_reduction <add>, %116, %cst_64 [1] : vector<8x8xf32> to vector<8xf32>
    %118 = vector.shape_cast %117 : vector<8xf32> to vector<8x1xf32>
    %119 = tpu.reciprocal %118 {approx = true} : vector<8x1xf32> -> vector<8x1xf32>
    %120 = vector.broadcast %119 : vector<8x1xf32> to vector<8x8xf32>
    %121 = arith.mulf %116, %120 : vector<8x8xf32>
    %cst_65 = arith.constant dense<0.000000e+00> : vector<8x8xf32>
    %122 = tpu.matmul %121, %105, %cst_65 {dimension_numbers = #tpu.dot_dimension_numbers<[1], [0], [0], [1], [0, 0, 1, 1], [], []>} : vector<8x8xf32>, vector<8x8xf32>, vector<8x8xf32> -> vector<8x8xf32>
    %123 = vector.extract_strided_slice %15 {offsets = [24, 0], sizes = [8, 32], strides = [1, 1]} : vector<32x32xf32> to vector<8x32xf32>
    %cst_66 = arith.constant dense<0.000000e+00> : vector<8x32xf32>
    %124 = tpu.matmul %122, %123, %cst_66 {dimension_numbers = #tpu.dot_dimension_numbers<[1], [0], [0], [1], [0, 0, 1, 1], [], []>} : vector<8x8xf32>, vector<8x32xf32>, vector<8x32xf32> -> vector<8x32xf32>
    %125 = arith.addf %102, %124 : vector<8x32xf32>
    %126 = vector.broadcast %23 : vector<1x32xf32> to vector<8x32xf32>
    %127 = arith.addf %125, %126 : vector<8x32xf32>
    %128 = arith.addf %1, %127 : vector<8x32xf32>
    %c0_67 = arith.constant 0 : index
    %c0_68 = arith.constant 0 : index
    %c0_69 = arith.constant 0 : index
    %c0_70 = arith.constant 0 : index
    %129 = vector.load %arg13[%c0_67, %c0_68, %c0_69, %c0_70] : memref<2x3x1x32xf32, #tpu.memory_space<vmem>>, vector<1x1x1x32xf32>
    %130 = vector.shape_cast %129 : vector<1x1x1x32xf32> to vector<1x32xf32>
    %c0_71 = arith.constant 0 : index
    %c0_72 = arith.constant 0 : index
    %c0_73 = arith.constant 0 : index
    %c0_74 = arith.constant 0 : index
    %131 = vector.load %arg14[%c0_71, %c0_72, %c0_73, %c0_74] : memref<2x3x1x32xf32, #tpu.memory_space<vmem>>, vector<1x1x1x32xf32>
    %132 = vector.shape_cast %131 : vector<1x1x1x32xf32> to vector<1x32xf32>
    %cst_75 = arith.constant dense<0.000000e+00> : vector<8xf32>
    %133 = vector.multi_reduction <add>, %128, %cst_75 [1] : vector<8x32xf32> to vector<8xf32>
    %134 = vector.shape_cast %133 : vector<8xf32> to vector<8x1xf32>
    %cst_76 = arith.constant 3.200000e+01 : f32
    %135 = vector.broadcast %cst_76 : f32 to vector<8x1xf32>
    %136 = arith.divf %134, %135 : vector<8x1xf32>
    %137 = vector.broadcast %136 : vector<8x1xf32> to vector<8x32xf32>
    %138 = arith.subf %128, %137 : vector<8x32xf32>
    %139 = arith.mulf %138, %138 : vector<8x32xf32>
    %cst_77 = arith.constant dense<0.000000e+00> : vector<8xf32>
    %140 = vector.multi_reduction <add>, %139, %cst_77 [1] : vector<8x32xf32> to vector<8xf32>
    %141 = vector.shape_cast %140 : vector<8xf32> to vector<8x1xf32>
    %cst_78 = arith.constant 3.200000e+01 : f32
    %142 = vector.broadcast %cst_78 : f32 to vector<8x1xf32>
    %143 = arith.divf %141, %142 : vector<8x1xf32>
    %144 = vector.broadcast %136 : vector<8x1xf32> to vector<8x32xf32>
    %145 = arith.subf %128, %144 : vector<8x32xf32>
    %cst_79 = arith.constant 9.99999974E-6 : f32
    %146 = vector.broadcast %cst_79 : f32 to vector<8x1xf32>
    %147 = arith.addf %143, %146 : vector<8x1xf32>
    %148 = math.rsqrt %147 : vector<8x1xf32>
    %149 = vector.broadcast %148 : vector<8x1xf32> to vector<8x32xf32>
    %150 = arith.mulf %145, %149 : vector<8x32xf32>
    %151 = vector.broadcast %130 : vector<1x32xf32> to vector<8x32xf32>
    %152 = arith.mulf %150, %151 : vector<8x32xf32>
    %153 = vector.broadcast %132 : vector<1x32xf32> to vector<8x32xf32>
    %154 = arith.addf %152, %153 : vector<8x32xf32>
    %c0_80 = arith.constant 0 : index
    %c0_81 = arith.constant 0 : index
    %c0_82 = arith.constant 0 : index
    %c0_83 = arith.constant 0 : index
    %155 = vector.load %arg7[%c0_80, %c0_81, %c0_82, %c0_83] : memref<2x4x32x32xf32, #tpu.memory_space<vmem>>, vector<1x1x32x32xf32>
    %156 = vector.shape_cast %155 : vector<1x1x32x32xf32> to vector<32x32xf32>
    %c0_84 = arith.constant 0 : index
    %c1_85 = arith.constant 1 : index
    %c0_86 = arith.constant 0 : index
    %c0_87 = arith.constant 0 : index
    %157 = vector.load %arg7[%c0_84, %c1_85, %c0_86, %c0_87] : memref<2x4x32x32xf32, #tpu.memory_space<vmem>>, vector<1x1x32x32xf32>
    %158 = vector.shape_cast %157 : vector<1x1x32x32xf32> to vector<32x32xf32>
    %c0_88 = arith.constant 0 : index
    %c2_89 = arith.constant 2 : index
    %c0_90 = arith.constant 0 : index
    %c0_91 = arith.constant 0 : index
    %159 = vector.load %arg7[%c0_88, %c2_89, %c0_90, %c0_91] : memref<2x4x32x32xf32, #tpu.memory_space<vmem>>, vector<1x1x32x32xf32>
    %160 = vector.shape_cast %159 : vector<1x1x32x32xf32> to vector<32x32xf32>
    %c0_92 = arith.constant 0 : index
    %c3_93 = arith.constant 3 : index
    %c0_94 = arith.constant 0 : index
    %c0_95 = arith.constant 0 : index
    %161 = vector.load %arg7[%c0_92, %c3_93, %c0_94, %c0_95] : memref<2x4x32x32xf32, #tpu.memory_space<vmem>>, vector<1x1x32x32xf32>
    %162 = vector.shape_cast %161 : vector<1x1x32x32xf32> to vector<32x32xf32>
    %c0_96 = arith.constant 0 : index
    %c0_97 = arith.constant 0 : index
    %c0_98 = arith.constant 0 : index
    %c0_99 = arith.constant 0 : index
    %163 = vector.load %arg8[%c0_96, %c0_97, %c0_98, %c0_99] : memref<2x4x1x32xf32, #tpu.memory_space<vmem>>, vector<1x1x1x32xf32>
    %164 = vector.shape_cast %163 : vector<1x1x1x32xf32> to vector<1x32xf32>
    %c0_100 = arith.constant 0 : index
    %c1_101 = arith.constant 1 : index
    %c0_102 = arith.constant 0 : index
    %c0_103 = arith.constant 0 : index
    %165 = vector.load %arg8[%c0_100, %c1_101, %c0_102, %c0_103] : memref<2x4x1x32xf32, #tpu.memory_space<vmem>>, vector<1x1x1x32xf32>
    %166 = vector.shape_cast %165 : vector<1x1x1x32xf32> to vector<1x32xf32>
    %c0_104 = arith.constant 0 : index
    %c2_105 = arith.constant 2 : index
    %c0_106 = arith.constant 0 : index
    %c0_107 = arith.constant 0 : index
    %167 = vector.load %arg8[%c0_104, %c2_105, %c0_106, %c0_107] : memref<2x4x1x32xf32, #tpu.memory_space<vmem>>, vector<1x1x1x32xf32>
    %168 = vector.shape_cast %167 : vector<1x1x1x32xf32> to vector<1x32xf32>
    %c0_108 = arith.constant 0 : index
    %c3_109 = arith.constant 3 : index
    %c0_110 = arith.constant 0 : index
    %c0_111 = arith.constant 0 : index
    %169 = vector.load %arg8[%c0_108, %c3_109, %c0_110, %c0_111] : memref<2x4x1x32xf32, #tpu.memory_space<vmem>>, vector<1x1x1x32xf32>
    %170 = vector.shape_cast %169 : vector<1x1x1x32xf32> to vector<1x32xf32>
    %cst_112 = arith.constant dense<0.000000e+00> : vector<8x32xf32>
    %171 = tpu.matmul %154, %156, %cst_112 {dimension_numbers = #tpu.dot_dimension_numbers<[1], [0], [0], [1], [0, 0, 1, 1], [], []>} : vector<8x32xf32>, vector<32x32xf32>, vector<8x32xf32> -> vector<8x32xf32>
    %172 = vector.broadcast %164 : vector<1x32xf32> to vector<8x32xf32>
    %173 = arith.addf %171, %172 : vector<8x32xf32>
    %cst_113 = arith.constant dense<0.000000e+00> : vector<8x32xf32>
    %174 = tpu.matmul %3, %158, %cst_113 {dimension_numbers = #tpu.dot_dimension_numbers<[1], [0], [0], [1], [0, 0, 1, 1], [], []>} : vector<8x32xf32>, vector<32x32xf32>, vector<8x32xf32> -> vector<8x32xf32>
    %175 = vector.broadcast %166 : vector<1x32xf32> to vector<8x32xf32>
    %176 = arith.addf %174, %175 : vector<8x32xf32>
    %cst_114 = arith.constant dense<0.000000e+00> : vector<8x32xf32>
    %177 = tpu.matmul %3, %160, %cst_114 {dimension_numbers = #tpu.dot_dimension_numbers<[1], [0], [0], [1], [0, 0, 1, 1], [], []>} : vector<8x32xf32>, vector<32x32xf32>, vector<8x32xf32> -> vector<8x32xf32>
    %178 = vector.broadcast %168 : vector<1x32xf32> to vector<8x32xf32>
    %179 = arith.addf %177, %178 : vector<8x32xf32>
    %cst_115 = arith.constant 0.000000e+00 : f32
    %180 = vector.broadcast %cst_115 : f32 to vector<8x32xf32>
    %181 = vector.extract_strided_slice %173 {offsets = [0, 0], sizes = [8, 8], strides = [1, 1]} : vector<8x32xf32> to vector<8x8xf32>
    %182 = vector.extract_strided_slice %176 {offsets = [0, 0], sizes = [8, 8], strides = [1, 1]} : vector<8x32xf32> to vector<8x8xf32>
    %183 = vector.extract_strided_slice %179 {offsets = [0, 0], sizes = [8, 8], strides = [1, 1]} : vector<8x32xf32> to vector<8x8xf32>
    %cst_116 = arith.constant dense<0.000000e+00> : vector<8x8xf32>
    %184 = tpu.matmul %181, %182, %cst_116 {dimension_numbers = #tpu.dot_dimension_numbers<[1], [1], [0], [0], [0, 0, 1, 0], [], []>} : vector<8x8xf32>, vector<8x8xf32>, vector<8x8xf32> -> vector<8x8xf32>
    %cst_117 = arith.constant 2.82842708 : f32
    %185 = vector.broadcast %cst_117 : f32 to vector<8x8xf32>
    %186 = arith.divf %184, %185 : vector<8x8xf32>
    %187 = math.floor %186 : vector<8x8xf32>
    %188 = vector.broadcast %7 : vector<1x8xf32> to vector<8x8xf32>
    %189 = arith.addf %187, %188 : vector<8x8xf32>
    %cst_118 = arith.constant dense<0xFF800000> : vector<8xf32>
    %190 = vector.multi_reduction <maximumf>, %189, %cst_118 [1] : vector<8x8xf32> to vector<8xf32>
    %191 = vector.shape_cast %190 : vector<8xf32> to vector<8x1xf32>
    %192 = vector.broadcast %191 : vector<8x1xf32> to vector<8x8xf32>
    %193 = arith.subf %189, %192 : vector<8x8xf32>
    %194 = math.exp %193 : vector<8x8xf32>
    %cst_119 = arith.constant dense<0.000000e+00> : vector<8xf32>
    %195 = vector.multi_reduction <add>, %194, %cst_119 [1] : vector<8x8xf32> to vector<8xf32>
    %196 = vector.shape_cast %195 : vector<8xf32> to vector<8x1xf32>
    %197 = tpu.reciprocal %196 {approx = true} : vector<8x1xf32> -> vector<8x1xf32>
    %198 = vector.broadcast %197 : vector<8x1xf32> to vector<8x8xf32>
    %199 = arith.mulf %194, %198 : vector<8x8xf32>
    %cst_120 = arith.constant dense<0.000000e+00> : vector<8x8xf32>
    %200 = tpu.matmul %199, %183, %cst_120 {dimension_numbers = #tpu.dot_dimension_numbers<[1], [0], [0], [1], [0, 0, 1, 1], [], []>} : vector<8x8xf32>, vector<8x8xf32>, vector<8x8xf32> -> vector<8x8xf32>
    %201 = vector.extract_strided_slice %162 {offsets = [0, 0], sizes = [8, 32], strides = [1, 1]} : vector<32x32xf32> to vector<8x32xf32>
    %cst_121 = arith.constant dense<0.000000e+00> : vector<8x32xf32>
    %202 = tpu.matmul %200, %201, %cst_121 {dimension_numbers = #tpu.dot_dimension_numbers<[1], [0], [0], [1], [0, 0, 1, 1], [], []>} : vector<8x8xf32>, vector<8x32xf32>, vector<8x32xf32> -> vector<8x32xf32>
    %203 = arith.addf %180, %202 : vector<8x32xf32>
    %204 = vector.extract_strided_slice %173 {offsets = [0, 8], sizes = [8, 8], strides = [1, 1]} : vector<8x32xf32> to vector<8x8xf32>
    %205 = vector.extract_strided_slice %176 {offsets = [0, 8], sizes = [8, 8], strides = [1, 1]} : vector<8x32xf32> to vector<8x8xf32>
    %206 = vector.extract_strided_slice %179 {offsets = [0, 8], sizes = [8, 8], strides = [1, 1]} : vector<8x32xf32> to vector<8x8xf32>
    %cst_122 = arith.constant dense<0.000000e+00> : vector<8x8xf32>
    %207 = tpu.matmul %204, %205, %cst_122 {dimension_numbers = #tpu.dot_dimension_numbers<[1], [1], [0], [0], [0, 0, 1, 0], [], []>} : vector<8x8xf32>, vector<8x8xf32>, vector<8x8xf32> -> vector<8x8xf32>
    %cst_123 = arith.constant 2.82842708 : f32
    %208 = vector.broadcast %cst_123 : f32 to vector<8x8xf32>
    %209 = arith.divf %207, %208 : vector<8x8xf32>
    %210 = math.floor %209 : vector<8x8xf32>
    %211 = vector.broadcast %7 : vector<1x8xf32> to vector<8x8xf32>
    %212 = arith.addf %210, %211 : vector<8x8xf32>
    %cst_124 = arith.constant dense<0xFF800000> : vector<8xf32>
    %213 = vector.multi_reduction <maximumf>, %212, %cst_124 [1] : vector<8x8xf32> to vector<8xf32>
    %214 = vector.shape_cast %213 : vector<8xf32> to vector<8x1xf32>
    %215 = vector.broadcast %214 : vector<8x1xf32> to vector<8x8xf32>
    %216 = arith.subf %212, %215 : vector<8x8xf32>
    %217 = math.exp %216 : vector<8x8xf32>
    %cst_125 = arith.constant dense<0.000000e+00> : vector<8xf32>
    %218 = vector.multi_reduction <add>, %217, %cst_125 [1] : vector<8x8xf32> to vector<8xf32>
    %219 = vector.shape_cast %218 : vector<8xf32> to vector<8x1xf32>
    %220 = tpu.reciprocal %219 {approx = true} : vector<8x1xf32> -> vector<8x1xf32>
    %221 = vector.broadcast %220 : vector<8x1xf32> to vector<8x8xf32>
    %222 = arith.mulf %217, %221 : vector<8x8xf32>
    %cst_126 = arith.constant dense<0.000000e+00> : vector<8x8xf32>
    %223 = tpu.matmul %222, %206, %cst_126 {dimension_numbers = #tpu.dot_dimension_numbers<[1], [0], [0], [1], [0, 0, 1, 1], [], []>} : vector<8x8xf32>, vector<8x8xf32>, vector<8x8xf32> -> vector<8x8xf32>
    %224 = vector.extract_strided_slice %162 {offsets = [8, 0], sizes = [8, 32], strides = [1, 1]} : vector<32x32xf32> to vector<8x32xf32>
    %cst_127 = arith.constant dense<0.000000e+00> : vector<8x32xf32>
    %225 = tpu.matmul %223, %224, %cst_127 {dimension_numbers = #tpu.dot_dimension_numbers<[1], [0], [0], [1], [0, 0, 1, 1], [], []>} : vector<8x8xf32>, vector<8x32xf32>, vector<8x32xf32> -> vector<8x32xf32>
    %226 = arith.addf %203, %225 : vector<8x32xf32>
    %227 = vector.extract_strided_slice %173 {offsets = [0, 16], sizes = [8, 8], strides = [1, 1]} : vector<8x32xf32> to vector<8x8xf32>
    %228 = vector.extract_strided_slice %176 {offsets = [0, 16], sizes = [8, 8], strides = [1, 1]} : vector<8x32xf32> to vector<8x8xf32>
    %229 = vector.extract_strided_slice %179 {offsets = [0, 16], sizes = [8, 8], strides = [1, 1]} : vector<8x32xf32> to vector<8x8xf32>
    %cst_128 = arith.constant dense<0.000000e+00> : vector<8x8xf32>
    %230 = tpu.matmul %227, %228, %cst_128 {dimension_numbers = #tpu.dot_dimension_numbers<[1], [1], [0], [0], [0, 0, 1, 0], [], []>} : vector<8x8xf32>, vector<8x8xf32>, vector<8x8xf32> -> vector<8x8xf32>
    %cst_129 = arith.constant 2.82842708 : f32
    %231 = vector.broadcast %cst_129 : f32 to vector<8x8xf32>
    %232 = arith.divf %230, %231 : vector<8x8xf32>
    %233 = math.floor %232 : vector<8x8xf32>
    %234 = vector.broadcast %7 : vector<1x8xf32> to vector<8x8xf32>
    %235 = arith.addf %233, %234 : vector<8x8xf32>
    %cst_130 = arith.constant dense<0xFF800000> : vector<8xf32>
    %236 = vector.multi_reduction <maximumf>, %235, %cst_130 [1] : vector<8x8xf32> to vector<8xf32>
    %237 = vector.shape_cast %236 : vector<8xf32> to vector<8x1xf32>
    %238 = vector.broadcast %237 : vector<8x1xf32> to vector<8x8xf32>
    %239 = arith.subf %235, %238 : vector<8x8xf32>
    %240 = math.exp %239 : vector<8x8xf32>
    %cst_131 = arith.constant dense<0.000000e+00> : vector<8xf32>
    %241 = vector.multi_reduction <add>, %240, %cst_131 [1] : vector<8x8xf32> to vector<8xf32>
    %242 = vector.shape_cast %241 : vector<8xf32> to vector<8x1xf32>
    %243 = tpu.reciprocal %242 {approx = true} : vector<8x1xf32> -> vector<8x1xf32>
    %244 = vector.broadcast %243 : vector<8x1xf32> to vector<8x8xf32>
    %245 = arith.mulf %240, %244 : vector<8x8xf32>
    %cst_132 = arith.constant dense<0.000000e+00> : vector<8x8xf32>
    %246 = tpu.matmul %245, %229, %cst_132 {dimension_numbers = #tpu.dot_dimension_numbers<[1], [0], [0], [1], [0, 0, 1, 1], [], []>} : vector<8x8xf32>, vector<8x8xf32>, vector<8x8xf32> -> vector<8x8xf32>
    %247 = vector.extract_strided_slice %162 {offsets = [16, 0], sizes = [8, 32], strides = [1, 1]} : vector<32x32xf32> to vector<8x32xf32>
    %cst_133 = arith.constant dense<0.000000e+00> : vector<8x32xf32>
    %248 = tpu.matmul %246, %247, %cst_133 {dimension_numbers = #tpu.dot_dimension_numbers<[1], [0], [0], [1], [0, 0, 1, 1], [], []>} : vector<8x8xf32>, vector<8x32xf32>, vector<8x32xf32> -> vector<8x32xf32>
    %249 = arith.addf %226, %248 : vector<8x32xf32>
    %250 = vector.extract_strided_slice %173 {offsets = [0, 24], sizes = [8, 8], strides = [1, 1]} : vector<8x32xf32> to vector<8x8xf32>
    %251 = vector.extract_strided_slice %176 {offsets = [0, 24], sizes = [8, 8], strides = [1, 1]} : vector<8x32xf32> to vector<8x8xf32>
    %252 = vector.extract_strided_slice %179 {offsets = [0, 24], sizes = [8, 8], strides = [1, 1]} : vector<8x32xf32> to vector<8x8xf32>
    %cst_134 = arith.constant dense<0.000000e+00> : vector<8x8xf32>
    %253 = tpu.matmul %250, %251, %cst_134 {dimension_numbers = #tpu.dot_dimension_numbers<[1], [1], [0], [0], [0, 0, 1, 0], [], []>} : vector<8x8xf32>, vector<8x8xf32>, vector<8x8xf32> -> vector<8x8xf32>
    %cst_135 = arith.constant 2.82842708 : f32
    %254 = vector.broadcast %cst_135 : f32 to vector<8x8xf32>
    %255 = arith.divf %253, %254 : vector<8x8xf32>
    %256 = math.floor %255 : vector<8x8xf32>
    %257 = vector.broadcast %7 : vector<1x8xf32> to vector<8x8xf32>
    %258 = arith.addf %256, %257 : vector<8x8xf32>
    %cst_136 = arith.constant dense<0xFF800000> : vector<8xf32>
    %259 = vector.multi_reduction <maximumf>, %258, %cst_136 [1] : vector<8x8xf32> to vector<8xf32>
    %260 = vector.shape_cast %259 : vector<8xf32> to vector<8x1xf32>
    %261 = vector.broadcast %260 : vector<8x1xf32> to vector<8x8xf32>
    %262 = arith.subf %258, %261 : vector<8x8xf32>
    %263 = math.exp %262 : vector<8x8xf32>
    %cst_137 = arith.constant dense<0.000000e+00> : vector<8xf32>
    %264 = vector.multi_reduction <add>, %263, %cst_137 [1] : vector<8x8xf32> to vector<8xf32>
    %265 = vector.shape_cast %264 : vector<8xf32> to vector<8x1xf32>
    %266 = tpu.reciprocal %265 {approx = true} : vector<8x1xf32> -> vector<8x1xf32>
    %267 = vector.broadcast %266 : vector<8x1xf32> to vector<8x8xf32>
    %268 = arith.mulf %263, %267 : vector<8x8xf32>
    %cst_138 = arith.constant dense<0.000000e+00> : vector<8x8xf32>
    %269 = tpu.matmul %268, %252, %cst_138 {dimension_numbers = #tpu.dot_dimension_numbers<[1], [0], [0], [1], [0, 0, 1, 1], [], []>} : vector<8x8xf32>, vector<8x8xf32>, vector<8x8xf32> -> vector<8x8xf32>
    %270 = vector.extract_strided_slice %162 {offsets = [24, 0], sizes = [8, 32], strides = [1, 1]} : vector<32x32xf32> to vector<8x32xf32>
    %cst_139 = arith.constant dense<0.000000e+00> : vector<8x32xf32>
    %271 = tpu.matmul %269, %270, %cst_139 {dimension_numbers = #tpu.dot_dimension_numbers<[1], [0], [0], [1], [0, 0, 1, 1], [], []>} : vector<8x8xf32>, vector<8x32xf32>, vector<8x32xf32> -> vector<8x32xf32>
    %272 = arith.addf %249, %271 : vector<8x32xf32>
    %273 = vector.broadcast %170 : vector<1x32xf32> to vector<8x32xf32>
    %274 = arith.addf %272, %273 : vector<8x32xf32>
    %275 = arith.addf %154, %274 : vector<8x32xf32>
    %c0_140 = arith.constant 0 : index
    %c1_141 = arith.constant 1 : index
    %c0_142 = arith.constant 0 : index
    %c0_143 = arith.constant 0 : index
    %276 = vector.load %arg13[%c0_140, %c1_141, %c0_142, %c0_143] : memref<2x3x1x32xf32, #tpu.memory_space<vmem>>, vector<1x1x1x32xf32>
    %277 = vector.shape_cast %276 : vector<1x1x1x32xf32> to vector<1x32xf32>
    %c0_144 = arith.constant 0 : index
    %c1_145 = arith.constant 1 : index
    %c0_146 = arith.constant 0 : index
    %c0_147 = arith.constant 0 : index
    %278 = vector.load %arg14[%c0_144, %c1_145, %c0_146, %c0_147] : memref<2x3x1x32xf32, #tpu.memory_space<vmem>>, vector<1x1x1x32xf32>
    %279 = vector.shape_cast %278 : vector<1x1x1x32xf32> to vector<1x32xf32>
    %cst_148 = arith.constant dense<0.000000e+00> : vector<8xf32>
    %280 = vector.multi_reduction <add>, %275, %cst_148 [1] : vector<8x32xf32> to vector<8xf32>
    %281 = vector.shape_cast %280 : vector<8xf32> to vector<8x1xf32>
    %cst_149 = arith.constant 3.200000e+01 : f32
    %282 = vector.broadcast %cst_149 : f32 to vector<8x1xf32>
    %283 = arith.divf %281, %282 : vector<8x1xf32>
    %284 = vector.broadcast %283 : vector<8x1xf32> to vector<8x32xf32>
    %285 = arith.subf %275, %284 : vector<8x32xf32>
    %286 = arith.mulf %285, %285 : vector<8x32xf32>
    %cst_150 = arith.constant dense<0.000000e+00> : vector<8xf32>
    %287 = vector.multi_reduction <add>, %286, %cst_150 [1] : vector<8x32xf32> to vector<8xf32>
    %288 = vector.shape_cast %287 : vector<8xf32> to vector<8x1xf32>
    %cst_151 = arith.constant 3.200000e+01 : f32
    %289 = vector.broadcast %cst_151 : f32 to vector<8x1xf32>
    %290 = arith.divf %288, %289 : vector<8x1xf32>
    %291 = vector.broadcast %283 : vector<8x1xf32> to vector<8x32xf32>
    %292 = arith.subf %275, %291 : vector<8x32xf32>
    %cst_152 = arith.constant 9.99999974E-6 : f32
    %293 = vector.broadcast %cst_152 : f32 to vector<8x1xf32>
    %294 = arith.addf %290, %293 : vector<8x1xf32>
    %295 = math.rsqrt %294 : vector<8x1xf32>
    %296 = vector.broadcast %295 : vector<8x1xf32> to vector<8x32xf32>
    %297 = arith.mulf %292, %296 : vector<8x32xf32>
    %298 = vector.broadcast %277 : vector<1x32xf32> to vector<8x32xf32>
    %299 = arith.mulf %297, %298 : vector<8x32xf32>
    %300 = vector.broadcast %279 : vector<1x32xf32> to vector<8x32xf32>
    %301 = arith.addf %299, %300 : vector<8x32xf32>
    %c0_153 = arith.constant 0 : index
    %c0_154 = arith.constant 0 : index
    %c0_155 = arith.constant 0 : index
    %302 = vector.load %arg9[%c0_153, %c0_154, %c0_155] : memref<2x32x2048xf32, #tpu.memory_space<vmem>>, vector<1x32x2048xf32>
    %303 = vector.shape_cast %302 : vector<1x32x2048xf32> to vector<32x2048xf32>
    %cst_156 = arith.constant dense<0.000000e+00> : vector<8x2048xf32>
    %304 = tpu.matmul %301, %303, %cst_156 {dimension_numbers = #tpu.dot_dimension_numbers<[1], [0], [0], [1], [0, 0, 1, 1], [], []>} : vector<8x32xf32>, vector<32x2048xf32>, vector<8x2048xf32> -> vector<8x2048xf32>
    %c0_157 = arith.constant 0 : index
    %c0_158 = arith.constant 0 : index
    %c0_159 = arith.constant 0 : index
    %305 = vector.load %arg10[%c0_157, %c0_158, %c0_159] : memref<2x1x2048xf32, #tpu.memory_space<vmem>>, vector<1x1x2048xf32>
    %306 = vector.shape_cast %305 : vector<1x1x2048xf32> to vector<1x2048xf32>
    %307 = vector.broadcast %306 : vector<1x2048xf32> to vector<8x2048xf32>
    %308 = arith.addf %304, %307 : vector<8x2048xf32>
    %cst_160 = arith.constant 0.000000e+00 : f32
    %309 = vector.broadcast %cst_160 : f32 to vector<8x2048xf32>
    %310 = arith.maximumf %308, %309 : vector<8x2048xf32>
    %c0_161 = arith.constant 0 : index
    %c0_162 = arith.constant 0 : index
    %c0_163 = arith.constant 0 : index
    %311 = vector.load %arg11[%c0_161, %c0_162, %c0_163] : memref<2x2048x32xf32, #tpu.memory_space<vmem>>, vector<1x2048x32xf32>
    %312 = vector.shape_cast %311 : vector<1x2048x32xf32> to vector<2048x32xf32>
    %cst_164 = arith.constant dense<0.000000e+00> : vector<8x32xf32>
    %313 = tpu.matmul %310, %312, %cst_164 {dimension_numbers = #tpu.dot_dimension_numbers<[1], [0], [0], [1], [0, 0, 1, 1], [], []>} : vector<8x2048xf32>, vector<2048x32xf32>, vector<8x32xf32> -> vector<8x32xf32>
    %c0_165 = arith.constant 0 : index
    %c0_166 = arith.constant 0 : index
    %c0_167 = arith.constant 0 : index
    %314 = vector.load %arg12[%c0_165, %c0_166, %c0_167] : memref<2x1x32xf32, #tpu.memory_space<vmem>>, vector<1x1x32xf32>
    %315 = vector.shape_cast %314 : vector<1x1x32xf32> to vector<1x32xf32>
    %316 = vector.broadcast %315 : vector<1x32xf32> to vector<8x32xf32>
    %317 = arith.addf %313, %316 : vector<8x32xf32>
    %318 = arith.addf %301, %317 : vector<8x32xf32>
    %c0_168 = arith.constant 0 : index
    %c2_169 = arith.constant 2 : index
    %c0_170 = arith.constant 0 : index
    %c0_171 = arith.constant 0 : index
    %319 = vector.load %arg13[%c0_168, %c2_169, %c0_170, %c0_171] : memref<2x3x1x32xf32, #tpu.memory_space<vmem>>, vector<1x1x1x32xf32>
    %320 = vector.shape_cast %319 : vector<1x1x1x32xf32> to vector<1x32xf32>
    %c0_172 = arith.constant 0 : index
    %c2_173 = arith.constant 2 : index
    %c0_174 = arith.constant 0 : index
    %c0_175 = arith.constant 0 : index
    %321 = vector.load %arg14[%c0_172, %c2_173, %c0_174, %c0_175] : memref<2x3x1x32xf32, #tpu.memory_space<vmem>>, vector<1x1x1x32xf32>
    %322 = vector.shape_cast %321 : vector<1x1x1x32xf32> to vector<1x32xf32>
    %cst_176 = arith.constant dense<0.000000e+00> : vector<8xf32>
    %323 = vector.multi_reduction <add>, %318, %cst_176 [1] : vector<8x32xf32> to vector<8xf32>
    %324 = vector.shape_cast %323 : vector<8xf32> to vector<8x1xf32>
    %cst_177 = arith.constant 3.200000e+01 : f32
    %325 = vector.broadcast %cst_177 : f32 to vector<8x1xf32>
    %326 = arith.divf %324, %325 : vector<8x1xf32>
    %327 = vector.broadcast %326 : vector<8x1xf32> to vector<8x32xf32>
    %328 = arith.subf %318, %327 : vector<8x32xf32>
    %329 = arith.mulf %328, %328 : vector<8x32xf32>
    %cst_178 = arith.constant dense<0.000000e+00> : vector<8xf32>
    %330 = vector.multi_reduction <add>, %329, %cst_178 [1] : vector<8x32xf32> to vector<8xf32>
    %331 = vector.shape_cast %330 : vector<8xf32> to vector<8x1xf32>
    %cst_179 = arith.constant 3.200000e+01 : f32
    %332 = vector.broadcast %cst_179 : f32 to vector<8x1xf32>
    %333 = arith.divf %331, %332 : vector<8x1xf32>
    %334 = vector.broadcast %326 : vector<8x1xf32> to vector<8x32xf32>
    %335 = arith.subf %318, %334 : vector<8x32xf32>
    %cst_180 = arith.constant 9.99999974E-6 : f32
    %336 = vector.broadcast %cst_180 : f32 to vector<8x1xf32>
    %337 = arith.addf %333, %336 : vector<8x1xf32>
    %338 = math.rsqrt %337 : vector<8x1xf32>
    %339 = vector.broadcast %338 : vector<8x1xf32> to vector<8x32xf32>
    %340 = arith.mulf %335, %339 : vector<8x32xf32>
    %341 = vector.broadcast %320 : vector<1x32xf32> to vector<8x32xf32>
    %342 = arith.mulf %340, %341 : vector<8x32xf32>
    %343 = vector.broadcast %322 : vector<1x32xf32> to vector<8x32xf32>
    %344 = arith.addf %342, %343 : vector<8x32xf32>
    %c1_181 = arith.constant 1 : index
    %c0_182 = arith.constant 0 : index
    %c0_183 = arith.constant 0 : index
    %c0_184 = arith.constant 0 : index
    %345 = vector.load %arg5[%c1_181, %c0_182, %c0_183, %c0_184] : memref<2x4x32x32xf32, #tpu.memory_space<vmem>>, vector<1x1x32x32xf32>
    %346 = vector.shape_cast %345 : vector<1x1x32x32xf32> to vector<32x32xf32>
    %c1_185 = arith.constant 1 : index
    %c1_186 = arith.constant 1 : index
    %c0_187 = arith.constant 0 : index
    %c0_188 = arith.constant 0 : index
    %347 = vector.load %arg5[%c1_185, %c1_186, %c0_187, %c0_188] : memref<2x4x32x32xf32, #tpu.memory_space<vmem>>, vector<1x1x32x32xf32>
    %348 = vector.shape_cast %347 : vector<1x1x32x32xf32> to vector<32x32xf32>
    %c1_189 = arith.constant 1 : index
    %c2_190 = arith.constant 2 : index
    %c0_191 = arith.constant 0 : index
    %c0_192 = arith.constant 0 : index
    %349 = vector.load %arg5[%c1_189, %c2_190, %c0_191, %c0_192] : memref<2x4x32x32xf32, #tpu.memory_space<vmem>>, vector<1x1x32x32xf32>
    %350 = vector.shape_cast %349 : vector<1x1x32x32xf32> to vector<32x32xf32>
    %c1_193 = arith.constant 1 : index
    %c3_194 = arith.constant 3 : index
    %c0_195 = arith.constant 0 : index
    %c0_196 = arith.constant 0 : index
    %351 = vector.load %arg5[%c1_193, %c3_194, %c0_195, %c0_196] : memref<2x4x32x32xf32, #tpu.memory_space<vmem>>, vector<1x1x32x32xf32>
    %352 = vector.shape_cast %351 : vector<1x1x32x32xf32> to vector<32x32xf32>
    %c1_197 = arith.constant 1 : index
    %c0_198 = arith.constant 0 : index
    %c0_199 = arith.constant 0 : index
    %c0_200 = arith.constant 0 : index
    %353 = vector.load %arg6[%c1_197, %c0_198, %c0_199, %c0_200] : memref<2x4x1x32xf32, #tpu.memory_space<vmem>>, vector<1x1x1x32xf32>
    %354 = vector.shape_cast %353 : vector<1x1x1x32xf32> to vector<1x32xf32>
    %c1_201 = arith.constant 1 : index
    %c1_202 = arith.constant 1 : index
    %c0_203 = arith.constant 0 : index
    %c0_204 = arith.constant 0 : index
    %355 = vector.load %arg6[%c1_201, %c1_202, %c0_203, %c0_204] : memref<2x4x1x32xf32, #tpu.memory_space<vmem>>, vector<1x1x1x32xf32>
    %356 = vector.shape_cast %355 : vector<1x1x1x32xf32> to vector<1x32xf32>
    %c1_205 = arith.constant 1 : index
    %c2_206 = arith.constant 2 : index
    %c0_207 = arith.constant 0 : index
    %c0_208 = arith.constant 0 : index
    %357 = vector.load %arg6[%c1_205, %c2_206, %c0_207, %c0_208] : memref<2x4x1x32xf32, #tpu.memory_space<vmem>>, vector<1x1x1x32xf32>
    %358 = vector.shape_cast %357 : vector<1x1x1x32xf32> to vector<1x32xf32>
    %c1_209 = arith.constant 1 : index
    %c3_210 = arith.constant 3 : index
    %c0_211 = arith.constant 0 : index
    %c0_212 = arith.constant 0 : index
    %359 = vector.load %arg6[%c1_209, %c3_210, %c0_211, %c0_212] : memref<2x4x1x32xf32, #tpu.memory_space<vmem>>, vector<1x1x1x32xf32>
    %360 = vector.shape_cast %359 : vector<1x1x1x32xf32> to vector<1x32xf32>
    %cst_213 = arith.constant dense<0.000000e+00> : vector<8x32xf32>
    %361 = tpu.matmul %344, %346, %cst_213 {dimension_numbers = #tpu.dot_dimension_numbers<[1], [0], [0], [1], [0, 0, 1, 1], [], []>} : vector<8x32xf32>, vector<32x32xf32>, vector<8x32xf32> -> vector<8x32xf32>
    %362 = vector.broadcast %354 : vector<1x32xf32> to vector<8x32xf32>
    %363 = arith.addf %361, %362 : vector<8x32xf32>
    %cst_214 = arith.constant dense<0.000000e+00> : vector<8x32xf32>
    %364 = tpu.matmul %344, %348, %cst_214 {dimension_numbers = #tpu.dot_dimension_numbers<[1], [0], [0], [1], [0, 0, 1, 1], [], []>} : vector<8x32xf32>, vector<32x32xf32>, vector<8x32xf32> -> vector<8x32xf32>
    %365 = vector.broadcast %356 : vector<1x32xf32> to vector<8x32xf32>
    %366 = arith.addf %364, %365 : vector<8x32xf32>
    %cst_215 = arith.constant dense<0.000000e+00> : vector<8x32xf32>
    %367 = tpu.matmul %344, %350, %cst_215 {dimension_numbers = #tpu.dot_dimension_numbers<[1], [0], [0], [1], [0, 0, 1, 1], [], []>} : vector<8x32xf32>, vector<32x32xf32>, vector<8x32xf32> -> vector<8x32xf32>
    %368 = vector.broadcast %358 : vector<1x32xf32> to vector<8x32xf32>
    %369 = arith.addf %367, %368 : vector<8x32xf32>
    %cst_216 = arith.constant 0.000000e+00 : f32
    %370 = vector.broadcast %cst_216 : f32 to vector<8x32xf32>
    %371 = vector.extract_strided_slice %363 {offsets = [0, 0], sizes = [8, 8], strides = [1, 1]} : vector<8x32xf32> to vector<8x8xf32>
    %372 = vector.extract_strided_slice %366 {offsets = [0, 0], sizes = [8, 8], strides = [1, 1]} : vector<8x32xf32> to vector<8x8xf32>
    %373 = vector.extract_strided_slice %369 {offsets = [0, 0], sizes = [8, 8], strides = [1, 1]} : vector<8x32xf32> to vector<8x8xf32>
    %cst_217 = arith.constant dense<0.000000e+00> : vector<8x8xf32>
    %374 = tpu.matmul %371, %372, %cst_217 {dimension_numbers = #tpu.dot_dimension_numbers<[1], [1], [0], [0], [0, 0, 1, 0], [], []>} : vector<8x8xf32>, vector<8x8xf32>, vector<8x8xf32> -> vector<8x8xf32>
    %cst_218 = arith.constant 2.82842708 : f32
    %375 = vector.broadcast %cst_218 : f32 to vector<8x8xf32>
    %376 = arith.divf %374, %375 : vector<8x8xf32>
    %377 = math.floor %376 : vector<8x8xf32>
    %378 = vector.broadcast %5 : vector<1x8xf32> to vector<8x8xf32>
    %379 = arith.addf %377, %378 : vector<8x8xf32>
    %cst_219 = arith.constant dense<0xFF800000> : vector<8xf32>
    %380 = vector.multi_reduction <maximumf>, %379, %cst_219 [1] : vector<8x8xf32> to vector<8xf32>
    %381 = vector.shape_cast %380 : vector<8xf32> to vector<8x1xf32>
    %382 = vector.broadcast %381 : vector<8x1xf32> to vector<8x8xf32>
    %383 = arith.subf %379, %382 : vector<8x8xf32>
    %384 = math.exp %383 : vector<8x8xf32>
    %cst_220 = arith.constant dense<0.000000e+00> : vector<8xf32>
    %385 = vector.multi_reduction <add>, %384, %cst_220 [1] : vector<8x8xf32> to vector<8xf32>
    %386 = vector.shape_cast %385 : vector<8xf32> to vector<8x1xf32>
    %387 = tpu.reciprocal %386 {approx = true} : vector<8x1xf32> -> vector<8x1xf32>
    %388 = vector.broadcast %387 : vector<8x1xf32> to vector<8x8xf32>
    %389 = arith.mulf %384, %388 : vector<8x8xf32>
    %cst_221 = arith.constant dense<0.000000e+00> : vector<8x8xf32>
    %390 = tpu.matmul %389, %373, %cst_221 {dimension_numbers = #tpu.dot_dimension_numbers<[1], [0], [0], [1], [0, 0, 1, 1], [], []>} : vector<8x8xf32>, vector<8x8xf32>, vector<8x8xf32> -> vector<8x8xf32>
    %391 = vector.extract_strided_slice %352 {offsets = [0, 0], sizes = [8, 32], strides = [1, 1]} : vector<32x32xf32> to vector<8x32xf32>
    %cst_222 = arith.constant dense<0.000000e+00> : vector<8x32xf32>
    %392 = tpu.matmul %390, %391, %cst_222 {dimension_numbers = #tpu.dot_dimension_numbers<[1], [0], [0], [1], [0, 0, 1, 1], [], []>} : vector<8x8xf32>, vector<8x32xf32>, vector<8x32xf32> -> vector<8x32xf32>
    %393 = arith.addf %370, %392 : vector<8x32xf32>
    %394 = vector.extract_strided_slice %363 {offsets = [0, 8], sizes = [8, 8], strides = [1, 1]} : vector<8x32xf32> to vector<8x8xf32>
    %395 = vector.extract_strided_slice %366 {offsets = [0, 8], sizes = [8, 8], strides = [1, 1]} : vector<8x32xf32> to vector<8x8xf32>
    %396 = vector.extract_strided_slice %369 {offsets = [0, 8], sizes = [8, 8], strides = [1, 1]} : vector<8x32xf32> to vector<8x8xf32>
    %cst_223 = arith.constant dense<0.000000e+00> : vector<8x8xf32>
    %397 = tpu.matmul %394, %395, %cst_223 {dimension_numbers = #tpu.dot_dimension_numbers<[1], [1], [0], [0], [0, 0, 1, 0], [], []>} : vector<8x8xf32>, vector<8x8xf32>, vector<8x8xf32> -> vector<8x8xf32>
    %cst_224 = arith.constant 2.82842708 : f32
    %398 = vector.broadcast %cst_224 : f32 to vector<8x8xf32>
    %399 = arith.divf %397, %398 : vector<8x8xf32>
    %400 = math.floor %399 : vector<8x8xf32>
    %401 = vector.broadcast %5 : vector<1x8xf32> to vector<8x8xf32>
    %402 = arith.addf %400, %401 : vector<8x8xf32>
    %cst_225 = arith.constant dense<0xFF800000> : vector<8xf32>
    %403 = vector.multi_reduction <maximumf>, %402, %cst_225 [1] : vector<8x8xf32> to vector<8xf32>
    %404 = vector.shape_cast %403 : vector<8xf32> to vector<8x1xf32>
    %405 = vector.broadcast %404 : vector<8x1xf32> to vector<8x8xf32>
    %406 = arith.subf %402, %405 : vector<8x8xf32>
    %407 = math.exp %406 : vector<8x8xf32>
    %cst_226 = arith.constant dense<0.000000e+00> : vector<8xf32>
    %408 = vector.multi_reduction <add>, %407, %cst_226 [1] : vector<8x8xf32> to vector<8xf32>
    %409 = vector.shape_cast %408 : vector<8xf32> to vector<8x1xf32>
    %410 = tpu.reciprocal %409 {approx = true} : vector<8x1xf32> -> vector<8x1xf32>
    %411 = vector.broadcast %410 : vector<8x1xf32> to vector<8x8xf32>
    %412 = arith.mulf %407, %411 : vector<8x8xf32>
    %cst_227 = arith.constant dense<0.000000e+00> : vector<8x8xf32>
    %413 = tpu.matmul %412, %396, %cst_227 {dimension_numbers = #tpu.dot_dimension_numbers<[1], [0], [0], [1], [0, 0, 1, 1], [], []>} : vector<8x8xf32>, vector<8x8xf32>, vector<8x8xf32> -> vector<8x8xf32>
    %414 = vector.extract_strided_slice %352 {offsets = [8, 0], sizes = [8, 32], strides = [1, 1]} : vector<32x32xf32> to vector<8x32xf32>
    %cst_228 = arith.constant dense<0.000000e+00> : vector<8x32xf32>
    %415 = tpu.matmul %413, %414, %cst_228 {dimension_numbers = #tpu.dot_dimension_numbers<[1], [0], [0], [1], [0, 0, 1, 1], [], []>} : vector<8x8xf32>, vector<8x32xf32>, vector<8x32xf32> -> vector<8x32xf32>
    %416 = arith.addf %393, %415 : vector<8x32xf32>
    %417 = vector.extract_strided_slice %363 {offsets = [0, 16], sizes = [8, 8], strides = [1, 1]} : vector<8x32xf32> to vector<8x8xf32>
    %418 = vector.extract_strided_slice %366 {offsets = [0, 16], sizes = [8, 8], strides = [1, 1]} : vector<8x32xf32> to vector<8x8xf32>
    %419 = vector.extract_strided_slice %369 {offsets = [0, 16], sizes = [8, 8], strides = [1, 1]} : vector<8x32xf32> to vector<8x8xf32>
    %cst_229 = arith.constant dense<0.000000e+00> : vector<8x8xf32>
    %420 = tpu.matmul %417, %418, %cst_229 {dimension_numbers = #tpu.dot_dimension_numbers<[1], [1], [0], [0], [0, 0, 1, 0], [], []>} : vector<8x8xf32>, vector<8x8xf32>, vector<8x8xf32> -> vector<8x8xf32>
    %cst_230 = arith.constant 2.82842708 : f32
    %421 = vector.broadcast %cst_230 : f32 to vector<8x8xf32>
    %422 = arith.divf %420, %421 : vector<8x8xf32>
    %423 = math.floor %422 : vector<8x8xf32>
    %424 = vector.broadcast %5 : vector<1x8xf32> to vector<8x8xf32>
    %425 = arith.addf %423, %424 : vector<8x8xf32>
    %cst_231 = arith.constant dense<0xFF800000> : vector<8xf32>
    %426 = vector.multi_reduction <maximumf>, %425, %cst_231 [1] : vector<8x8xf32> to vector<8xf32>
    %427 = vector.shape_cast %426 : vector<8xf32> to vector<8x1xf32>
    %428 = vector.broadcast %427 : vector<8x1xf32> to vector<8x8xf32>
    %429 = arith.subf %425, %428 : vector<8x8xf32>
    %430 = math.exp %429 : vector<8x8xf32>
    %cst_232 = arith.constant dense<0.000000e+00> : vector<8xf32>
    %431 = vector.multi_reduction <add>, %430, %cst_232 [1] : vector<8x8xf32> to vector<8xf32>
    %432 = vector.shape_cast %431 : vector<8xf32> to vector<8x1xf32>
    %433 = tpu.reciprocal %432 {approx = true} : vector<8x1xf32> -> vector<8x1xf32>
    %434 = vector.broadcast %433 : vector<8x1xf32> to vector<8x8xf32>
    %435 = arith.mulf %430, %434 : vector<8x8xf32>
    %cst_233 = arith.constant dense<0.000000e+00> : vector<8x8xf32>
    %436 = tpu.matmul %435, %419, %cst_233 {dimension_numbers = #tpu.dot_dimension_numbers<[1], [0], [0], [1], [0, 0, 1, 1], [], []>} : vector<8x8xf32>, vector<8x8xf32>, vector<8x8xf32> -> vector<8x8xf32>
    %437 = vector.extract_strided_slice %352 {offsets = [16, 0], sizes = [8, 32], strides = [1, 1]} : vector<32x32xf32> to vector<8x32xf32>
    %cst_234 = arith.constant dense<0.000000e+00> : vector<8x32xf32>
    %438 = tpu.matmul %436, %437, %cst_234 {dimension_numbers = #tpu.dot_dimension_numbers<[1], [0], [0], [1], [0, 0, 1, 1], [], []>} : vector<8x8xf32>, vector<8x32xf32>, vector<8x32xf32> -> vector<8x32xf32>
    %439 = arith.addf %416, %438 : vector<8x32xf32>
    %440 = vector.extract_strided_slice %363 {offsets = [0, 24], sizes = [8, 8], strides = [1, 1]} : vector<8x32xf32> to vector<8x8xf32>
    %441 = vector.extract_strided_slice %366 {offsets = [0, 24], sizes = [8, 8], strides = [1, 1]} : vector<8x32xf32> to vector<8x8xf32>
    %442 = vector.extract_strided_slice %369 {offsets = [0, 24], sizes = [8, 8], strides = [1, 1]} : vector<8x32xf32> to vector<8x8xf32>
    %cst_235 = arith.constant dense<0.000000e+00> : vector<8x8xf32>
    %443 = tpu.matmul %440, %441, %cst_235 {dimension_numbers = #tpu.dot_dimension_numbers<[1], [1], [0], [0], [0, 0, 1, 0], [], []>} : vector<8x8xf32>, vector<8x8xf32>, vector<8x8xf32> -> vector<8x8xf32>
    %cst_236 = arith.constant 2.82842708 : f32
    %444 = vector.broadcast %cst_236 : f32 to vector<8x8xf32>
    %445 = arith.divf %443, %444 : vector<8x8xf32>
    %446 = math.floor %445 : vector<8x8xf32>
    %447 = vector.broadcast %5 : vector<1x8xf32> to vector<8x8xf32>
    %448 = arith.addf %446, %447 : vector<8x8xf32>
    %cst_237 = arith.constant dense<0xFF800000> : vector<8xf32>
    %449 = vector.multi_reduction <maximumf>, %448, %cst_237 [1] : vector<8x8xf32> to vector<8xf32>
    %450 = vector.shape_cast %449 : vector<8xf32> to vector<8x1xf32>
    %451 = vector.broadcast %450 : vector<8x1xf32> to vector<8x8xf32>
    %452 = arith.subf %448, %451 : vector<8x8xf32>
    %453 = math.exp %452 : vector<8x8xf32>
    %cst_238 = arith.constant dense<0.000000e+00> : vector<8xf32>
    %454 = vector.multi_reduction <add>, %453, %cst_238 [1] : vector<8x8xf32> to vector<8xf32>
    %455 = vector.shape_cast %454 : vector<8xf32> to vector<8x1xf32>
    %456 = tpu.reciprocal %455 {approx = true} : vector<8x1xf32> -> vector<8x1xf32>
    %457 = vector.broadcast %456 : vector<8x1xf32> to vector<8x8xf32>
    %458 = arith.mulf %453, %457 : vector<8x8xf32>
    %cst_239 = arith.constant dense<0.000000e+00> : vector<8x8xf32>
    %459 = tpu.matmul %458, %442, %cst_239 {dimension_numbers = #tpu.dot_dimension_numbers<[1], [0], [0], [1], [0, 0, 1, 1], [], []>} : vector<8x8xf32>, vector<8x8xf32>, vector<8x8xf32> -> vector<8x8xf32>
    %460 = vector.extract_strided_slice %352 {offsets = [24, 0], sizes = [8, 32], strides = [1, 1]} : vector<32x32xf32> to vector<8x32xf32>
    %cst_240 = arith.constant dense<0.000000e+00> : vector<8x32xf32>
    %461 = tpu.matmul %459, %460, %cst_240 {dimension_numbers = #tpu.dot_dimension_numbers<[1], [0], [0], [1], [0, 0, 1, 1], [], []>} : vector<8x8xf32>, vector<8x32xf32>, vector<8x32xf32> -> vector<8x32xf32>
    %462 = arith.addf %439, %461 : vector<8x32xf32>
    %463 = vector.broadcast %360 : vector<1x32xf32> to vector<8x32xf32>
    %464 = arith.addf %462, %463 : vector<8x32xf32>
    %465 = arith.addf %344, %464 : vector<8x32xf32>
    %c1_241 = arith.constant 1 : index
    %c0_242 = arith.constant 0 : index
    %c0_243 = arith.constant 0 : index
    %c0_244 = arith.constant 0 : index
    %466 = vector.load %arg13[%c1_241, %c0_242, %c0_243, %c0_244] : memref<2x3x1x32xf32, #tpu.memory_space<vmem>>, vector<1x1x1x32xf32>
    %467 = vector.shape_cast %466 : vector<1x1x1x32xf32> to vector<1x32xf32>
    %c1_245 = arith.constant 1 : index
    %c0_246 = arith.constant 0 : index
    %c0_247 = arith.constant 0 : index
    %c0_248 = arith.constant 0 : index
    %468 = vector.load %arg14[%c1_245, %c0_246, %c0_247, %c0_248] : memref<2x3x1x32xf32, #tpu.memory_space<vmem>>, vector<1x1x1x32xf32>
    %469 = vector.shape_cast %468 : vector<1x1x1x32xf32> to vector<1x32xf32>
    %cst_249 = arith.constant dense<0.000000e+00> : vector<8xf32>
    %470 = vector.multi_reduction <add>, %465, %cst_249 [1] : vector<8x32xf32> to vector<8xf32>
    %471 = vector.shape_cast %470 : vector<8xf32> to vector<8x1xf32>
    %cst_250 = arith.constant 3.200000e+01 : f32
    %472 = vector.broadcast %cst_250 : f32 to vector<8x1xf32>
    %473 = arith.divf %471, %472 : vector<8x1xf32>
    %474 = vector.broadcast %473 : vector<8x1xf32> to vector<8x32xf32>
    %475 = arith.subf %465, %474 : vector<8x32xf32>
    %476 = arith.mulf %475, %475 : vector<8x32xf32>
    %cst_251 = arith.constant dense<0.000000e+00> : vector<8xf32>
    %477 = vector.multi_reduction <add>, %476, %cst_251 [1] : vector<8x32xf32> to vector<8xf32>
    %478 = vector.shape_cast %477 : vector<8xf32> to vector<8x1xf32>
    %cst_252 = arith.constant 3.200000e+01 : f32
    %479 = vector.broadcast %cst_252 : f32 to vector<8x1xf32>
    %480 = arith.divf %478, %479 : vector<8x1xf32>
    %481 = vector.broadcast %473 : vector<8x1xf32> to vector<8x32xf32>
    %482 = arith.subf %465, %481 : vector<8x32xf32>
    %cst_253 = arith.constant 9.99999974E-6 : f32
    %483 = vector.broadcast %cst_253 : f32 to vector<8x1xf32>
    %484 = arith.addf %480, %483 : vector<8x1xf32>
    %485 = math.rsqrt %484 : vector<8x1xf32>
    %486 = vector.broadcast %485 : vector<8x1xf32> to vector<8x32xf32>
    %487 = arith.mulf %482, %486 : vector<8x32xf32>
    %488 = vector.broadcast %467 : vector<1x32xf32> to vector<8x32xf32>
    %489 = arith.mulf %487, %488 : vector<8x32xf32>
    %490 = vector.broadcast %469 : vector<1x32xf32> to vector<8x32xf32>
    %491 = arith.addf %489, %490 : vector<8x32xf32>
    %c1_254 = arith.constant 1 : index
    %c0_255 = arith.constant 0 : index
    %c0_256 = arith.constant 0 : index
    %c0_257 = arith.constant 0 : index
    %492 = vector.load %arg7[%c1_254, %c0_255, %c0_256, %c0_257] : memref<2x4x32x32xf32, #tpu.memory_space<vmem>>, vector<1x1x32x32xf32>
    %493 = vector.shape_cast %492 : vector<1x1x32x32xf32> to vector<32x32xf32>
    %c1_258 = arith.constant 1 : index
    %c1_259 = arith.constant 1 : index
    %c0_260 = arith.constant 0 : index
    %c0_261 = arith.constant 0 : index
    %494 = vector.load %arg7[%c1_258, %c1_259, %c0_260, %c0_261] : memref<2x4x32x32xf32, #tpu.memory_space<vmem>>, vector<1x1x32x32xf32>
    %495 = vector.shape_cast %494 : vector<1x1x32x32xf32> to vector<32x32xf32>
    %c1_262 = arith.constant 1 : index
    %c2_263 = arith.constant 2 : index
    %c0_264 = arith.constant 0 : index
    %c0_265 = arith.constant 0 : index
    %496 = vector.load %arg7[%c1_262, %c2_263, %c0_264, %c0_265] : memref<2x4x32x32xf32, #tpu.memory_space<vmem>>, vector<1x1x32x32xf32>
    %497 = vector.shape_cast %496 : vector<1x1x32x32xf32> to vector<32x32xf32>
    %c1_266 = arith.constant 1 : index
    %c3_267 = arith.constant 3 : index
    %c0_268 = arith.constant 0 : index
    %c0_269 = arith.constant 0 : index
    %498 = vector.load %arg7[%c1_266, %c3_267, %c0_268, %c0_269] : memref<2x4x32x32xf32, #tpu.memory_space<vmem>>, vector<1x1x32x32xf32>
    %499 = vector.shape_cast %498 : vector<1x1x32x32xf32> to vector<32x32xf32>
    %c1_270 = arith.constant 1 : index
    %c0_271 = arith.constant 0 : index
    %c0_272 = arith.constant 0 : index
    %c0_273 = arith.constant 0 : index
    %500 = vector.load %arg8[%c1_270, %c0_271, %c0_272, %c0_273] : memref<2x4x1x32xf32, #tpu.memory_space<vmem>>, vector<1x1x1x32xf32>
    %501 = vector.shape_cast %500 : vector<1x1x1x32xf32> to vector<1x32xf32>
    %c1_274 = arith.constant 1 : index
    %c1_275 = arith.constant 1 : index
    %c0_276 = arith.constant 0 : index
    %c0_277 = arith.constant 0 : index
    %502 = vector.load %arg8[%c1_274, %c1_275, %c0_276, %c0_277] : memref<2x4x1x32xf32, #tpu.memory_space<vmem>>, vector<1x1x1x32xf32>
    %503 = vector.shape_cast %502 : vector<1x1x1x32xf32> to vector<1x32xf32>
    %c1_278 = arith.constant 1 : index
    %c2_279 = arith.constant 2 : index
    %c0_280 = arith.constant 0 : index
    %c0_281 = arith.constant 0 : index
    %504 = vector.load %arg8[%c1_278, %c2_279, %c0_280, %c0_281] : memref<2x4x1x32xf32, #tpu.memory_space<vmem>>, vector<1x1x1x32xf32>
    %505 = vector.shape_cast %504 : vector<1x1x1x32xf32> to vector<1x32xf32>
    %c1_282 = arith.constant 1 : index
    %c3_283 = arith.constant 3 : index
    %c0_284 = arith.constant 0 : index
    %c0_285 = arith.constant 0 : index
    %506 = vector.load %arg8[%c1_282, %c3_283, %c0_284, %c0_285] : memref<2x4x1x32xf32, #tpu.memory_space<vmem>>, vector<1x1x1x32xf32>
    %507 = vector.shape_cast %506 : vector<1x1x1x32xf32> to vector<1x32xf32>
    %cst_286 = arith.constant dense<0.000000e+00> : vector<8x32xf32>
    %508 = tpu.matmul %491, %493, %cst_286 {dimension_numbers = #tpu.dot_dimension_numbers<[1], [0], [0], [1], [0, 0, 1, 1], [], []>} : vector<8x32xf32>, vector<32x32xf32>, vector<8x32xf32> -> vector<8x32xf32>
    %509 = vector.broadcast %501 : vector<1x32xf32> to vector<8x32xf32>
    %510 = arith.addf %508, %509 : vector<8x32xf32>
    %cst_287 = arith.constant dense<0.000000e+00> : vector<8x32xf32>
    %511 = tpu.matmul %3, %495, %cst_287 {dimension_numbers = #tpu.dot_dimension_numbers<[1], [0], [0], [1], [0, 0, 1, 1], [], []>} : vector<8x32xf32>, vector<32x32xf32>, vector<8x32xf32> -> vector<8x32xf32>
    %512 = vector.broadcast %503 : vector<1x32xf32> to vector<8x32xf32>
    %513 = arith.addf %511, %512 : vector<8x32xf32>
    %cst_288 = arith.constant dense<0.000000e+00> : vector<8x32xf32>
    %514 = tpu.matmul %3, %497, %cst_288 {dimension_numbers = #tpu.dot_dimension_numbers<[1], [0], [0], [1], [0, 0, 1, 1], [], []>} : vector<8x32xf32>, vector<32x32xf32>, vector<8x32xf32> -> vector<8x32xf32>
    %515 = vector.broadcast %505 : vector<1x32xf32> to vector<8x32xf32>
    %516 = arith.addf %514, %515 : vector<8x32xf32>
    %cst_289 = arith.constant 0.000000e+00 : f32
    %517 = vector.broadcast %cst_289 : f32 to vector<8x32xf32>
    %518 = vector.extract_strided_slice %510 {offsets = [0, 0], sizes = [8, 8], strides = [1, 1]} : vector<8x32xf32> to vector<8x8xf32>
    %519 = vector.extract_strided_slice %513 {offsets = [0, 0], sizes = [8, 8], strides = [1, 1]} : vector<8x32xf32> to vector<8x8xf32>
    %520 = vector.extract_strided_slice %516 {offsets = [0, 0], sizes = [8, 8], strides = [1, 1]} : vector<8x32xf32> to vector<8x8xf32>
    %cst_290 = arith.constant dense<0.000000e+00> : vector<8x8xf32>
    %521 = tpu.matmul %518, %519, %cst_290 {dimension_numbers = #tpu.dot_dimension_numbers<[1], [1], [0], [0], [0, 0, 1, 0], [], []>} : vector<8x8xf32>, vector<8x8xf32>, vector<8x8xf32> -> vector<8x8xf32>
    %cst_291 = arith.constant 2.82842708 : f32
    %522 = vector.broadcast %cst_291 : f32 to vector<8x8xf32>
    %523 = arith.divf %521, %522 : vector<8x8xf32>
    %524 = math.floor %523 : vector<8x8xf32>
    %525 = vector.broadcast %7 : vector<1x8xf32> to vector<8x8xf32>
    %526 = arith.addf %524, %525 : vector<8x8xf32>
    %cst_292 = arith.constant dense<0xFF800000> : vector<8xf32>
    %527 = vector.multi_reduction <maximumf>, %526, %cst_292 [1] : vector<8x8xf32> to vector<8xf32>
    %528 = vector.shape_cast %527 : vector<8xf32> to vector<8x1xf32>
    %529 = vector.broadcast %528 : vector<8x1xf32> to vector<8x8xf32>
    %530 = arith.subf %526, %529 : vector<8x8xf32>
    %531 = math.exp %530 : vector<8x8xf32>
    %cst_293 = arith.constant dense<0.000000e+00> : vector<8xf32>
    %532 = vector.multi_reduction <add>, %531, %cst_293 [1] : vector<8x8xf32> to vector<8xf32>
    %533 = vector.shape_cast %532 : vector<8xf32> to vector<8x1xf32>
    %534 = tpu.reciprocal %533 {approx = true} : vector<8x1xf32> -> vector<8x1xf32>
    %535 = vector.broadcast %534 : vector<8x1xf32> to vector<8x8xf32>
    %536 = arith.mulf %531, %535 : vector<8x8xf32>
    %cst_294 = arith.constant dense<0.000000e+00> : vector<8x8xf32>
    %537 = tpu.matmul %536, %520, %cst_294 {dimension_numbers = #tpu.dot_dimension_numbers<[1], [0], [0], [1], [0, 0, 1, 1], [], []>} : vector<8x8xf32>, vector<8x8xf32>, vector<8x8xf32> -> vector<8x8xf32>
    %538 = vector.extract_strided_slice %499 {offsets = [0, 0], sizes = [8, 32], strides = [1, 1]} : vector<32x32xf32> to vector<8x32xf32>
    %cst_295 = arith.constant dense<0.000000e+00> : vector<8x32xf32>
    %539 = tpu.matmul %537, %538, %cst_295 {dimension_numbers = #tpu.dot_dimension_numbers<[1], [0], [0], [1], [0, 0, 1, 1], [], []>} : vector<8x8xf32>, vector<8x32xf32>, vector<8x32xf32> -> vector<8x32xf32>
    %540 = arith.addf %517, %539 : vector<8x32xf32>
    %541 = vector.extract_strided_slice %510 {offsets = [0, 8], sizes = [8, 8], strides = [1, 1]} : vector<8x32xf32> to vector<8x8xf32>
    %542 = vector.extract_strided_slice %513 {offsets = [0, 8], sizes = [8, 8], strides = [1, 1]} : vector<8x32xf32> to vector<8x8xf32>
    %543 = vector.extract_strided_slice %516 {offsets = [0, 8], sizes = [8, 8], strides = [1, 1]} : vector<8x32xf32> to vector<8x8xf32>
    %cst_296 = arith.constant dense<0.000000e+00> : vector<8x8xf32>
    %544 = tpu.matmul %541, %542, %cst_296 {dimension_numbers = #tpu.dot_dimension_numbers<[1], [1], [0], [0], [0, 0, 1, 0], [], []>} : vector<8x8xf32>, vector<8x8xf32>, vector<8x8xf32> -> vector<8x8xf32>
    %cst_297 = arith.constant 2.82842708 : f32
    %545 = vector.broadcast %cst_297 : f32 to vector<8x8xf32>
    %546 = arith.divf %544, %545 : vector<8x8xf32>
    %547 = math.floor %546 : vector<8x8xf32>
    %548 = vector.broadcast %7 : vector<1x8xf32> to vector<8x8xf32>
    %549 = arith.addf %547, %548 : vector<8x8xf32>
    %cst_298 = arith.constant dense<0xFF800000> : vector<8xf32>
    %550 = vector.multi_reduction <maximumf>, %549, %cst_298 [1] : vector<8x8xf32> to vector<8xf32>
    %551 = vector.shape_cast %550 : vector<8xf32> to vector<8x1xf32>
    %552 = vector.broadcast %551 : vector<8x1xf32> to vector<8x8xf32>
    %553 = arith.subf %549, %552 : vector<8x8xf32>
    %554 = math.exp %553 : vector<8x8xf32>
    %cst_299 = arith.constant dense<0.000000e+00> : vector<8xf32>
    %555 = vector.multi_reduction <add>, %554, %cst_299 [1] : vector<8x8xf32> to vector<8xf32>
    %556 = vector.shape_cast %555 : vector<8xf32> to vector<8x1xf32>
    %557 = tpu.reciprocal %556 {approx = true} : vector<8x1xf32> -> vector<8x1xf32>
    %558 = vector.broadcast %557 : vector<8x1xf32> to vector<8x8xf32>
    %559 = arith.mulf %554, %558 : vector<8x8xf32>
    %cst_300 = arith.constant dense<0.000000e+00> : vector<8x8xf32>
    %560 = tpu.matmul %559, %543, %cst_300 {dimension_numbers = #tpu.dot_dimension_numbers<[1], [0], [0], [1], [0, 0, 1, 1], [], []>} : vector<8x8xf32>, vector<8x8xf32>, vector<8x8xf32> -> vector<8x8xf32>
    %561 = vector.extract_strided_slice %499 {offsets = [8, 0], sizes = [8, 32], strides = [1, 1]} : vector<32x32xf32> to vector<8x32xf32>
    %cst_301 = arith.constant dense<0.000000e+00> : vector<8x32xf32>
    %562 = tpu.matmul %560, %561, %cst_301 {dimension_numbers = #tpu.dot_dimension_numbers<[1], [0], [0], [1], [0, 0, 1, 1], [], []>} : vector<8x8xf32>, vector<8x32xf32>, vector<8x32xf32> -> vector<8x32xf32>
    %563 = arith.addf %540, %562 : vector<8x32xf32>
    %564 = vector.extract_strided_slice %510 {offsets = [0, 16], sizes = [8, 8], strides = [1, 1]} : vector<8x32xf32> to vector<8x8xf32>
    %565 = vector.extract_strided_slice %513 {offsets = [0, 16], sizes = [8, 8], strides = [1, 1]} : vector<8x32xf32> to vector<8x8xf32>
    %566 = vector.extract_strided_slice %516 {offsets = [0, 16], sizes = [8, 8], strides = [1, 1]} : vector<8x32xf32> to vector<8x8xf32>
    %cst_302 = arith.constant dense<0.000000e+00> : vector<8x8xf32>
    %567 = tpu.matmul %564, %565, %cst_302 {dimension_numbers = #tpu.dot_dimension_numbers<[1], [1], [0], [0], [0, 0, 1, 0], [], []>} : vector<8x8xf32>, vector<8x8xf32>, vector<8x8xf32> -> vector<8x8xf32>
    %cst_303 = arith.constant 2.82842708 : f32
    %568 = vector.broadcast %cst_303 : f32 to vector<8x8xf32>
    %569 = arith.divf %567, %568 : vector<8x8xf32>
    %570 = math.floor %569 : vector<8x8xf32>
    %571 = vector.broadcast %7 : vector<1x8xf32> to vector<8x8xf32>
    %572 = arith.addf %570, %571 : vector<8x8xf32>
    %cst_304 = arith.constant dense<0xFF800000> : vector<8xf32>
    %573 = vector.multi_reduction <maximumf>, %572, %cst_304 [1] : vector<8x8xf32> to vector<8xf32>
    %574 = vector.shape_cast %573 : vector<8xf32> to vector<8x1xf32>
    %575 = vector.broadcast %574 : vector<8x1xf32> to vector<8x8xf32>
    %576 = arith.subf %572, %575 : vector<8x8xf32>
    %577 = math.exp %576 : vector<8x8xf32>
    %cst_305 = arith.constant dense<0.000000e+00> : vector<8xf32>
    %578 = vector.multi_reduction <add>, %577, %cst_305 [1] : vector<8x8xf32> to vector<8xf32>
    %579 = vector.shape_cast %578 : vector<8xf32> to vector<8x1xf32>
    %580 = tpu.reciprocal %579 {approx = true} : vector<8x1xf32> -> vector<8x1xf32>
    %581 = vector.broadcast %580 : vector<8x1xf32> to vector<8x8xf32>
    %582 = arith.mulf %577, %581 : vector<8x8xf32>
    %cst_306 = arith.constant dense<0.000000e+00> : vector<8x8xf32>
    %583 = tpu.matmul %582, %566, %cst_306 {dimension_numbers = #tpu.dot_dimension_numbers<[1], [0], [0], [1], [0, 0, 1, 1], [], []>} : vector<8x8xf32>, vector<8x8xf32>, vector<8x8xf32> -> vector<8x8xf32>
    %584 = vector.extract_strided_slice %499 {offsets = [16, 0], sizes = [8, 32], strides = [1, 1]} : vector<32x32xf32> to vector<8x32xf32>
    %cst_307 = arith.constant dense<0.000000e+00> : vector<8x32xf32>
    %585 = tpu.matmul %583, %584, %cst_307 {dimension_numbers = #tpu.dot_dimension_numbers<[1], [0], [0], [1], [0, 0, 1, 1], [], []>} : vector<8x8xf32>, vector<8x32xf32>, vector<8x32xf32> -> vector<8x32xf32>
    %586 = arith.addf %563, %585 : vector<8x32xf32>
    %587 = vector.extract_strided_slice %510 {offsets = [0, 24], sizes = [8, 8], strides = [1, 1]} : vector<8x32xf32> to vector<8x8xf32>
    %588 = vector.extract_strided_slice %513 {offsets = [0, 24], sizes = [8, 8], strides = [1, 1]} : vector<8x32xf32> to vector<8x8xf32>
    %589 = vector.extract_strided_slice %516 {offsets = [0, 24], sizes = [8, 8], strides = [1, 1]} : vector<8x32xf32> to vector<8x8xf32>
    %cst_308 = arith.constant dense<0.000000e+00> : vector<8x8xf32>
    %590 = tpu.matmul %587, %588, %cst_308 {dimension_numbers = #tpu.dot_dimension_numbers<[1], [1], [0], [0], [0, 0, 1, 0], [], []>} : vector<8x8xf32>, vector<8x8xf32>, vector<8x8xf32> -> vector<8x8xf32>
    %cst_309 = arith.constant 2.82842708 : f32
    %591 = vector.broadcast %cst_309 : f32 to vector<8x8xf32>
    %592 = arith.divf %590, %591 : vector<8x8xf32>
    %593 = math.floor %592 : vector<8x8xf32>
    %594 = vector.broadcast %7 : vector<1x8xf32> to vector<8x8xf32>
    %595 = arith.addf %593, %594 : vector<8x8xf32>
    %cst_310 = arith.constant dense<0xFF800000> : vector<8xf32>
    %596 = vector.multi_reduction <maximumf>, %595, %cst_310 [1] : vector<8x8xf32> to vector<8xf32>
    %597 = vector.shape_cast %596 : vector<8xf32> to vector<8x1xf32>
    %598 = vector.broadcast %597 : vector<8x1xf32> to vector<8x8xf32>
    %599 = arith.subf %595, %598 : vector<8x8xf32>
    %600 = math.exp %599 : vector<8x8xf32>
    %cst_311 = arith.constant dense<0.000000e+00> : vector<8xf32>
    %601 = vector.multi_reduction <add>, %600, %cst_311 [1] : vector<8x8xf32> to vector<8xf32>
    %602 = vector.shape_cast %601 : vector<8xf32> to vector<8x1xf32>
    %603 = tpu.reciprocal %602 {approx = true} : vector<8x1xf32> -> vector<8x1xf32>
    %604 = vector.broadcast %603 : vector<8x1xf32> to vector<8x8xf32>
    %605 = arith.mulf %600, %604 : vector<8x8xf32>
    %cst_312 = arith.constant dense<0.000000e+00> : vector<8x8xf32>
    %606 = tpu.matmul %605, %589, %cst_312 {dimension_numbers = #tpu.dot_dimension_numbers<[1], [0], [0], [1], [0, 0, 1, 1], [], []>} : vector<8x8xf32>, vector<8x8xf32>, vector<8x8xf32> -> vector<8x8xf32>
    %607 = vector.extract_strided_slice %499 {offsets = [24, 0], sizes = [8, 32], strides = [1, 1]} : vector<32x32xf32> to vector<8x32xf32>
    %cst_313 = arith.constant dense<0.000000e+00> : vector<8x32xf32>
    %608 = tpu.matmul %606, %607, %cst_313 {dimension_numbers = #tpu.dot_dimension_numbers<[1], [0], [0], [1], [0, 0, 1, 1], [], []>} : vector<8x8xf32>, vector<8x32xf32>, vector<8x32xf32> -> vector<8x32xf32>
    %609 = arith.addf %586, %608 : vector<8x32xf32>
    %610 = vector.broadcast %507 : vector<1x32xf32> to vector<8x32xf32>
    %611 = arith.addf %609, %610 : vector<8x32xf32>
    %612 = arith.addf %491, %611 : vector<8x32xf32>
    %c1_314 = arith.constant 1 : index
    %c1_315 = arith.constant 1 : index
    %c0_316 = arith.constant 0 : index
    %c0_317 = arith.constant 0 : index
    %613 = vector.load %arg13[%c1_314, %c1_315, %c0_316, %c0_317] : memref<2x3x1x32xf32, #tpu.memory_space<vmem>>, vector<1x1x1x32xf32>
    %614 = vector.shape_cast %613 : vector<1x1x1x32xf32> to vector<1x32xf32>
    %c1_318 = arith.constant 1 : index
    %c1_319 = arith.constant 1 : index
    %c0_320 = arith.constant 0 : index
    %c0_321 = arith.constant 0 : index
    %615 = vector.load %arg14[%c1_318, %c1_319, %c0_320, %c0_321] : memref<2x3x1x32xf32, #tpu.memory_space<vmem>>, vector<1x1x1x32xf32>
    %616 = vector.shape_cast %615 : vector<1x1x1x32xf32> to vector<1x32xf32>
    %cst_322 = arith.constant dense<0.000000e+00> : vector<8xf32>
    %617 = vector.multi_reduction <add>, %612, %cst_322 [1] : vector<8x32xf32> to vector<8xf32>
    %618 = vector.shape_cast %617 : vector<8xf32> to vector<8x1xf32>
    %cst_323 = arith.constant 3.200000e+01 : f32
    %619 = vector.broadcast %cst_323 : f32 to vector<8x1xf32>
    %620 = arith.divf %618, %619 : vector<8x1xf32>
    %621 = vector.broadcast %620 : vector<8x1xf32> to vector<8x32xf32>
    %622 = arith.subf %612, %621 : vector<8x32xf32>
    %623 = arith.mulf %622, %622 : vector<8x32xf32>
    %cst_324 = arith.constant dense<0.000000e+00> : vector<8xf32>
    %624 = vector.multi_reduction <add>, %623, %cst_324 [1] : vector<8x32xf32> to vector<8xf32>
    %625 = vector.shape_cast %624 : vector<8xf32> to vector<8x1xf32>
    %cst_325 = arith.constant 3.200000e+01 : f32
    %626 = vector.broadcast %cst_325 : f32 to vector<8x1xf32>
    %627 = arith.divf %625, %626 : vector<8x1xf32>
    %628 = vector.broadcast %620 : vector<8x1xf32> to vector<8x32xf32>
    %629 = arith.subf %612, %628 : vector<8x32xf32>
    %cst_326 = arith.constant 9.99999974E-6 : f32
    %630 = vector.broadcast %cst_326 : f32 to vector<8x1xf32>
    %631 = arith.addf %627, %630 : vector<8x1xf32>
    %632 = math.rsqrt %631 : vector<8x1xf32>
    %633 = vector.broadcast %632 : vector<8x1xf32> to vector<8x32xf32>
    %634 = arith.mulf %629, %633 : vector<8x32xf32>
    %635 = vector.broadcast %614 : vector<1x32xf32> to vector<8x32xf32>
    %636 = arith.mulf %634, %635 : vector<8x32xf32>
    %637 = vector.broadcast %616 : vector<1x32xf32> to vector<8x32xf32>
    %638 = arith.addf %636, %637 : vector<8x32xf32>
    %c1_327 = arith.constant 1 : index
    %c0_328 = arith.constant 0 : index
    %c0_329 = arith.constant 0 : index
    %639 = vector.load %arg9[%c1_327, %c0_328, %c0_329] : memref<2x32x2048xf32, #tpu.memory_space<vmem>>, vector<1x32x2048xf32>
    %640 = vector.shape_cast %639 : vector<1x32x2048xf32> to vector<32x2048xf32>
    %cst_330 = arith.constant dense<0.000000e+00> : vector<8x2048xf32>
    %641 = tpu.matmul %638, %640, %cst_330 {dimension_numbers = #tpu.dot_dimension_numbers<[1], [0], [0], [1], [0, 0, 1, 1], [], []>} : vector<8x32xf32>, vector<32x2048xf32>, vector<8x2048xf32> -> vector<8x2048xf32>
    %c1_331 = arith.constant 1 : index
    %c0_332 = arith.constant 0 : index
    %c0_333 = arith.constant 0 : index
    %642 = vector.load %arg10[%c1_331, %c0_332, %c0_333] : memref<2x1x2048xf32, #tpu.memory_space<vmem>>, vector<1x1x2048xf32>
    %643 = vector.shape_cast %642 : vector<1x1x2048xf32> to vector<1x2048xf32>
    %644 = vector.broadcast %643 : vector<1x2048xf32> to vector<8x2048xf32>
    %645 = arith.addf %641, %644 : vector<8x2048xf32>
    %cst_334 = arith.constant 0.000000e+00 : f32
    %646 = vector.broadcast %cst_334 : f32 to vector<8x2048xf32>
    %647 = arith.maximumf %645, %646 : vector<8x2048xf32>
    %c1_335 = arith.constant 1 : index
    %c0_336 = arith.constant 0 : index
    %c0_337 = arith.constant 0 : index
    %648 = vector.load %arg11[%c1_335, %c0_336, %c0_337] : memref<2x2048x32xf32, #tpu.memory_space<vmem>>, vector<1x2048x32xf32>
    %649 = vector.shape_cast %648 : vector<1x2048x32xf32> to vector<2048x32xf32>
    %cst_338 = arith.constant dense<0.000000e+00> : vector<8x32xf32>
    %650 = tpu.matmul %647, %649, %cst_338 {dimension_numbers = #tpu.dot_dimension_numbers<[1], [0], [0], [1], [0, 0, 1, 1], [], []>} : vector<8x2048xf32>, vector<2048x32xf32>, vector<8x32xf32> -> vector<8x32xf32>
    %c1_339 = arith.constant 1 : index
    %c0_340 = arith.constant 0 : index
    %c0_341 = arith.constant 0 : index
    %651 = vector.load %arg12[%c1_339, %c0_340, %c0_341] : memref<2x1x32xf32, #tpu.memory_space<vmem>>, vector<1x1x32xf32>
    %652 = vector.shape_cast %651 : vector<1x1x32xf32> to vector<1x32xf32>
    %653 = vector.broadcast %652 : vector<1x32xf32> to vector<8x32xf32>
    %654 = arith.addf %650, %653 : vector<8x32xf32>
    %655 = arith.addf %638, %654 : vector<8x32xf32>
    %c1_342 = arith.constant 1 : index
    %c2_343 = arith.constant 2 : index
    %c0_344 = arith.constant 0 : index
    %c0_345 = arith.constant 0 : index
    %656 = vector.load %arg13[%c1_342, %c2_343, %c0_344, %c0_345] : memref<2x3x1x32xf32, #tpu.memory_space<vmem>>, vector<1x1x1x32xf32>
    %657 = vector.shape_cast %656 : vector<1x1x1x32xf32> to vector<1x32xf32>
    %c1_346 = arith.constant 1 : index
    %c2_347 = arith.constant 2 : index
    %c0_348 = arith.constant 0 : index
    %c0_349 = arith.constant 0 : index
    %658 = vector.load %arg14[%c1_346, %c2_347, %c0_348, %c0_349] : memref<2x3x1x32xf32, #tpu.memory_space<vmem>>, vector<1x1x1x32xf32>
    %659 = vector.shape_cast %658 : vector<1x1x1x32xf32> to vector<1x32xf32>
    %cst_350 = arith.constant dense<0.000000e+00> : vector<8xf32>
    %660 = vector.multi_reduction <add>, %655, %cst_350 [1] : vector<8x32xf32> to vector<8xf32>
    %661 = vector.shape_cast %660 : vector<8xf32> to vector<8x1xf32>
    %cst_351 = arith.constant 3.200000e+01 : f32
    %662 = vector.broadcast %cst_351 : f32 to vector<8x1xf32>
    %663 = arith.divf %661, %662 : vector<8x1xf32>
    %664 = vector.broadcast %663 : vector<8x1xf32> to vector<8x32xf32>
    %665 = arith.subf %655, %664 : vector<8x32xf32>
    %666 = arith.mulf %665, %665 : vector<8x32xf32>
    %cst_352 = arith.constant dense<0.000000e+00> : vector<8xf32>
    %667 = vector.multi_reduction <add>, %666, %cst_352 [1] : vector<8x32xf32> to vector<8xf32>
    %668 = vector.shape_cast %667 : vector<8xf32> to vector<8x1xf32>
    %cst_353 = arith.constant 3.200000e+01 : f32
    %669 = vector.broadcast %cst_353 : f32 to vector<8x1xf32>
    %670 = arith.divf %668, %669 : vector<8x1xf32>
    %671 = vector.broadcast %663 : vector<8x1xf32> to vector<8x32xf32>
    %672 = arith.subf %655, %671 : vector<8x32xf32>
    %cst_354 = arith.constant 9.99999974E-6 : f32
    %673 = vector.broadcast %cst_354 : f32 to vector<8x1xf32>
    %674 = arith.addf %670, %673 : vector<8x1xf32>
    %675 = math.rsqrt %674 : vector<8x1xf32>
    %676 = vector.broadcast %675 : vector<8x1xf32> to vector<8x32xf32>
    %677 = arith.mulf %672, %676 : vector<8x32xf32>
    %678 = vector.broadcast %657 : vector<1x32xf32> to vector<8x32xf32>
    %679 = arith.mulf %677, %678 : vector<8x32xf32>
    %680 = vector.broadcast %659 : vector<1x32xf32> to vector<8x32xf32>
    %681 = arith.addf %679, %680 : vector<8x32xf32>
    %c0_355 = arith.constant 0 : index
    %c0_356 = arith.constant 0 : index
    %c0_357 = arith.constant 0 : index
    %682 = vector.load %arg15[%c0_355, %c0_356, %c0_357] : memref<1x8x32xf32, #tpu.memory_space<vmem>>, vector<1x8x32xf32>
    %683 = vector.shape_cast %682 : vector<1x8x32xf32> to vector<8x32xf32>
    %684 = vector.shape_cast %681 : vector<8x32xf32> to vector<1x8x32xf32>
    tpu.vector_store %arg15[%c0_355, %c0_356, %c0_357], %684 {strides = array<i32>} : memref<1x8x32xf32, #tpu.memory_space<vmem>>, vector<1x8x32xf32>,
    return
  }
  func.func @transform_0(%arg0: i32) -> (i32, i32, i32) {
    %c0_i32 = arith.constant 0 : i32
    %c0_i32_0 = arith.constant 0 : i32
    %c0_i32_1 = arith.constant 0 : i32
    return %arg0, %c0_i32, %c0_i32_0 : i32, i32, i32
  }
  func.func @transform_1(%arg0: i32) -> (i32, i32, i32) {
    %c0_i32 = arith.constant 0 : i32
    %c0_i32_0 = arith.constant 0 : i32
    %c0_i32_1 = arith.constant 0 : i32
    return %arg0, %c0_i32, %c0_i32_0 : i32, i32, i32
  }
  func.func @transform_2(%arg0: i32) -> (i32, i32, i32) {
    %c0_i32 = arith.constant 0 : i32
    %c0_i32_0 = arith.constant 0 : i32
    %c0_i32_1 = arith.constant 0 : i32
    return %arg0, %c0_i32, %c0_i32_0 : i32, i32, i32
  }
  func.func @transform_3(%arg0: i32) -> (i32, i32, i32) {
    %c0_i32 = arith.constant 0 : i32
    %c0_i32_0 = arith.constant 0 : i32
    %c0_i32_1 = arith.constant 0 : i32
    return %arg0, %c0_i32, %c0_i32_0 : i32, i32, i32
  }
  func.func @transform_4(%arg0: i32) -> (i32, i32, i32, i32) {
    %c0_i32 = arith.constant 0 : i32
    %c0_i32_0 = arith.constant 0 : i32
    %c0_i32_1 = arith.constant 0 : i32
    %c0_i32_2 = arith.constant 0 : i32
    %c0_i32_3 = arith.constant 0 : i32
    return %c0_i32, %c0_i32_0, %c0_i32_1, %c0_i32_2 : i32, i32, i32, i32
  }
  func.func @transform_5(%arg0: i32) -> (i32, i32, i32, i32) {
    %c0_i32 = arith.constant 0 : i32
    %c0_i32_0 = arith.constant 0 : i32
    %c0_i32_1 = arith.constant 0 : i32
    %c0_i32_2 = arith.constant 0 : i32
    %c0_i32_3 = arith.constant 0 : i32
    return %c0_i32, %c0_i32_0, %c0_i32_1, %c0_i32_2 : i32, i32, i32, i32
  }
  func.func @transform_6(%arg0: i32) -> (i32, i32, i32, i32) {
    %c0_i32 = arith.constant 0 : i32
    %c0_i32_0 = arith.constant 0 : i32
    %c0_i32_1 = arith.constant 0 : i32
    %c0_i32_2 = arith.constant 0 : i32
    %c0_i32_3 = arith.constant 0 : i32
    return %c0_i32, %c0_i32_0, %c0_i32_1, %c0_i32_2 : i32, i32, i32, i32
  }
  func.func @transform_7(%arg0: i32) -> (i32, i32, i32, i32) {
    %c0_i32 = arith.constant 0 : i32
    %c0_i32_0 = arith.constant 0 : i32
    %c0_i32_1 = arith.constant 0 : i32
    %c0_i32_2 = arith.constant 0 : i32
    %c0_i32_3 = arith.constant 0 : i32
    return %c0_i32, %c0_i32_0, %c0_i32_1, %c0_i32_2 : i32, i32, i32, i32
  }
  func.func @transform_8(%arg0: i32) -> (i32, i32, i32) {
    %c0_i32 = arith.constant 0 : i32
    %c0_i32_0 = arith.constant 0 : i32
    %c0_i32_1 = arith.constant 0 : i32
    %c0_i32_2 = arith.constant 0 : i32
    return %c0_i32, %c0_i32_0, %c0_i32_1 : i32, i32, i32
  }
  func.func @transform_9(%arg0: i32) -> (i32, i32, i32) {
    %c0_i32 = arith.constant 0 : i32
    %c0_i32_0 = arith.constant 0 : i32
    %c0_i32_1 = arith.constant 0 : i32
    %c0_i32_2 = arith.constant 0 : i32
    return %c0_i32, %c0_i32_0, %c0_i32_1 : i32, i32, i32
  }
  func.func @transform_10(%arg0: i32) -> (i32, i32, i32) {
    %c0_i32 = arith.constant 0 : i32
    %c0_i32_0 = arith.constant 0 : i32
    %c0_i32_1 = arith.constant 0 : i32
    %c0_i32_2 = arith.constant 0 : i32
    return %c0_i32, %c0_i32_0, %c0_i32_1 : i32, i32, i32
  }
  func.func @transform_11(%arg0: i32) -> (i32, i32, i32) {
    %c0_i32 = arith.constant 0 : i32
    %c0_i32_0 = arith.constant 0 : i32
    %c0_i32_1 = arith.constant 0 : i32
    %c0_i32_2 = arith.constant 0 : i32
    return %c0_i32, %c0_i32_0, %c0_i32_1 : i32, i32, i32
  }
  func.func @transform_12(%arg0: i32) -> (i32, i32, i32, i32) {
    %c0_i32 = arith.constant 0 : i32
    %c0_i32_0 = arith.constant 0 : i32
    %c0_i32_1 = arith.constant 0 : i32
    %c0_i32_2 = arith.constant 0 : i32
    %c0_i32_3 = arith.constant 0 : i32
    return %c0_i32, %c0_i32_0, %c0_i32_1, %c0_i32_2 : i32, i32, i32, i32
  }
  func.func @transform_13(%arg0: i32) -> (i32, i32, i32, i32) {
    %c0_i32 = arith.constant 0 : i32
    %c0_i32_0 = arith.constant 0 : i32
    %c0_i32_1 = arith.constant 0 : i32
    %c0_i32_2 = arith.constant 0 : i32
    %c0_i32_3 = arith.constant 0 : i32
    return %c0_i32, %c0_i32_0, %c0_i32_1, %c0_i32_2 : i32, i32, i32, i32
  }
  func.func @transform_14(%arg0: i32) -> (i32, i32, i32) {
    %c0_i32 = arith.constant 0 : i32
    %c0_i32_0 = arith.constant 0 : i32
    %c0_i32_1 = arith.constant 0 : i32
    return %arg0, %c0_i32, %c0_i32_0 : i32, i32, i32
  }
}

</mosaic_0001>

<bundles_post_ra>
// kernel: _lambda_.1
= control target key start
LH: loop header
LB: loop body
LE: loop exit
PB: predicated region body
PF: predicated region fallthrough
CT: control target
= control target key end

     0   :  { %s12083_s0 = inlined_call_operand.hbm [shape: f32[2,8,32], index: 0, kind: input, shape index: {}]   ;;  %s12084_s1 = inlined_call_operand.hbm [shape: f32[2,8,32], index: 1, kind: input, shape index: {}]   ;;  %s12085_s2 = inlined_call_operand.vmem [shape: f32[2,1,8], index: 2, kind: input, shape index: {}]   ;;  %s12086_s3 = inlined_call_operand.vmem [shape: f32[2,1,8], index: 3, kind: input, shape index: {}]   ;;  %s12087_s4 = inlined_call_operand.hbm [shape: f32[2,4,32,32], index: 4, kind: input, shape index: {}]   ;;  %s12088_s5 = inlined_call_operand.hbm [shape: f32[2,4,1,32], index: 5, kind: input, shape index: {}]   ;;  %s12089_s6 = inlined_call_operand.hbm [shape: f32[2,4,32,32], index: 6, kind: input, shape index: {}]   ;;  %s12090_s7 = inlined_call_operand.hbm [shape: f32[2,4,1,32], index: 7, kind: input, shape index: {}]   ;;  %s12091_s8 = inlined_call_operand.hbm [shape: f32[2,32,2048], index: 8, kind: input, shape index: {}]   ;;  %s12092_s9 = inlined_call_operand.hbm [shape: f32[2,1,2048], index: 9, kind: input, shape index: {}]   ;;  %s12093_s10 = inlined_call_operand.hbm [shape: f32[2,2048,32], index: 10, kind: input, shape index: {}]   ;;  %s12094_s11 = inlined_call_operand.hbm [shape: f32[2,1,32], index: 11, kind: input, shape index: {}]   ;;  %s12095_s12 = inlined_call_operand.vmem [shape: f32[2,3,1,32], index: 12, kind: input, shape index: {}]   ;;  %s12096_s13 = inlined_call_operand.vmem [shape: f32[2,3,1,32], index: 13, kind: input, shape index: {}]   ;;  %s12097_s14 = inlined_call_operand.hbm [shape: f32[2,8,32], index: 14, kind: output, shape index: {}]  }
   0x1   :  { %12109 = sst [smem:[#allocation29_spill]] %s12086_s3 }
   0x2   :  { %12110 = sst [smem:[#allocation30_spill]] %s12087_s4 }
   0x3   :  { %12111 = sst [smem:[#allocation31_spill]] %s12088_s5 }
   0x4   :  { %12112 = sst [smem:[#allocation32_spill]] %s12089_s6 }
   0x5   :  { %12113 = sst [smem:[#allocation33_spill]] %s12090_s7 }
   0x6   :  { %12114 = sst [smem:[#allocation34_spill]] %s12091_s8 }
   0x7   :  { %12115 = sst [smem:[#allocation35_spill]] %s12092_s9 }
   0x8   :  { %12116 = sst [smem:[#allocation36_spill]] %s12093_s10 }
   0x9   :  { %12117 = sst [smem:[#allocation37_spill]] %s12094_s11 }
   0xa   :  { %12118 = sst [smem:[#allocation38_spill]] %s12097_s14 }
   0xb   :  { %19 = vsyncpa [#allocation3], 0 }
   0xc   :  { %21 = vsyncpa [#allocation3 + $0x1], 0 }
   0xd   :  { %22 = vsyncpa [#allocation6], 0 }
   0xe   :  { %24 = vsyncpa [#allocation6 + $0x1], 0 }
   0xf   :  { %25 = vsyncpa [#allocation9], 0 }
  0x10   :  { %26 = vsyncpa [#allocation12], 0 }
  0x11   :  { %27 = vsyncpa [#allocation15], 0 }
  0x12   :  { %28 = vsyncpa [#allocation18], 0 }
  0x13   :  { %29 = vsyncpa [#allocation4], 0 }
  0x14   :  { %31 = vsyncpa [#allocation4 + $0x1], 0  ;;  %s11033_s29 = smov 0   ;;  %s11035_s30 = smov 0  }
  0x15   :  { %s11037_s15 = smov 0   ;;  %s11039_s16 = smov 0  }
  0x16 LB: > { %s10936_s17 = smov [#allocation7]   ;;  %s11054_s19 = sadd.s32 4294967295, %s10934_s16   ;;  %s10934_s16 = sphi %s11039_s16, %s12161_s16   ;;  %s10930_s15 = sphi %s11037_s15, %s12160_s15   ;;  %s10926_s30 = sphi %s11035_s30, %s12159_s30   ;;  %s10922_s29 = sphi %s11033_s29, %s12158_s29  }
  0x17   : > { %s394_s18 = sshll.u32 %s10936_s17, 4  ;;  %p9108_p0 = scmp.ge.s32.totalorder %s10934_s16, 1  ;;  %s395_s18 = int_to_ptr.vmem [resolvable:$true] %s394_s18 }
  0x18   : > { %p12105_p1 = scmp.eq.s32.totalorder %s11054_s19, 0  ;;  %p382_p2 = scmp.lt.s32.totalorder %s10934_s16, 3 }
  0x19   : > { %s10937_s21 = smov [#allocation8]   ;;  %s10938_s24 = smov [#allocation11]  }
  0x1a   : > { %p11059_p3 = pnand %p9108_p0, %p382_p2  ;;  %s407_s22 = sshll.u32 %s10937_s21, 4  ;;  %s11072_s22 = int_to_ptr.vmem [resolvable:$true] %s407_s22 }
  0x1b   : > { %s11074_s25 = sshll.u32 %s10938_s24, 4  ;;  %s10593_s27 = scalar_lea.vmem %s395_s18, 4096  ;;  %s434_s25 = int_to_ptr.vmem [resolvable:$true] %s11074_s25 }
  0x1c   : > { %s12119_s20 = scalar_select %p11059_p3, 1, 0 }
  0x1d   : > { %p10398_p5 = pneg %p11059_p3  ;;  %p10594_p8 = scmp.ne.s32.totalorder %s395_s18, %s10593_s27 }
  0x1e   : > { %p10601_p11 = scmp.lt.s32.totalorder %s395_s18, %s395_s18  ;;  %p10602_p12 = scmp.lt.s32.totalorder %s10593_s27, %s10593_s27 }
  0x1f   : > { %p11068_p6 = pnand %p10398_p5, %p12105_p1 }
  0x20   : > { %p10603_p13 = por %p10602_p12, %p10601_p11 }
  0x21   : > { %p11078_p7 = pneg %p11068_p6 }
  0x23   : > { %p10596_p9 = pnand %p10594_p8, %p11078_p7 }
  0x25   : > { %p10597_p10 = pneg %p10596_p9 }
  0x27   : > { %p10604_p0 = pnand %p10603_p13, %p10597_p10 }
  0x29   : > { %10607 = shalt.err (!%p10604_p0)
}
  0x2a   : > { %s12099_s28 = smov 128   ;;  %s12102_s17 = smov 8  }
  0x2b   : > { %s12122_s4 = sld [smem:[#allocation30_spill]]  ;;  %s10619_s14 = scalar_lea.vmem %s11072_s22, 128 }
  0x2c   : > { %p10620_p2 = scmp.ne.s32.totalorder %s11072_s22, %s10619_s14  ;;  %p10627_p9 = scmp.lt.s32.totalorder %s11072_s22, %s11072_s22 }
  0x2d   : > { %p10628_p10 = scmp.lt.s32.totalorder %s10619_s14, %s10619_s14 }
  0x2e   : > { %p10622_p5 = pnand %p10620_p2, %p11078_p7 }
  0x2f   : > { %p10629_p11 = por %p10628_p10, %p10627_p9 }
  0x30   : > { %p10623_p8 = pneg %p10622_p5 }
  0x31   : > { %10401 = dma.hbm_to_vmem [thread:$0]  (!%p11068_p6), %s12122_s4, 4096, %s395_s18, [#allocation6], %s12099_s28, %s12099_s28, %s12102_s17  }
  0x32   : > { %p10630_p12 = pnand %p10629_p11, %p10623_p8 }
  0x34   : > { %10633 = shalt.err (!%p10630_p12)
}
  0x35   : > { %s12104_s27 = smov 16   ;;  %s12101_s3 = smov 1  }
  0x36   : > { %s12123_s5 = sld [smem:[#allocation31_spill]]  ;;  %s10645_s24 = scalar_lea.vmem %s434_s25, 128 }
  0x37   : > { %p10646_p13 = scmp.ne.s32.totalorder %s434_s25, %s10645_s24  ;;  %p10653_p5 = scmp.lt.s32.totalorder %s434_s25, %s434_s25 }
  0x38   : > { %p10654_p8 = scmp.lt.s32.totalorder %s10645_s24, %s10645_s24 }
  0x39   : > { %p10648_p0 = pnand %p10646_p13, %p11078_p7 }
  0x3a   : > { %p10655_p9 = por %p10654_p8, %p10653_p5 }
  0x3b   : > { %p10649_p2 = pneg %p10648_p0 }
  0x3c   : > { %10404 = dma.hbm_to_vmem [thread:$0]  (!%p11068_p6), %s12123_s5, 128, %s11072_s22, [#allocation9], %s12104_s27, %s12104_s27, %s12101_s3  }
  0x3d   : > { %p10656_p10 = pnand %p10655_p9, %p10649_p2 }
  0x3f   : > { %10659 = shalt.err (!%p10656_p10)
}
  0x40   : > { %s12124_s7 = sld [smem:[#allocation33_spill]]  ;;  %s10943_s22 = smov [#allocation14]  }
  0x41   : > { %s459_s18 = sshll.u32 %s10943_s22, 4  ;;  %s460_s18 = int_to_ptr.vmem [resolvable:$true] %s459_s18 }
  0x42   : > { %s10671_s21 = scalar_lea.vmem %s460_s18, 512  ;;  %p10679_p0 = scmp.lt.s32.totalorder %s460_s18, %s460_s18 }
  0x43   : > { %p10672_p11 = scmp.ne.s32.totalorder %s460_s18, %s10671_s21  ;;  %p10680_p2 = scmp.lt.s32.totalorder %s10671_s21, %s10671_s21 }
  0x45   : > { %p10674_p12 = pnand %p10672_p11, %p11078_p7  ;;  %p10681_p5 = por %p10680_p2, %p10679_p0 }
  0x46   : > { %10410 = dma.hbm_to_vmem [thread:$0]  (!%p11068_p6), %s12124_s7, 128, %s434_s25, [#allocation12], %s12104_s27, %s12104_s27, %s12101_s3  }
  0x47   : > { %p10675_p13 = pneg %p10674_p12 }
  0x49   : > { %p10682_p8 = pnand %p10681_p5, %p10675_p13 }
  0x4b   : > { %10685 = shalt.err (!%p10682_p8)
}
  0x4c   : > { %s10944_s24 = smov 256   ;;  %s12125_s9 = sld [smem:[#allocation35_spill]] }
  0x4d   : > { %s10945_s25 = smov [#allocation10]   ;;  %s10946_s3 = smov [#allocation13]  }
  0x4e   : > { %s420_s22 = sshll.u32 %s10945_s25, 4  ;;  %s446_s17 = sshll.u32 %s10946_s3, 4  ;;  %s421_s22 = int_to_ptr.vmem [resolvable:$true] %s420_s22  ;;  %s447_s17 = int_to_ptr.vmem [resolvable:$true] %s446_s17 }
  0x4f   : > { %s10697_s4 = scalar_lea.vmem %s421_s22, 4096  ;;  %p10705_p12 = scmp.lt.s32.totalorder %s421_s22, %s421_s22 }
  0x50   : > { %p10698_p9 = scmp.ne.s32.totalorder %s421_s22, %s10697_s4  ;;  %p10706_p13 = scmp.lt.s32.totalorder %s10697_s4, %s10697_s4 }
  0x52   : > { %10416 = dma.hbm_to_vmem [thread:$0]  (!%p11068_p6), %s12125_s9, 512, %s460_s18, [#allocation15], %s10944_s24, %s10944_s24, %s12104_s27  }
  0x53   : > { %p10700_p10 = pnand %p10698_p9, %p11078_p7  ;;  %p10707_p0 = por %p10706_p13, %p10705_p12 }
  0x55   : > { %p10701_p11 = pneg %p10700_p10 }
  0x57   : > { %p10708_p2 = pnand %p10707_p0, %p10701_p11 }
  0x59   : > { %10711 = shalt.err (!%p10708_p2)
}
  0x5a   : > { %s12126_s21 = smov 8   ;;  %s12127_s28 = smov 128  }
  0x5b   : > { %s12128_s6 = sld [smem:[#allocation32_spill]]  ;;  %s10723_s3 = scalar_lea.vmem %s447_s17, 16384 }
  0x5c   : > { %p10724_p5 = scmp.ne.s32.totalorder %s447_s17, %s10723_s3  ;;  %p10731_p10 = scmp.lt.s32.totalorder %s447_s17, %s447_s17 }
  0x5d   : > { %p10732_p12 = scmp.lt.s32.totalorder %s10723_s3, %s10723_s3 }
  0x5e   : > { %p10726_p8 = pnand %p10724_p5, %p11078_p7 }
  0x5f   : > { %p10733_p11 = por %p10732_p12, %p10731_p10 }
  0x60   : > { %p10727_p9 = pneg %p10726_p8 }
  0x61   : > { %10407 = dma.hbm_to_vmem [thread:$0]  (!%p11068_p6), %s12128_s6, 4096, %s421_s22, [#allocation9], %s12127_s28, %s12127_s28, %s12126_s21  }
  0x62   : > { %p10734_p13 = pnand %p10733_p11, %p10727_p9 }
  0x64   : > { %10737 = shalt.err (!%p10734_p13)
}
  0x65   : > { %s10947_s4 = smov 2048   ;;  %s12129_s8 = sld [smem:[#allocation34_spill]] }
  0x66   : > { %s10948_s22 = smov [#allocation16]   ;;  %s10949_s24 = smov [#allocation17]  }
  0x67   : > { %s472_s18 = sshll.u32 %s10948_s22, 4  ;;  %s485_s27 = sshll.u32 %s10949_s24, 4  ;;  %s473_s18 = int_to_ptr.vmem [resolvable:$true] %s472_s18  ;;  %s486_s27 = int_to_ptr.vmem [resolvable:$true] %s485_s27 }
  0x68   : > { %s10749_s5 = scalar_lea.vmem %s473_s18, 65536  ;;  %p10757_p8 = scmp.lt.s32.totalorder %s473_s18, %s473_s18 }
  0x69   : > { %p10750_p0 = scmp.ne.s32.totalorder %s473_s18, %s10749_s5  ;;  %p10758_p9 = scmp.lt.s32.totalorder %s10749_s5, %s10749_s5 }
  0x6b   : > { %10413 = dma.hbm_to_vmem [thread:$0]  (!%p11068_p6), %s12129_s8, 16384, %s447_s17, [#allocation12], %s10947_s4, %s10947_s4, %s12127_s28  }
  0x6c   : > { %p10752_p2 = pnand %p10750_p0, %p11078_p7  ;;  %p10759_p10 = por %p10758_p9, %p10757_p8 }
  0x6e   : > { %p10753_p5 = pneg %p10752_p2 }
  0x70   : > { %p10760_p12 = pnand %p10759_p10, %p10753_p5 }
  0x72   : > { %10763 = shalt.err (!%p10760_p12)
}
  0x73   : > { %s12130_s10 = sld [smem:[#allocation36_spill]]  ;;  %s10775_s4 = scalar_lea.vmem %s486_s27, 32 }
  0x74   : > { %p10776_p11 = scmp.ne.s32.totalorder %s486_s27, %s10775_s4  ;;  %p10783_p2 = scmp.lt.s32.totalorder %s486_s27, %s486_s27 }
  0x75   : > { %p10784_p4 = scmp.lt.s32.totalorder %s10775_s4, %s10775_s4 }
  0x76   : > { %p10778_p13 = pnand %p10776_p11, %p11078_p7 }
  0x77   : > { %p10785_p8 = por %p10784_p4, %p10783_p2 }
  0x78   : > { %p10779_p0 = pneg %p10778_p13 }
  0x79   : > { %10419 = dma.hbm_to_vmem [thread:$0]  (!%p11068_p6), %s12130_s10, 65536, %s473_s18, [#allocation15], %s12127_s28, %s12127_s28, %s12126_s21  }
  0x7a   : > { %p10786_p5 = pnand %p10785_p8, %p10779_p0 }
  0x7c   : > { %10789 = shalt.err (!%p10786_p5)
}
  0x7d   : > { %s12131_s5 = smov 1   ;;  %s12132_s14 = smov 16  }
  0x7e   : > { %s12133_s11 = sld [smem:[#allocation37_spill]]  ;;  %s9107_s23 = sadd.s32 4294967294, %s10934_s16  }
  0x7f   : > { %s11166_s26 = sadd.s32 1, %s10934_s16   ;;  %s44_s28 = sadd.s32 1, %s10930_s15 }
  0x80   : > { %s41_s21 = ssub.s32 %s10934_s16, %s11166_s26  ;;  %p51_p7 = scmp.ne.s32.totalorder %s10930_s15, %s10926_s30 }
  0x81   : > { %p42_p4 = scmp.eq.s32.totalorder %s41_s21, 0  ;;  %p52_p9 = scmp.eq.s32.totalorder %s10934_s16, 0 }
  0x82   : > { %p57_p10 = scmp.ne.s32.totalorder %s10926_s30, %s10922_s29  ;;  %p369_p11 = scmp.eq.s32.totalorder %s11054_s19, 1 }
  0x83   : > { %s11177_s18 = scalar_select %p42_p4, %s10930_s15, %s44_s28  }
  0x84   : > { %10422 = dma.hbm_to_vmem [thread:$0]  (!%p11068_p6), %s12133_s11, 32, %s486_s27, [#allocation18], %s12132_s14, %s12132_s14, %s12131_s5  }
  0x85   : > { %12134 = sst [smem:[#allocation28_spill]] %s11177_s18  ;;  %p11179_p12 = por %p52_p9, %p51_p7 }
  0x86   : > { %p11185_p6 = por %p12105_p1, %p57_p10  ;;  %p375_p13 = scmp.eq.s32.totalorder %s9107_s23, 1 }
  0x87   : > { %p10442_p0 = scmp.lt.s32.totalorder %s10934_s16, 2  ;;  %s505_s17 = sand.u32 1, %s10930_s15  }
  0x88   : > { %s12136_s27 = scalar_select %p11185_p6, 1, 0 }
  0x89   : > { %p11192_p2 = por %p369_p11, %p51_p7  ;;  %p11196_p8 = por %p375_p13, %p57_p10 }
  0x8a   : > { %s11200_s5 = sshll.u32 %s505_s17, 3  ;;  %s9119_s14 = sshll.u32 %s10934_s16, 7 }
  0x8b   : > { %s12137_s3 = scalar_select %p11192_p2, 1, 0 }
  0x8c   : > { %s12138_s4 = scalar_select %p11196_p8, 1, 0 }
  0x8d   : > { %s11206_s21 = scalar_lea.hbm %s12083_s0, %s9119_s14  ;;  %s509_s23 = scalar_lea.vmem [#allocation2], %s11200_s5 }
  0x8e   : > { %s516_s28 = sshll.u32 %s509_s23, 4  ;;  %p11213_p5 = pnand %p10442_p0, %p11179_p12  ;;  %s11209_s28 = int_to_ptr.vmem [resolvable:$true] %s516_s28 }
  0x8f   : > { %s11220_s25 = scalar_lea.hbm %s12084_s1, %s9119_s14  ;;  %s523_s22 = sand.u32 1, %s10934_s16  }
  0x90   : > { %s506_s9 = scalar_lea.sflag [#allocation3], %s505_s17  ;;  %s10790_s10 = scalar_lea.hbm %s11206_s21, 128 }
  0x91   : > { %p10791_p4 = scmp.ne.s32.totalorder %s11206_s21, %s10790_s10  ;;  %p10792_p7 = pneg %p11213_p5 }
  0x92   : > { %s10795_s11 = scalar_lea.hbm %s12083_s0, 256  ;;  %p10796_p12 = scmp.lt.s32.totalorder %s11206_s21, %s12083_s0 }
  0x93   : > { %p10793_p9 = pnand %p10792_p7, %p10791_p4  ;;  %p10797_p11 = scmp.lt.s32.totalorder %s10795_s11, %s10790_s10 }
  0x95   : > { %p10794_p10 = pneg %p10793_p9  ;;  %p10798_p13 = por %p10797_p11, %p10796_p12 }
  0x97   : > { %p10799_p0 = pnand %p10798_p13, %p10794_p10 }
  0x99   : > { %10802 = shalt.err (!%p10799_p0)
}
  0x9a   : > { %s10803_s8 = scalar_lea.vmem %s11209_s28, 128  ;;  %s10950_s17 = smov [#allocation2]  }
  0x9b   : > { %p10804_p1 = scmp.ne.s32.totalorder %s11209_s28, %s10803_s8  ;;  %s10808_s14 = sshll.u32 %s10950_s17, 4  ;;  %s10809_s14 = int_to_ptr.vmem [resolvable:$false] %s10808_s14 }
  0x9c   : > { %s10810_s24 = scalar_lea.vmem %s10809_s14, 256  ;;  %p10811_p8 = scmp.lt.s32.totalorder %s11209_s28, %s10809_s14 }
  0x9d   : > { %p10806_p4 = pnand %p10804_p1, %p10792_p7  ;;  %p10812_p2 = scmp.lt.s32.totalorder %s10810_s24, %s10803_s8 }
  0x9f   : > { %p10807_p9 = pneg %p10806_p4  ;;  %p10813_p6 = por %p10812_p2, %p10811_p8 }
  0xa1   : > { %p10814_p12 = pnand %p10813_p6, %p10807_p9 }
  0xa3   : > { %10817 = shalt.err (!%p10814_p12)
}
  0xa4   : > { %10426 = dma.hbm_to_vmem [thread:$0]  (!%p11213_p5), %s11206_s21, 128, %s11209_s28, %s506_s9  }
  0xa5   : > { %s527_s10 = scalar_lea.vmem [#allocation5], %s11200_s5  ;;  %s524_s18 = scalar_lea.sflag [#allocation6], %s523_s22 }
  0xa6   : > { %s534_s11 = sshll.u32 %s527_s10, 4  ;;  %s10818_s23 = scalar_lea.hbm %s11220_s25, 128  ;;  %s535_s11 = int_to_ptr.vmem [resolvable:$true] %s534_s11 }
  0xa7   : > { %p10819_p1 = scmp.ne.s32.totalorder %s11220_s25, %s10818_s23  ;;  %s10823_s17 = scalar_lea.hbm %s12084_s1, 256 }
  0xa8   : > { %p10824_p8 = scmp.lt.s32.totalorder %s11220_s25, %s12084_s1  ;;  %p10825_p10 = scmp.lt.s32.totalorder %s10823_s17, %s10818_s23 }
  0xa9   : > { %p10821_p6 = pnand %p10819_p1, %p10792_p7 }
  0xaa   : > { %p10826_p11 = por %p10825_p10, %p10824_p8 }
  0xab   : > { %p10822_p2 = pneg %p10821_p6 }
  0xad   : > { %p10827_p13 = pnand %p10826_p11, %p10822_p2 }
  0xaf   : > { %10830 = shalt.err (!%p10827_p13)
}
  0xb0   : > { %s10831_s9 = scalar_lea.vmem %s535_s11, 128  ;;  %s10951_s5 = smov [#allocation5]  }
  0xb1   : > { %p10832_p0 = scmp.ne.s32.totalorder %s535_s11, %s10831_s9  ;;  %s10836_s21 = sshll.u32 %s10951_s5, 4  ;;  %s10837_s21 = int_to_ptr.vmem [resolvable:$false] %s10836_s21 }
  0xb2   : > { %s10838_s28 = scalar_lea.vmem %s10837_s21, 256  ;;  %p10839_p12 = scmp.lt.s32.totalorder %s535_s11, %s10837_s21 }
  0xb3   : > { %p10834_p4 = pnand %p10832_p0, %p10792_p7  ;;  %p10840_p1 = scmp.lt.s32.totalorder %s10838_s28, %s10831_s9 }
  0xb5   : > { %p10835_p9 = pneg %p10834_p4  ;;  %p10841_p6 = por %p10840_p1, %p10839_p12 }
  0xb7   : > { %p10842_p3 = pnand %p10841_p6, %p10835_p9 }
  0xb9   : > { %10845 = shalt.err (!%p10842_p3)
}
  0xba   : > { %10429 = dma.hbm_to_vmem [thread:$0]  (!%p11213_p5), %s11220_s25, 128, %s535_s11, %s524_s18  }
  0xbb   : > { %p12140_p2 = scmp.ne.s32.totalorder %s12119_s20, 0 }
  0xbc   : > { %s11271_s22 = sand.u32 (!%p12140_p2), 1, %s10926_s30   ;;  %p12141_p7 = scmp.ne.s32.totalorder (!%p12140_p2), %s12136_s27, 0 }
  0xbd   : > { %555 = sbr.rel (%p12140_p2) target bundleno = 12843 (0x322b), region = 76  ;;  %s11274_s10 = sshll.u32 (!%p12140_p2), %s11271_s22, 3 }
  0xbe   : > { %s558_s23 = scalar_lea.sflag (!%p12140_p2), [#allocation3], %s11271_s22  ;;  %s561_s7 = scalar_lea.vmem (!%p12140_p2), [#allocation2], %s11274_s10 }
  0xc2   : > { %10889 = dma.done.wait (%p12141_p7), %s558_s23, 128  }
  0xc3   : > { %10891 = vsyncadd (%p12141_p7), %s558_s23, 4294967168  ;;  %s566_s6 = sand.u32 1, %s11054_s19   ;;  %s570_s25 = scalar_lea.vmem [#allocation5], %s11274_s10 }
  0xc4   : > { %s567_s20 = scalar_lea.sflag [#allocation6], %s566_s6 }
  0xc5   : > { %10893 = dma.done.wait (%p12141_p7), %s567_s20, 128  }
  0xc6   : > { %10895 = vsyncadd (%p12141_p7), %s567_s20, 4294967168  ;;  %p12142_p3 = scmp.eq.s32.totalorder %s11054_s19, 0 }
  0xc8   : > { %10897 = dma.done.wait (%p12142_p3), [#allocation6], 4096   ;;  %p12143_p5 = pmov %p12142_p3 }
  0xc9   : > { %p12144_p8 = pmov %p12142_p3 }
  0xca   : > { %10899 = vsyncadd (%p12143_p5), [#allocation6], 4294963200 }
  0xcb   : > { %10901 = dma.done.wait (%p12144_p8), [#allocation9], 4224   ;;  %p12145_p10 = pmov %p12142_p3 }
  0xcc   : > { %p12146_p11 = pmov %p12142_p3 }
  0xcd   : > { %10903 = vsyncadd (%p12145_p10), [#allocation9], 4294963072 }
  0xce   : > { %10905 = dma.done.wait (%p12146_p11), [#allocation12], 16512   ;;  %p12147_p13 = pmov %p12142_p3 }
  0xcf   : > { %p12148_p0 = pmov %p12142_p3 }
  0xd0   : > { %10907 = vsyncadd (%p12147_p13), [#allocation12], 4294950784 }
  0xd1   : > { %10909 = dma.done.wait (%p12148_p0), [#allocation15], 66048   ;;  %p12149_p4 = pmov %p12148_p0 }
  0xd2   : > { %p12150_p9 = pmov %p12148_p0 }
  0xd3   : > { %10911 = vsyncadd (%p12149_p4), [#allocation15], 4294901248 }
  0xd4   : > { %10913 = dma.done.wait (%p12150_p9), [#allocation18], 32   ;;  %p12151_p12 = pmov %p12148_p0 }
  0xd5   : > { %v10952_v0 = vmov 0.0   ;;  %vm10953_vm0 = vmmov 0   ;;  %v676_v1 = vld [vmem:[#allocation7 + $0x38] sm:$0xff]  ;;  %v675_v3 = vld [vmem:[#allocation7 + $0x30] sm:$0xff]  ;;  %v674_v5 = vld [vmem:[#allocation7 + $0x28] sm:$0xff]  ;;  %vm700_vm1 = vcmask 261120  }
  0xd6   : > { %10915 = vsyncadd (%p12151_p12), [#allocation18], 4294967264  ;;  %9999 = vmatprep.subr.mxu1 %v10952_v0  ;;  %9988 = vmatprep.subr.mxu0 %v10952_v0  ;;  %v671_v2 = vld [vmem:[#allocation7 + $0x18] sm:$0xff]  ;;  %v670_v4 = vld [vmem:[#allocation7 + $0x10] sm:$0xff]  ;;  %vm926_vm2 = vcmask 64512   ;;  %s10954_s27 = smov 120  }
  0xd7   : > { %10007 = vmatprep.mubr.msk.f32.mxu1 %vm10953_vm0, %v10952_v0  ;;  %9996 = vmatprep.mubr.msk.f32.mxu0 %vm10953_vm0, %v10952_v0  ;;  %v669_v6 = vld [vmem:[#allocation7 + $0x8] sm:$0xff]  ;;  %v673_v7 = vld [vmem:[#allocation7 + $0x20] sm:$0xff]  ;;  %v681_v10 = vld [vmem:[#allocation7 + $0x58] sm:$0xff]  ;;  %p658_p1 = scmp.lt.s32.totalorder %s11054_s19, 1  ;;  %s10955_s14 = smov 112  }
  0xd8   : > { %10000 = vmatpush3.msra.mxu1 %v676_v1  ;;  %9989 = vmatpush3.msra.mxu0 %v671_v2  ;;  %v668_v8 = vld [vmem:[#allocation7] sm:$0xff]  ;;  %v680_v11 = vld [vmem:[#allocation7 + $0x50] sm:$0xff]  ;;  %v679_v12 = vld [vmem:[#allocation7 + $0x48] sm:$0xff]  ;;  %s10956_s24 = smov 104   ;;  %s12152_s6 = sld [smem:[#allocation29_spill]] }
  0xd9   : > { %10001 = vmatprep.subr.mxu1 %v10952_v0  ;;  %9990 = vmatprep.subr.mxu0 %v10952_v0  ;;  %v11320_v9 = vld [vmem:[%s561_s7] sm:$0xff]  ;;  %s11368_s11 = scalar_select %p658_p1, %s11054_s19, 1 }
  0xda   : > { %10002 = vmatpush3.msra.mxu1 %v675_v3  ;;  %9991 = vmatpush3.msra.mxu0 %v670_v4  ;;  %v678_v13 = vld [vmem:[#allocation7 + $0x40] sm:$0xff]  ;;  %v684_v54 = vld [vmem:[#allocation7 + $0x68] sm:$0xff]  ;;  %s9269_s5 = sshll.u32 %s11054_s19, 7  ;;  %s657_s21 = scalar_lea.vmem [#allocation19], %s11274_s10 }
  0xdb   : > { %10003 = vmatprep.subr.mxu1 %v10952_v0  ;;  %9992 = vmatprep.subr.mxu0 %v10952_v0  ;;  %v9136_v14 = vld [vmem:[#allocation8 + $0x1] ss:$0 sm:$0xff]  ;;  %v9134_v15 = vld [vmem:[#allocation8] ss:$0 sm:$0xff]  ;;  %v9138_v22 = vld [vmem:[#allocation8 + $0x2] ss:$0 sm:$0xff]  ;;  %s11374_s17 = scalar_lea.vmem %s12085_s2, %s11368_s11 }
  0xdc   : > { %10004 = vmatpush3.msra.mxu1 %v674_v5  ;;  %9993 = vmatpush3.msra.mxu0 %v669_v6  ;;  %v11377_v31 = vld [vmem:[%s11374_s17] ss:$0 sm:$0xff]  ;;  %s8920_s28 = sshll.u32 %s657_s21, 4  ;;  %p12154_p2 = scmp.ne.s32.totalorder %s12137_s3, 0  ;;  %s8921_s28 = int_to_ptr.vmem [resolvable:$true] %s8920_s28 }
  0xdd   : > { %10005 = vmatprep.subr.mxu1 %v10952_v0  ;;  %9994 = vmatprep.subr.mxu0 %v10952_v0  ;;  %v683_v59 = vld [vmem:[#allocation7 + $0x60] sm:$0xff] }
  0xde   : > { %10006 = vmatpush3.msra.mxu1 %v673_v7  ;;  %9995 = vmatpush3.msra.mxu0 %v668_v8  ;;  %s11509_s20 = scalar_lea.vmem %s12152_s6, %s11368_s11  ;;  %s8907_s6 = scalar_lea.sflag [#allocation4], %s11271_s22 }
  0xdf   : > { %10008 = vmatmul.mubr.msk.f32.vlgmr.msra.gmra.mxu1 %vm700_vm1, %v11320_v9  ;;  %9997 = vmatmul.mubr.msk.f32.vlgmr.msra.gmra.mxu0 %vm700_vm1, %v11320_v9 }
  0xe0   : > { %10021 = vmatprep.subr.mxu1 %v10952_v0  ;;  %10023 = vmatprep.mubr.msk.f32.mxu1 %vm10953_vm0, %v10952_v0 }
  0xe1   : > { %10010 = vmatprep.subr.mxu0 %v10952_v0  ;;  %10018 = vmatprep.mubr.msk.f32.mxu0 %vm10953_vm0, %v10952_v0 }
  0xe2   : > { %10011 = vmatpush3.msra.mxu0 %v681_v10 }
  0xe3   : > { %10012 = vmatprep.subr.mxu0 %v10952_v0 }
  0xe4   : > { %10013 = vmatpush3.msra.mxu0 %v680_v11 }
  0xe5   : > { %10014 = vmatprep.subr.mxu0 %v10952_v0 }
  0xe6   : > { %10015 = vmatpush3.msra.mxu0 %v679_v12 }
  0xe7   : > { %10016 = vmatprep.subr.mxu0 %v10952_v0 }
  0xe8   : > { %10017 = vmatpush3.msra.mxu0 %v678_v13 }
  0xe9   : > { %10019 = vmatmul.mubr.msk.f32.vlgmr.msra.gmra.mxu0 %vm700_vm1, %v11320_v9  ;;  %10031 = vmatprep.subr.mxu0 %v10952_v0 }
  0xea   : > { %10033 = vmatprep.mubr.msk.f32.mxu0 %vm10953_vm0, %v10952_v0 }
 0x19f   : > { %v846_v16 = vpop.f32.mrf.mxu1  ;;  %v770_v17 = vpop.f32.mrf.mxu0 }
 0x1a0   : > { %v11342_v18 = vadd.f32 %v9136_v14, %v846_v16  ;;  %v11344_v19 = vadd.f32 %v9134_v15, %v770_v17 }
 0x1a1   : > { %v10009_v20 = vpop.f32.mrf.mxu1  ;;  %v9998_v21 = vpop.f32.mrf.mxu0 }
 0x1a2   : > { %1099 = vrot.lane.b32.xlu0 %v11342_v18, %s10954_s27  ;;  %10022 = vmatpush3.xpose.msk.msra.mxu1 %vm926_vm2, %v11342_v18 }
 0x1a3   : > { %10026 = vmatprep.subr.mxu1 %v10952_v0 }
 0x1a5   : > { %10024 = vmatmul.mubr.msk.f32.vlgmr.msra.gmra.mxu1 %vm926_vm2, %v11344_v19 }
 0x1a6   : > { %1097 = vrot.lane.b32.xlu0 %v11344_v19, %s10954_s27  ;;  %10028 = vmatprep.mubr.msk.f32.mxu1 %vm10953_vm0, %v10952_v0 }
 0x1a9   : > { %v922_v23 = vpop.f32.mrf.mxu0 }
 0x1aa   : > { %v11357_v24 = vadd.f32 %v9138_v22, %v922_v23 }
 0x1ab   : > { %v10020_v25 = vpop.f32.mrf.mxu0 }
 0x1ac   : > { %10027 = vmatpush3.msra.mxu1 %v11357_v24 }
 0x1ad   : > { %10036 = vmatprep.subr.mxu1 %v10952_v0 }
 0x214   : > { %v1100_v26 = vpop.permute.xlu0 %1099 }
 0x215   : > { %10032 = vmatpush3.xpose.msk.msra.mxu0 %vm926_vm2, %v1100_v26 }
 0x216   : > { %10041 = vmatprep.subr.mxu0 %v10952_v0 }
 0x218   : > { %v1098_v27 = vpop.permute.xlu0 %1097 }
 0x219   : > { %10034 = vmatmul.mubr.msk.f32.vlgmr.msra.gmra.mxu0 %vm926_vm2, %v1098_v27 }
 0x21a   : > { %10043 = vmatprep.mubr.msk.f32.mxu0 %vm10953_vm0, %v10952_v0  ;;  %10042 = vmatpush3.msra.mxu0 %v684_v54 }
 0x21b   : > { %10051 = vmatprep.subr.mxu0 %v10952_v0 }
 0x265   : > { %v999_v28 = vpop.f32.mrf.mxu1 }
 0x266   : > { %v1004_v29 = vmul.f32 0.35355338, %v999_v28 }
 0x267   : > { %v10025_v30 = vpop.f32.mrf.mxu1 }
 0x268   : > { %v1005_v32 = vfloor.f32 %v1004_v29 }
 0x26a   : > { %v1012_v33 = vadd.f32 %v11377_v31, %v1005_v32 }
 0x26c   : > { %v1013_v34 = vsel %vm926_vm2, %v1012_v33, -inf }
 0x26d   : > { %1014 = vmax.xlane.f32.xlu1 %v1013_v34 }
 0x2d9   : > { %v1171_v35 = vpop.f32.mrf.mxu0 }
 0x2da   : > { %v1175_v36 = vmul.f32 0.35355338, %v1171_v35 }
 0x2db   : > { %v10035_v37 = vpop.f32.mrf.mxu0 }
 0x2dc   : > { %v1176_v38 = vfloor.f32 %v1175_v36 }
 0x2de   : > { %v1177_v39 = vadd.f32 %v11377_v31, %v1176_v38 }
 0x2e0   : > { %v1178_v40 = vsel %vm926_vm2, %v1177_v39, -inf }
 0x2e1   : > { %1179 = vmax.xlane.f32.xlu1 %v1178_v40 }
 0x2f6   : > { %v1015_v41 = vpop.xlane.xlu1 %1014 }
 0x2f7   : > { %v1016_v42 = vsub.f32 %v1012_v33, %v1015_v41 }
 0x2f9   : > { %v1017_v43 = vmul.f32 1.442695, %v1016_v42 }
 0x2fb   : > { %10503 = vpow2.f32 %v1017_v43 }
 0x308   : > { %v10504_v44 = vpop.eup %10503 }
 0x309   : > { %v1019_v45 = vsel %vm926_vm2, %v10504_v44, 0.0 }
 0x30a   : > { %1020 = vadd.xlane.f32.xlu0 %v1019_v45  ;;  %v686_v45 = vld [vmem:[#allocation7 + $0x78] sm:$0xff] }
 0x320   : > { %1504 = vrot.lane.b32.xlu0 %v11357_v24, %s10955_s14 }
 0x36a   : > { %v1180_v46 = vpop.xlane.xlu1 %1179 }
 0x36b   : > { %v1181_v47 = vsub.f32 %v1177_v39, %v1180_v46 }
 0x36d   : > { %v1182_v48 = vmul.f32 1.442695, %v1181_v47 }
 0x36f   : > { %10505 = vpow2.f32 %v1182_v48 }
 0x37c   : > { %v10506_v49 = vpop.eup %10505 }
 0x37d   : > { %v1184_v50 = vsel %vm926_vm2, %v10506_v49, 0.0 }
 0x37e   : > { %1185 = vadd.xlane.f32.xlu1 %v1184_v50  ;;  %v9157_v50 = vld [vmem:[#allocation8 + $0x3] ss:$0 sm:$0xff] }
 0x38f   : > { %1190 = vrot.lane.b32.xlu1 %v11357_v24, %s10954_s27 }
 0x393   : > { %v1021_v51 = vpop.xlane.xlu0 %1020  ;;  %1414 = vrot.lane.b32.xlu1 %v11342_v18, %s10955_s14 }
 0x394   : > { %10507 = vrcp.f32 %v1021_v51 }
 0x397   : > { %1412 = vrot.lane.b32.xlu1 %v11344_v19, %s10955_s14  ;;  %v1505_v61 = vpop.permute.xlu0 %1504 }
 0x3a1   : > { %v10508_v52 = vpop.eup %10507 }
 0x3a2   : > { %v1023_v53 = vmul.f32 %v10508_v52, %v10504_v44 }
 0x3a4   : > { %10029 = vmatmul.mubr.msk.f32.vlgmr.msra.gmra.mxu1 %vm926_vm2, %v1023_v53 }
 0x3a5   : > { %10038 = vmatprep.mubr.msk.f32.mxu1 %vm10953_vm0, %v10952_v0 }
 0x407   : > { %v1186_v55 = vpop.xlane.xlu1 %1185 }
 0x408   : > { %10509 = vrcp.f32 %v1186_v55 }
 0x40b   : > { %v1191_v56 = vpop.permute.xlu1 %1190 }
 0x40c   : > { %10037 = vmatpush3.msra.mxu1 %v1191_v56 }
 0x40d   : > { %10046 = vmatprep.subr.mxu1 %v10952_v0 }
 0x40f   : > { %v1415_v63 = vpop.permute.xlu1 %1414 }
 0x413   : > { %v1413_v3 = vpop.permute.xlu1 %1412 }
 0x415   : > { %v10510_v57 = vpop.eup %10509 }
 0x416   : > { %v1188_v58 = vmul.f32 %v10510_v57, %v10506_v49 }
 0x418   : > { %10039 = vmatmul.mubr.msk.f32.vlgmr.msra.gmra.mxu1 %vm926_vm2, %v1188_v58 }
 0x419   : > { %10047 = vmatpush3.msra.mxu1 %v683_v59  ;;  %10048 = vmatprep.mubr.msk.f32.mxu1 %vm10953_vm0, %v10952_v0 }
 0x41a   : > { %10056 = vmatprep.subr.mxu1 %v10952_v0 }
 0x464   : > { %v1093_v60 = vpop.f32.mrf.mxu1 }
 0x465   : > { %10049 = vmatmul.mubr.msk.f32.vlgmr.msra.gmra.mxu1 %vm926_vm2, %v1093_v60 }
 0x466   : > { %10057 = vmatpush3.msra.mxu1 %v1505_v61  ;;  %v10030_v62 = vpop.f32.mrf.mxu1  ;;  %10058 = vmatprep.mubr.msk.f32.mxu1 %vm10953_vm0, %v10952_v0 }
 0x467   : > { %10066 = vmatprep.subr.mxu1 %v10952_v0  ;;  %v1942_v62 = vld [vmem:[#allocation10 + $0x38] sm:$0xff] }
 0x4d8   : > { %v1262_v1 = vpop.f32.mrf.mxu1 }
 0x4d9   : > { %10044 = vmatmul.mubr.msk.f32.vlgmr.msra.gmra.mxu0 %vm926_vm2, %v1262_v1  ;;  %v1937_v1 = vld [vmem:[#allocation10 + $0x18] sm:$0xff] }
 0x4da   : > { %10052 = vmatpush3.xpose.msk.msra.mxu0 %vm926_vm2, %v1415_v63  ;;  %v10040_v2 = vpop.f32.mrf.mxu1  ;;  %10053 = vmatprep.mubr.msk.f32.mxu0 %vm10953_vm0, %v10952_v0  ;;  %v1941_v63 = vld [vmem:[#allocation10 + $0x30] sm:$0xff] }
 0x4db   : > { %10061 = vmatprep.subr.mxu0 %v10952_v0  ;;  %v1939_v2 = vld [vmem:[#allocation10 + $0x20] sm:$0xff] }
 0x4dd   : > { %10054 = vmatmul.mubr.msk.f32.vlgmr.msra.gmra.mxu0 %vm926_vm2, %v1413_v3  ;;  %v665_v3 = vld [vmem:[%s570_s25] sm:$0xff] }
 0x4de   : > { %10063 = vmatprep.mubr.msk.f32.mxu0 %vm10953_vm0, %v10952_v0 }
 0x525   : > { %v1408_v4 = vpop.f32.mrf.mxu1 }
 0x527   : > { %v10050_v5 = vpop.f32.mrf.mxu1 }
 0x528   : > { %v1935_v5 = vld [vmem:[#allocation10 + $0x8] sm:$0xff] }
 0x599   : > { %v1335_v6 = vpop.f32.mrf.mxu0 }
 0x59a   : > { %v1409_v41 = vadd.f32 %v1408_v4, %v1335_v6  ;;  %v1936_v4 = vld [vmem:[#allocation10 + $0x10] sm:$0xff]  ;;  %v1934_v6 = vld [vmem:[#allocation10] sm:$0xff] }
 0x59b   : > { %v10045_v7 = vpop.f32.mrf.mxu0 }
 0x59d   : > { %v1486_v8 = vpop.f32.mrf.mxu0 }
 0x59e   : > { %v1490_v10 = vmul.f32 0.35355338, %v1486_v8 }
 0x59f   : > { %v10055_v11 = vpop.f32.mrf.mxu0 }
 0x5a0   : > { %v1491_v12 = vfloor.f32 %v1490_v10 }
 0x5a2   : > { %v1492_v13 = vadd.f32 %v11377_v31, %v1491_v12  ;;  %v9158_v12 = vld [vmem:[%s12095_s12] ss:$0 sm:$0xff] }
 0x5a4   : > { %v1493_v14 = vsel %vm926_vm2, %v1492_v13, -inf }
 0x5a5   : > { %1494 = vmax.xlane.f32.xlu1 %v1493_v14  ;;  %v9159_v14 = vld [vmem:[%s12096_s13] ss:$0 sm:$0xff] }
 0x62e   : > { %v1495_v15 = vpop.xlane.xlu1 %1494 }
 0x62f   : > { %v1496_v16 = vsub.f32 %v1492_v13, %v1495_v15 }
 0x631   : > { %v1497_v17 = vmul.f32 1.442695, %v1496_v16 }
 0x633   : > { %10511 = vpow2.f32 %v1497_v17  ;;  %v9162_v17 = vld [vmem:[#allocation11 + $0x1] ss:$0 sm:$0xff] }
 0x640   : > { %v10512_v20 = vpop.eup %10511 }
 0x641   : > { %v1499_v21 = vsel %vm926_vm2, %v10512_v20, 0.0 }
 0x642   : > { %1500 = vadd.xlane.f32.xlu0 %v1499_v21 }
 0x658   : > { %1656 = vrot.lane.b32.xlu0 %v11342_v18, %s10956_s24  ;;  %v685_v18 = vld [vmem:[#allocation7 + $0x70] sm:$0xff] }
 0x659   : > { %10062 = vmatpush3.msra.mxu0 %v685_v18 }
 0x65a   : > { %10071 = vmatprep.subr.mxu0 %v10952_v0 }
 0x65c   : > { %1654 = vrot.lane.b32.xlu0 %v11344_v19, %s10956_s24 }
 0x6cb   : > { %v1501_v22 = vpop.xlane.xlu0 %1500 }
 0x6cc   : > { %10513 = vrcp.f32 %v1501_v22 }
 0x6cf   : > { %v1657_v25 = vpop.permute.xlu0 %1656 }
 0x6d3   : > { %v1655_v27 = vpop.permute.xlu0 %1654 }
 0x6d9   : > { %v10514_v23 = vpop.eup %10513 }
 0x6da   : > { %v1503_v26 = vmul.f32 %v10514_v23, %v10512_v20  ;;  %v1947_v23 = vld [vmem:[#allocation10 + $0x58] sm:$0xff] }
 0x6dc   : > { %10059 = vmatmul.mubr.msk.f32.vlgmr.msra.gmra.mxu1 %vm926_vm2, %v1503_v26  ;;  %v1945_v26 = vld [vmem:[#allocation10 + $0x48] sm:$0xff] }
 0x6dd   : > { %10067 = vmatpush3.xpose.msk.msra.mxu1 %vm926_vm2, %v1657_v25  ;;  %10068 = vmatprep.mubr.msk.f32.mxu1 %vm10953_vm0, %v10952_v0  ;;  %v1946_v25 = vld [vmem:[#allocation10 + $0x50] sm:$0xff] }
 0x6de   : > { %10076 = vmatprep.subr.mxu1 %v10952_v0 }
 0x6e0   : > { %10069 = vmatmul.mubr.msk.f32.vlgmr.msra.gmra.mxu1 %vm926_vm2, %v1655_v27  ;;  %v1944_v27 = vld [vmem:[#allocation10 + $0x40] sm:$0xff] }
 0x6e1   : > { %10078 = vmatprep.mubr.msk.f32.mxu1 %vm10953_vm0, %v10952_v0  ;;  %10077 = vmatpush3.msra.mxu1 %v686_v45 }
 0x6e2   : > { %10092 = vmatprep.subr.mxu1 %v10952_v0 }
 0x79c   : > { %v1576_v19 = vpop.f32.mrf.mxu1 }
 0x79d   : > { %10064 = vmatmul.mubr.msk.f32.vlgmr.msra.gmra.mxu0 %vm926_vm2, %v1576_v19  ;;  %v9160_v19 = vld [vmem:[#allocation11] ss:$0 sm:$0xff] }
 0x79e   : > { %v10060_v28 = vpop.f32.mrf.mxu1  ;;  %10073 = vmatprep.mubr.msk.f32.mxu0 %vm10953_vm0, %v10952_v0 }
 0x7a0   : > { %v1728_v29 = vpop.f32.mrf.mxu1 }
 0x7a1   : > { %v1732_v30 = vmul.f32 0.35355338, %v1728_v29 }
 0x7a2   : > { %v10070_v32 = vpop.f32.mrf.mxu1 }
 0x7a3   : > { %v1733_v33 = vfloor.f32 %v1732_v30  ;;  %v9164_v32 = vld [vmem:[#allocation11 + $0x2] ss:$0 sm:$0xff] }
 0x7a5   : > { %v1734_v34 = vadd.f32 %v11377_v31, %v1733_v33 }
 0x7a7   : > { %v1735_v35 = vsel %vm926_vm2, %v1734_v34, -inf }
 0x7a8   : > { %1736 = vmax.xlane.f32.xlu0 %v1735_v35 }
 0x831   : > { %v1737_v36 = vpop.xlane.xlu0 %1736 }
 0x832   : > { %v1738_v37 = vsub.f32 %v1734_v34, %v1737_v36 }
 0x834   : > { %v1739_v38 = vmul.f32 1.442695, %v1738_v37 }
 0x836   : > { %10515 = vpow2.f32 %v1739_v38 }
 0x843   : > { %v10516_v39 = vpop.eup %10515 }
 0x844   : > { %v1741_v40 = vsel %vm926_vm2, %v10516_v39, 0.0 }
 0x845   : > { %1742 = vadd.xlane.f32.xlu1 %v1741_v40  ;;  %v11512_v40 = vld [vmem:[%s11509_s20] ss:$0 sm:$0xff] }
 0x856   : > { %1746 = vrot.lane.b32.xlu1 %v11357_v24, %s10956_s24 }
 0x85d   : > { %v1649_v42 = vpop.f32.mrf.mxu0 }
 0x85e   : > { %v1653_v43 = vadd.f32 %v1649_v42, %v1409_v41 }
 0x85f   : > { %v10065_v44 = vpop.f32.mrf.mxu0 }
 0x8ce   : > { %v1743_v31 = vpop.xlane.xlu1 %1742 }
 0x8cf   : > { %10517 = vrcp.f32 %v1743_v31 }
 0x8d2   : > { %v1747_v46 = vpop.permute.xlu1 %1746 }
 0x8d3   : > { %10072 = vmatpush3.msra.mxu0 %v1747_v46 }
 0x8d4   : > { %10081 = vmatprep.subr.mxu0 %v10952_v0 }
 0x8dc   : > { %v10518_v47 = vpop.eup %10517 }
 0x8dd   : > { %v1745_v48 = vmul.f32 %v10518_v47, %v10516_v39 }
 0x8df   : > { %10074 = vmatmul.mubr.msk.f32.vlgmr.msra.gmra.mxu0 %vm926_vm2, %v1745_v48 }
 0x8e0   : > { %10089 = vmatprep.mubr.msk.f32.mxu0 %vm10953_vm0, %v10952_v0  ;;  %10082 = vmatpush3.msra.mxu0 %v1937_v1 }
 0x8e1   : > { %10083 = vmatprep.subr.mxu0 %v10952_v0 }
 0x8e2   : > { %10084 = vmatpush3.msra.mxu0 %v1936_v4 }
 0x8e3   : > { %10085 = vmatprep.subr.mxu0 %v10952_v0 }
 0x8e4   : > { %10086 = vmatpush3.msra.mxu0 %v1935_v5 }
 0x8e5   : > { %10087 = vmatprep.subr.mxu0 %v10952_v0 }
 0x8e6   : > { %10088 = vmatpush3.msra.mxu0 %v1934_v6 }
 0x8e7   : > { %10103 = vmatprep.subr.mxu0 %v10952_v0 }
 0x99f   : > { %v1818_v24 = vpop.f32.mrf.mxu0 }
 0x9a0   : > { %10079 = vmatmul.mubr.msk.f32.vlgmr.msra.gmra.mxu1 %vm926_vm2, %v1818_v24 }
 0x9a1   : > { %v10075_v49 = vpop.f32.mrf.mxu0  ;;  %10100 = vmatprep.mubr.msk.f32.mxu1 %vm10953_vm0, %v10952_v0  ;;  %10093 = vmatpush3.msra.mxu1 %v1942_v62 }
 0x9a2   : > { %10094 = vmatprep.subr.mxu1 %v10952_v0 }
 0x9a3   : > { %10095 = vmatpush3.msra.mxu1 %v1941_v63 }
 0x9a4   : > { %10096 = vmatprep.subr.mxu1 %v10952_v0 }
 0xa60   : > { %v1891_v51 = vpop.f32.mrf.mxu1 }
 0xa61   : > { %v1895_v52 = vadd.f32 %v1891_v51, %v1653_v43 }
 0xa62   : > { %v10080_v53 = vpop.f32.mrf.mxu1 }
 0xa63   : > { %v1902_v54 = vadd.f32 %v9157_v50, %v1895_v52 }
 0xa65   : > { %v1903_v55 = vadd.f32 %v1902_v54, %v11320_v9  ;;  %v1940_v9 = vld [vmem:[#allocation10 + $0x28] sm:$0xff] }
 0xa66   : > { %10097 = vmatpush3.msra.mxu1 %v1940_v9 }
 0xa67   : > { %v1906_v56 = vsel %vm700_vm1, %v1903_v55, 0.0  ;;  %10098 = vmatprep.subr.mxu1 %v10952_v0 }
 0xa68   : > { %1907 = vadd.xlane.f32.xlu1 %v1906_v56  ;;  %10099 = vmatpush3.msra.mxu1 %v1939_v2  ;;  %v1949_v2 = vld [vmem:[#allocation10 + $0x60] sm:$0xff] }
 0xa69   : > { %10101 = vmatmul.mubr.msk.f32.vlgmr.msra.gmra.mxu1 %vm700_vm1, %v665_v3  ;;  %10114 = vmatprep.subr.mxu1 %v10952_v0 }
 0xa6a   : > { %10116 = vmatprep.mubr.msk.f32.mxu1 %vm10953_vm0, %v10952_v0 }
 0xaf1   : > { %v1908_v57 = vpop.xlane.xlu1 %1907 }
 0xaf2   : > { %v1910_v58 = vmul.f32 0.03125, %v1908_v57 }
 0xaf4   : > { %v1911_v59 = vsub.f32 %v1903_v55, %v1910_v58 }
 0xaf6   : > { %v1912_v60 = vmul.f32 %v1911_v59, %v1911_v59 }
 0xaf8   : > { %v1913_v61 = vsel %vm700_vm1, %v1912_v60, 0.0 }
 0xaf9   : > { %1914 = vadd.xlane.f32.xlu0 %v1913_v61  ;;  %v1950_v61 = vld [vmem:[#allocation10 + $0x68] sm:$0xff] }
 0xb29   : > { %v2114_v20 = vpop.f32.mrf.mxu1 }
 0xb2a   : > { %v11474_v21 = vadd.f32 %v9162_v17, %v2114_v20 }
 0xb2b   : > { %v10102_v22 = vpop.f32.mrf.mxu1 }
 0xb2c   : > { %2365 = vrot.lane.b32.xlu0 %v11474_v21, %s10954_s27  ;;  %10115 = vmatpush3.xpose.msk.msra.mxu1 %vm926_vm2, %v11474_v21 }
 0xb2d   : > { %10119 = vmatprep.subr.mxu1 %v10952_v0 }
 0xb82   : > { %v1915_v7 = vpop.xlane.xlu0 %1914 }
 0xb83   : > { %v1916_v8 = vmul.f32 0.03125, %v1915_v7 }
 0xb85   : > { %v1917_v10 = vadd.f32 1e-05, %v1916_v8 }
 0xb87   : > { %10519 = vrsqrt.f32 %v1917_v10 }
 0xb94   : > { %v10520_v11 = vpop.eup %10519 }
 0xb95   : > { %v1919_v13 = vmul.f32 %v10520_v11, %v1911_v59 }
 0xb97   : > { %v1926_v15 = vmul.f32 %v9158_v12, %v1919_v13 }
 0xb99   : > { %v11468_v16 = vadd.f32 %v9159_v14, %v1926_v15 }
 0xb9b   : > { %10090 = vmatmul.mubr.msk.f32.vlgmr.msra.gmra.mxu0 %vm700_vm1, %v11468_v16 }
 0xb9c   : > { %10111 = vmatprep.mubr.msk.f32.mxu0 %vm10953_vm0, %v10952_v0  ;;  %10104 = vmatpush3.msra.mxu0 %v1947_v23 }
 0xb9d   : > { %10105 = vmatprep.subr.mxu0 %v10952_v0 }
 0xb9e   : > { %10106 = vmatpush3.msra.mxu0 %v1946_v25  ;;  %v2366_v18 = vpop.permute.xlu0 %2365 }
 0xb9f   : > { %10107 = vmatprep.subr.mxu0 %v10952_v0 }
 0xba0   : > { %10108 = vmatpush3.msra.mxu0 %v1945_v26 }
 0xba1   : > { %10109 = vmatprep.subr.mxu0 %v10952_v0 }
 0xba2   : > { %10110 = vmatpush3.msra.mxu0 %v1944_v27 }
 0xba3   : > { %10112 = vmatmul.mubr.msk.f32.vlgmr.msra.gmra.mxu0 %vm700_vm1, %v665_v3  ;;  %10124 = vmatprep.subr.mxu0 %v10952_v0 }
 0xba4   : > { %10126 = vmatprep.mubr.msk.f32.mxu0 %vm10953_vm0, %v10952_v0  ;;  %10125 = vmatpush3.xpose.msk.msra.mxu0 %vm926_vm2, %v2366_v18 }
 0xba5   : > { %10134 = vmatprep.subr.mxu0 %v10952_v0 }
 0xc5b   : > { %v2035_v28 = vpop.f32.mrf.mxu0 }
 0xc5c   : > { %v11490_v29 = vadd.f32 %v9160_v19, %v2035_v28 }
 0xc5d   : > { %v10091_v30 = vpop.f32.mrf.mxu0 }
 0xc5e   : > { %2363 = vrot.lane.b32.xlu0 %v11490_v29, %s10954_s27  ;;  %10117 = vmatmul.mubr.msk.f32.vlgmr.msra.gmra.mxu1 %vm926_vm2, %v11490_v29 }
 0xc5f   : > { %10121 = vmatprep.mubr.msk.f32.mxu1 %vm10953_vm0, %v10952_v0 }
 0xc63   : > { %v2190_v33 = vpop.f32.mrf.mxu0 }
 0xc64   : > { %v11498_v34 = vadd.f32 %v9164_v32, %v2190_v33 }
 0xc65   : > { %v10113_v35 = vpop.f32.mrf.mxu0 }
 0xc66   : > { %10120 = vmatpush3.msra.mxu1 %v11498_v34  ;;  %v1951_v35 = vld [vmem:[#allocation10 + $0x70] sm:$0xff] }
 0xc67   : > { %10129 = vmatprep.subr.mxu1 %v10952_v0 }
 0xcd0   : > { %v2364_v36 = vpop.permute.xlu0 %2363 }
 0xcd1   : > { %10127 = vmatmul.mubr.msk.f32.vlgmr.msra.gmra.mxu0 %vm926_vm2, %v2364_v36 }
 0xcd2   : > { %10136 = vmatprep.mubr.msk.f32.mxu0 %vm10953_vm0, %v10952_v0  ;;  %10135 = vmatpush3.msra.mxu0 %v1950_v61 }
 0xcd3   : > { %10144 = vmatprep.subr.mxu0 %v10952_v0 }
 0xd1e   : > { %v2266_v37 = vpop.f32.mrf.mxu1 }
 0xd1f   : > { %v2270_v38 = vmul.f32 0.35355338, %v2266_v37 }
 0xd20   : > { %v10118_v39 = vpop.f32.mrf.mxu1 }
 0xd21   : > { %v2271_v41 = vfloor.f32 %v2270_v38 }
 0xd23   : > { %v2278_v42 = vadd.f32 %v11512_v40, %v2271_v41 }
 0xd25   : > { %v2279_v43 = vsel %vm926_vm2, %v2278_v42, -inf }
 0xd26   : > { %2280 = vmax.xlane.f32.xlu1 %v2279_v43 }
 0xd91   : > { %v2437_v44 = vpop.f32.mrf.mxu0 }
 0xd92   : > { %v2441_v45 = vmul.f32 0.35355338, %v2437_v44 }
 0xd93   : > { %v10128_v31 = vpop.f32.mrf.mxu0 }
 0xd94   : > { %v2442_v46 = vfloor.f32 %v2441_v45 }
 0xd96   : > { %v2443_v47 = vadd.f32 %v11512_v40, %v2442_v46 }
 0xd98   : > { %v2444_v48 = vsel %vm926_vm2, %v2443_v47, -inf }
 0xd99   : > { %2445 = vmax.xlane.f32.xlu0 %v2444_v48 }
 0xdaf   : > { %v2281_v24 = vpop.xlane.xlu1 %2280 }
 0xdb0   : > { %v2282_v49 = vsub.f32 %v2278_v42, %v2281_v24 }
 0xdb2   : > { %v2283_v50 = vmul.f32 1.442695, %v2282_v49 }
 0xdb4   : > { %10521 = vpow2.f32 %v2283_v50 }
 0xdc1   : > { %v10522_v51 = vpop.eup %10521 }
 0xdc2   : > { %v2285_v52 = vsel %vm926_vm2, %v10522_v51, 0.0 }
 0xdc3   : > { %2286 = vadd.xlane.f32.xlu1 %v2285_v52  ;;  %v1952_v52 = vld [vmem:[#allocation10 + $0x78] sm:$0xff] }
 0xe22   : > { %v2446_v53 = vpop.xlane.xlu0 %2445 }
 0xe23   : > { %v2447_v54 = vsub.f32 %v2443_v47, %v2446_v53 }
 0xe25   : > { %v2448_v55 = vmul.f32 1.442695, %v2447_v54 }
 0xe27   : > { %10523 = vpow2.f32 %v2448_v55 }
 0xe34   : > { %v10524_v56 = vpop.eup %10523 }
 0xe35   : > { %v2450_v57 = vsel %vm926_vm2, %v10524_v56, 0.0 }
 0xe36   : > { %2451 = vadd.xlane.f32.xlu1 %v2450_v57  ;;  %v9183_v57 = vld [vmem:[#allocation11 + $0x3] ss:$0 sm:$0xff] }
 0xe47   : > { %2456 = vrot.lane.b32.xlu1 %v11498_v34, %s10954_s27 }
 0xe4b   : > { %2680 = vrot.lane.b32.xlu1 %v11474_v21, %s10955_s14 }
 0xe4c   : > { %v2287_v58 = vpop.xlane.xlu1 %2286 }
 0xe4d   : > { %10525 = vrcp.f32 %v2287_v58 }
 0xe4f   : > { %2678 = vrot.lane.b32.xlu1 %v11490_v29, %s10955_s14 }
 0xe5a   : > { %v10526_v59 = vpop.eup %10525 }
 0xe5b   : > { %v2289_v60 = vmul.f32 %v10526_v59, %v10522_v51 }
 0xe5d   : > { %10122 = vmatmul.mubr.msk.f32.vlgmr.msra.gmra.mxu1 %vm926_vm2, %v2289_v60 }
 0xe5e   : > { %10131 = vmatprep.mubr.msk.f32.mxu1 %vm10953_vm0, %v10952_v0 }
 0xebf   : > { %v2452_v62 = vpop.xlane.xlu1 %2451 }
 0xec0   : > { %10527 = vrcp.f32 %v2452_v62 }
 0xec3   : > { %v2457_v63 = vpop.permute.xlu1 %2456 }
 0xec4   : > { %10130 = vmatpush3.msra.mxu1 %v2457_v63 }
 0xec5   : > { %10139 = vmatprep.subr.mxu1 %v10952_v0 }
 0xec7   : > { %v2681_v5 = vpop.permute.xlu1 %2680 }
 0xecb   : > { %v2679_v8 = vpop.permute.xlu1 %2678 }
 0xecd   : > { %v10528_v9 = vpop.eup %10527 }
 0xece   : > { %v2454_v1 = vmul.f32 %v10528_v9, %v10524_v56 }
 0xed0   : > { %10132 = vmatmul.mubr.msk.f32.vlgmr.msra.gmra.mxu1 %vm926_vm2, %v2454_v1 }
 0xed1   : > { %10140 = vmatpush3.msra.mxu1 %v1949_v2  ;;  %10141 = vmatprep.mubr.msk.f32.mxu1 %vm10953_vm0, %v10952_v0 }
 0xed2   : > { %10149 = vmatprep.subr.mxu1 %v10952_v0 }
 0xf1d   : > { %v2359_v3 = vpop.f32.mrf.mxu1 }
 0xf1e   : > { %10142 = vmatmul.mubr.msk.f32.vlgmr.msra.gmra.mxu1 %vm926_vm2, %v2359_v3 }
 0xf1f   : > { %v10123_v4 = vpop.f32.mrf.mxu1  ;;  %10151 = vmatprep.mubr.msk.f32.mxu1 %vm10953_vm0, %v10952_v0 }
 0xf90   : > { %v2528_v6 = vpop.f32.mrf.mxu1 }
 0xf91   : > { %10137 = vmatmul.mubr.msk.f32.vlgmr.msra.gmra.mxu0 %vm926_vm2, %v2528_v6  ;;  %v3252_v6 = vld [vmem:[#allocation13 + $0x198] sm:$0xff] }
 0xf92   : > { %10145 = vmatpush3.xpose.msk.msra.mxu0 %vm926_vm2, %v2681_v5  ;;  %v10133_v7 = vpop.f32.mrf.mxu1  ;;  %10146 = vmatprep.mubr.msk.f32.mxu0 %vm10953_vm0, %v10952_v0  ;;  %v3250_v5 = vld [vmem:[#allocation13 + $0x188] sm:$0xff] }
 0xf93   : > { %10154 = vmatprep.subr.mxu0 %v10952_v0  ;;  %v3249_v7 = vld [vmem:[#allocation13 + $0x180] sm:$0xff] }
 0xf95   : > { %10147 = vmatmul.mubr.msk.f32.vlgmr.msra.gmra.mxu0 %vm926_vm2, %v2679_v8  ;;  %v3251_v8 = vld [vmem:[#allocation13 + $0x190] sm:$0xff] }
 0xf96   : > { %10156 = vmatprep.mubr.msk.f32.mxu0 %vm10953_vm0, %v10952_v0  ;;  %10155 = vmatpush3.msra.mxu0 %v1951_v35 }
 0xf97   : > { %10164 = vmatprep.subr.mxu0 %v10952_v0 }
 0xfde   : > { %v2674_v10 = vpop.f32.mrf.mxu1 }
 0xfe0   : > { %v10143_v11 = vpop.f32.mrf.mxu1 }
 0xfe1   : > { %v3233_v11 = vld [vmem:[#allocation13 + $0x100] sm:$0xff] }
0x1051   : > { %v2601_v12 = vpop.f32.mrf.mxu0 }
0x1052   : > { %v2675_v24 = vadd.f32 %v2674_v10, %v2601_v12  ;;  %v3234_v10 = vld [vmem:[#allocation13 + $0x108] sm:$0xff]  ;;  %v3235_v12 = vld [vmem:[#allocation13 + $0x110] sm:$0xff] }
0x1053   : > { %v10138_v13 = vpop.f32.mrf.mxu0 }
0x1054   : > { %v3218_v13 = vld [vmem:[#allocation13 + $0x88] sm:$0xff] }
0x1055   : > { %v2752_v14 = vpop.f32.mrf.mxu0 }
0x1056   : > { %v2756_v15 = vmul.f32 0.35355338, %v2752_v14  ;;  %v3220_v14 = vld [vmem:[#allocation13 + $0x98] sm:$0xff] }
0x1057   : > { %v10148_v17 = vpop.f32.mrf.mxu0 }
0x1058   : > { %v2757_v20 = vfloor.f32 %v2756_v15  ;;  %v3217_v15 = vld [vmem:[#allocation13 + $0x80] sm:$0xff]  ;;  %v3219_v17 = vld [vmem:[#allocation13 + $0x90] sm:$0xff] }
0x105a   : > { %v2758_v22 = vadd.f32 %v11512_v40, %v2757_v20  ;;  %v3202_v20 = vld [vmem:[#allocation13 + $0x8] sm:$0xff] }
0x105c   : > { %v2759_v23 = vsel %vm926_vm2, %v2758_v22, -inf }
0x105d   : > { %2760 = vmax.xlane.f32.xlu0 %v2759_v23  ;;  %v3201_v23 = vld [vmem:[#allocation13] sm:$0xff] }
0x1073   : > { %2770 = vrot.lane.b32.xlu0 %v11498_v34, %s10955_s14 }
0x1077   : > { %2922 = vrot.lane.b32.xlu0 %v11474_v21, %s10956_s24 }
0x107b   : > { %2920 = vrot.lane.b32.xlu0 %v11490_v29, %s10956_s24 }
0x10e6   : > { %v2761_v25 = vpop.xlane.xlu0 %2760 }
0x10e7   : > { %v2762_v26 = vsub.f32 %v2758_v22, %v2761_v25  ;;  %v3204_v22 = vld [vmem:[#allocation13 + $0x18] sm:$0xff]  ;;  %v3203_v25 = vld [vmem:[#allocation13 + $0x10] sm:$0xff] }
0x10e9   : > { %v2763_v27 = vmul.f32 1.442695, %v2762_v26  ;;  %v3254_v26 = vld [vmem:[#allocation13 + $0x1a8] sm:$0xff] }
0x10ea   : > { %v2771_v18 = vpop.permute.xlu0 %2770 }
0x10eb   : > { %10529 = vpow2.f32 %v2763_v27  ;;  %10150 = vmatpush3.msra.mxu1 %v2771_v18  ;;  %v3256_v27 = vld [vmem:[#allocation13 + $0x1b8] sm:$0xff] }
0x10ec   : > { %10159 = vmatprep.subr.mxu1 %v10952_v0 }
0x10ee   : > { %v2923_v33 = vpop.permute.xlu0 %2922 }
0x10f2   : > { %v2921_v29 = vpop.permute.xlu0 %2920 }
0x10f8   : > { %v10530_v19 = vpop.eup %10529 }
0x10f9   : > { %v2765_v28 = vsel %vm926_vm2, %v10530_v19, 0.0 }
0x10fa   : > { %2766 = vadd.xlane.f32.xlu1 %v2765_v28 }
0x1183   : > { %v2767_v30 = vpop.xlane.xlu1 %2766 }
0x1184   : > { %10531 = vrcp.f32 %v2767_v30 }
0x1191   : > { %v10532_v32 = vpop.eup %10531 }
0x1192   : > { %v2769_v21 = vmul.f32 %v10532_v32, %v10530_v19  ;;  %v9186_v32 = vld [vmem:[%s12095_s12 + $0x1] ss:$0 sm:$0xff] }
0x1194   : > { %10152 = vmatmul.mubr.msk.f32.vlgmr.msra.gmra.mxu1 %vm926_vm2, %v2769_v21  ;;  %v9187_v21 = vld [vmem:[%s12096_s13 + $0x1] ss:$0 sm:$0xff] }
0x1195   : > { %10160 = vmatpush3.xpose.msk.msra.mxu1 %vm926_vm2, %v2923_v33  ;;  %10161 = vmatprep.mubr.msk.f32.mxu1 %vm10953_vm0, %v10952_v0 }
0x1196   : > { %10169 = vmatprep.subr.mxu1 %v10952_v0 }
0x1198   : > { %10162 = vmatmul.mubr.msk.f32.vlgmr.msra.gmra.mxu1 %vm926_vm2, %v2921_v29 }
0x1199   : > { %10171 = vmatprep.mubr.msk.f32.mxu1 %vm10953_vm0, %v10952_v0  ;;  %10170 = vmatpush3.msra.mxu1 %v1952_v52  ;;  %v3259_v52 = vld [vmem:[#allocation13 + $0x1d0] sm:$0xff] }
0x119a   : > { %3447 = vmatprep.subr.mxu1 %v3252_v6  ;;  %v3247_v6 = vld [vmem:[#allocation13 + $0x170] sm:$0xff] }
0x1254   : > { %v2842_v36 = vpop.f32.mrf.mxu1 }
0x1255   : > { %10157 = vmatmul.mubr.msk.f32.vlgmr.msra.gmra.mxu0 %vm926_vm2, %v2842_v36  ;;  %v3253_v36 = vld [vmem:[#allocation13 + $0x1a0] sm:$0xff] }
0x1256   : > { %v10153_v37 = vpop.f32.mrf.mxu1  ;;  %10166 = vmatprep.mubr.msk.f32.mxu0 %vm10953_vm0, %v10952_v0 }
0x1257   : > { %v3255_v37 = vld [vmem:[#allocation13 + $0x1b0] sm:$0xff] }
0x1258   : > { %v2994_v38 = vpop.f32.mrf.mxu1 }
0x1259   : > { %v2998_v39 = vmul.f32 0.35355338, %v2994_v38  ;;  %v3238_v38 = vld [vmem:[#allocation13 + $0x128] sm:$0xff] }
0x125a   : > { %v10163_v41 = vpop.f32.mrf.mxu1 }
0x125b   : > { %v2999_v42 = vfloor.f32 %v2998_v39  ;;  %v3240_v39 = vld [vmem:[#allocation13 + $0x138] sm:$0xff]  ;;  %v3237_v41 = vld [vmem:[#allocation13 + $0x120] sm:$0xff] }
0x125d   : > { %v3000_v43 = vadd.f32 %v11512_v40, %v2999_v42  ;;  %v3239_v42 = vld [vmem:[#allocation13 + $0x130] sm:$0xff] }
0x125f   : > { %v3001_v44 = vsel %vm926_vm2, %v3000_v43, -inf }
0x1260   : > { %3002 = vmax.xlane.f32.xlu0 %v3001_v44  ;;  %v3224_v44 = vld [vmem:[#allocation13 + $0xb8] sm:$0xff] }
0x12e9   : > { %v3003_v45 = vpop.xlane.xlu0 %3002 }
0x12ea   : > { %v3004_v31 = vsub.f32 %v3000_v43, %v3003_v45  ;;  %v3222_v43 = vld [vmem:[#allocation13 + $0xa8] sm:$0xff]  ;;  %v3221_v45 = vld [vmem:[#allocation13 + $0xa0] sm:$0xff] }
0x12ec   : > { %v3005_v46 = vmul.f32 1.442695, %v3004_v31  ;;  %v3223_v31 = vld [vmem:[#allocation13 + $0xb0] sm:$0xff] }
0x12ee   : > { %10533 = vpow2.f32 %v3005_v46  ;;  %v3206_v46 = vld [vmem:[#allocation13 + $0x28] sm:$0xff] }
0x12fb   : > { %v10534_v47 = vpop.eup %10533 }
0x12fc   : > { %v3007_v48 = vsel %vm926_vm2, %v10534_v47, 0.0 }
0x12fd   : > { %3008 = vadd.xlane.f32.xlu1 %v3007_v48  ;;  %v3205_v48 = vld [vmem:[#allocation13 + $0x20] sm:$0xff] }
0x130e   : > { %3012 = vrot.lane.b32.xlu1 %v11498_v34, %s10956_s24 }
0x1315   : > { %v2915_v49 = vpop.f32.mrf.mxu0 }
0x1316   : > { %v2919_v50 = vadd.f32 %v2915_v49, %v2675_v24  ;;  %v3207_v24 = vld [vmem:[#allocation13 + $0x30] sm:$0xff]  ;;  %v3258_v49 = vld [vmem:[#allocation13 + $0x1c8] sm:$0xff] }
0x1317   : > { %v10158_v51 = vpop.f32.mrf.mxu0 }
0x1318   : > { %v3257_v51 = vld [vmem:[#allocation13 + $0x1c0] sm:$0xff] }
0x1386   : > { %v3009_v40 = vpop.xlane.xlu1 %3008 }
0x1387   : > { %10535 = vrcp.f32 %v3009_v40  ;;  %v3242_v40 = vld [vmem:[#allocation13 + $0x148] sm:$0xff] }
0x138a   : > { %v3013_v53 = vpop.permute.xlu1 %3012 }
0x138b   : > { %10165 = vmatpush3.msra.mxu0 %v3013_v53  ;;  %v3244_v53 = vld [vmem:[#allocation13 + $0x158] sm:$0xff] }
0x138c   : > { %3376 = vmatprep.subr.mxu0 %v3250_v5  ;;  %v3245_v5 = vld [vmem:[#allocation13 + $0x160] sm:$0xff] }
0x1394   : > { %v10536_v54 = vpop.eup %10535 }
0x1395   : > { %v3011_v55 = vmul.f32 %v10536_v54, %v10534_v47  ;;  %v3208_v47 = vld [vmem:[#allocation13 + $0x38] sm:$0xff]  ;;  %v3241_v54 = vld [vmem:[#allocation13 + $0x140] sm:$0xff] }
0x1397   : > { %10167 = vmatmul.mubr.msk.f32.vlgmr.msra.gmra.mxu0 %vm926_vm2, %v3011_v55  ;;  %v3243_v55 = vld [vmem:[#allocation13 + $0x150] sm:$0xff] }
0x1398   : > { %3416 = vmatprep.mubr.f32.mxu0 %v10952_v0  ;;  %3377 = vmatpush1.msra.mxu0 %v3249_v7  ;;  %v3230_v7 = vld [vmem:[#allocation13 + $0xe8] sm:$0xff] }
0x1399   : > { %3378 = vmatprep.subr.mxu0 %v3234_v10  ;;  %v3229_v10 = vld [vmem:[#allocation13 + $0xe0] sm:$0xff] }
0x139a   : > { %3379 = vmatpush1.msra.mxu0 %v3233_v11  ;;  %v3214_v11 = vld [vmem:[#allocation13 + $0x68] sm:$0xff] }
0x139b   : > { %3380 = vmatprep.subr.mxu0 %v3218_v13  ;;  %v3213_v13 = vld [vmem:[#allocation13 + $0x60] sm:$0xff] }
0x139c   : > { %3381 = vmatpush1.msra.mxu0 %v3217_v15  ;;  %v3967_v15 = vld [vmem:[#allocation16 + $0xf8] sm:$0xff] }
0x139d   : > { %3382 = vmatprep.subr.mxu0 %v3202_v20  ;;  %v3951_v20 = vld [vmem:[#allocation16 + $0x78] sm:$0xff] }
0x139e   : > { %3383 = vmatpush1.msra.mxu0 %v3201_v23  ;;  %v3966_v23 = vld [vmem:[#allocation16 + $0xf0] sm:$0xff] }
0x139f   : > { %3518 = vmatprep.subr.mxu0 %v3254_v26  ;;  %v3950_v26 = vld [vmem:[#allocation16 + $0x70] sm:$0xff] }
0x1457   : > { %v3084_v56 = vpop.f32.mrf.mxu0 }
0x1458   : > { %10172 = vmatmul.mubr.msk.f32.vlgmr.msra.gmra.mxu1 %vm926_vm2, %v3084_v56  ;;  %v3226_v56 = vld [vmem:[#allocation13 + $0xc8] sm:$0xff] }
0x1459   : > { %v10168_v34 = vpop.f32.mrf.mxu0  ;;  %3487 = vmatprep.mubr.f32.mxu1 %v10952_v0  ;;  %3448 = vmatpush1.msra.mxu1 %v3251_v8  ;;  %v3232_v8 = vld [vmem:[#allocation13 + $0xf8] sm:$0xff] }
0x145a   : > { %v3228_v34 = vld [vmem:[#allocation13 + $0xd8] sm:$0xff] }
0x1518   : > { %v3157_v58 = vpop.f32.mrf.mxu1 }
0x1519   : > { %v3161_v59 = vadd.f32 %v3157_v58, %v2919_v50  ;;  %v3260_v50 = vld [vmem:[#allocation13 + $0x1d8] sm:$0xff]  ;;  %v3227_v58 = vld [vmem:[#allocation13 + $0xd0] sm:$0xff] }
0x151a   : > { %v10173_v60 = vpop.f32.mrf.mxu1 }
0x151b   : > { %v3168_v61 = vadd.f32 %v9183_v57, %v3161_v59  ;;  %v3225_v57 = vld [vmem:[#allocation13 + $0xc0] sm:$0xff]  ;;  %v3210_v59 = vld [vmem:[#allocation13 + $0x48] sm:$0xff]  ;;  %v3212_v60 = vld [vmem:[#allocation13 + $0x58] sm:$0xff] }
0x151d   : > { %v3169_v62 = vadd.f32 %v3168_v61, %v11468_v16  ;;  %v3236_v16 = vld [vmem:[#allocation13 + $0x118] sm:$0xff]  ;;  %v3209_v61 = vld [vmem:[#allocation13 + $0x40] sm:$0xff] }
0x151e   : > { %3449 = vmatprep.subr.mxu1 %v3236_v16  ;;  %v3231_v16 = vld [vmem:[#allocation13 + $0xf0] sm:$0xff] }
0x151f   : > { %v3174_v63 = vsel %vm700_vm1, %v3169_v62, 0.0  ;;  %3450 = vmatpush1.msra.mxu1 %v3235_v12  ;;  %v3216_v12 = vld [vmem:[#allocation13 + $0x78] sm:$0xff] }
0x1520   : > { %3175 = vadd.xlane.f32.xlu1 %v3174_v63  ;;  %3451 = vmatprep.subr.mxu1 %v3220_v14  ;;  %v3262_v63 = vld [vmem:[#allocation13 + $0x1e8] sm:$0xff]  ;;  %v3215_v14 = vld [vmem:[#allocation13 + $0x70] sm:$0xff] }
0x1521   : > { %3452 = vmatpush1.msra.mxu1 %v3219_v17  ;;  %v3999_v17 = vld [vmem:[#allocation16 + $0x1f8] sm:$0xff] }
0x1522   : > { %3453 = vmatprep.subr.mxu1 %v3204_v22  ;;  %v3983_v22 = vld [vmem:[#allocation16 + $0x178] sm:$0xff] }
0x1523   : > { %3454 = vmatpush1.msra.mxu1 %v3203_v25  ;;  %v3998_v25 = vld [vmem:[#allocation16 + $0x1f0] sm:$0xff] }
0x1524   : > { %3589 = vmatprep.subr.mxu1 %v3256_v27  ;;  %v3982_v27 = vld [vmem:[#allocation16 + $0x170] sm:$0xff] }
0x15a9   : > { %v3176_v9 = vpop.xlane.xlu1 %3175 }
0x15aa   : > { %v3177_v1 = vmul.f32 0.03125, %v3176_v9  ;;  %v3264_v9 = vld [vmem:[#allocation13 + $0x1f8] sm:$0xff] }
0x15ac   : > { %v3178_v2 = vsub.f32 %v3169_v62, %v3177_v1  ;;  %v3211_v62 = vld [vmem:[#allocation13 + $0x50] sm:$0xff]  ;;  %v3261_v1 = vld [vmem:[#allocation13 + $0x1e0] sm:$0xff] }
0x15ae   : > { %v3179_v3 = vmul.f32 %v3178_v2, %v3178_v2 }
0x15b0   : > { %v3180_v4 = vsel %vm700_vm1, %v3179_v3, 0.0  ;;  %v3246_v3 = vld [vmem:[#allocation13 + $0x168] sm:$0xff] }
0x15b1   : > { %3181 = vadd.xlane.f32.xlu0 %v3180_v4  ;;  %v3248_v4 = vld [vmem:[#allocation13 + $0x178] sm:$0xff] }
0x163a   : > { %v3182_v18 = vpop.xlane.xlu0 %3181 }
0x163b   : > { %v3183_v19 = vmul.f32 0.03125, %v3182_v18  ;;  %v3965_v18 = vld [vmem:[#allocation16 + $0xe8] sm:$0xff] }
0x163d   : > { %v3184_v28 = vadd.f32 1e-05, %v3183_v19  ;;  %v3997_v19 = vld [vmem:[#allocation16 + $0x1e8] sm:$0xff] }
0x163f   : > { %10537 = vrsqrt.f32 %v3184_v28  ;;  %v3949_v28 = vld [vmem:[#allocation16 + $0x68] sm:$0xff] }
0x164c   : > { %v10538_v30 = vpop.eup %10537 }
0x164d   : > { %v3186_v33 = vmul.f32 %v10538_v30, %v3178_v2  ;;  %v3263_v2 = vld [vmem:[#allocation13 + $0x1f0] sm:$0xff]  ;;  %v3981_v30 = vld [vmem:[#allocation16 + $0x168] sm:$0xff] }
0x164f   : > { %v3193_v29 = vmul.f32 %v9186_v32, %v3186_v33  ;;  %v3964_v32 = vld [vmem:[#allocation16 + $0xe0] sm:$0xff] }
0x1650   : > { %v3996_v33 = vld [vmem:[#allocation16 + $0x1e0] sm:$0xff] }
0x1651   : > { %v11586_v35 = vadd.f32 %v9187_v21, %v3193_v29  ;;  %v3948_v21 = vld [vmem:[#allocation16 + $0x60] sm:$0xff] }
0x1652   : > { %v3980_v29 = vld [vmem:[#allocation16 + $0x160] sm:$0xff] }
0x1653   : > { %9188 = vmatmul.mubr.msk.f32.vlgmr.msra.gmra.mxu0 %vm700_vm1, %v11586_v35  ;;  %9189 = vmatmul.mubr.msk.f32.vlgmr.msra.gmra.mxu1 %vm700_vm1, %v11586_v35 }
0x1654   : > { %3519 = vmatpush1.msra.mxu0 %v3253_v36  ;;  %3590 = vmatpush1.msra.mxu1 %v3255_v37  ;;  %v3963_v36 = vld [vmem:[#allocation16 + $0xd8] sm:$0xff] }
0x1655   : > { %3520 = vmatprep.subr.mxu0 %v3238_v38  ;;  %3591 = vmatprep.subr.mxu1 %v3240_v39  ;;  %v3995_v37 = vld [vmem:[#allocation16 + $0x1d8] sm:$0xff] }
0x1656   : > { %3521 = vmatpush1.msra.mxu0 %v3237_v41  ;;  %3592 = vmatpush1.msra.mxu1 %v3239_v42  ;;  %v3947_v38 = vld [vmem:[#allocation16 + $0x58] sm:$0xff]  ;;  %v3962_v41 = vld [vmem:[#allocation16 + $0xd0] sm:$0xff] }
0x1657   : > { %3522 = vmatprep.subr.mxu0 %v3222_v43  ;;  %3593 = vmatprep.subr.mxu1 %v3224_v44  ;;  %v3979_v39 = vld [vmem:[#allocation16 + $0x158] sm:$0xff]  ;;  %v3994_v42 = vld [vmem:[#allocation16 + $0x1d0] sm:$0xff] }
0x1658   : > { %3523 = vmatpush1.msra.mxu0 %v3221_v45  ;;  %3594 = vmatpush1.msra.mxu1 %v3223_v31  ;;  %v3946_v43 = vld [vmem:[#allocation16 + $0x50] sm:$0xff]  ;;  %v3961_v45 = vld [vmem:[#allocation16 + $0xc8] sm:$0xff] }
0x1659   : > { %3524 = vmatprep.subr.mxu0 %v3206_v46  ;;  %3595 = vmatprep.subr.mxu1 %v3208_v47  ;;  %v3978_v44 = vld [vmem:[#allocation16 + $0x150] sm:$0xff]  ;;  %v3993_v31 = vld [vmem:[#allocation16 + $0x1c8] sm:$0xff] }
0x165a   : > { %3525 = vmatpush1.msra.mxu0 %v3205_v48  ;;  %3558 = vmatprep.mubr.f32.mxu0 %v10952_v0  ;;  %v3945_v46 = vld [vmem:[#allocation16 + $0x48] sm:$0xff]  ;;  %v3960_v48 = vld [vmem:[#allocation16 + $0xc0] sm:$0xff] }
0x165b   : > { %3596 = vmatpush1.msra.mxu1 %v3207_v24  ;;  %3629 = vmatprep.mubr.f32.mxu1 %v10952_v0  ;;  %v3977_v47 = vld [vmem:[#allocation16 + $0x148] sm:$0xff]  ;;  %v3992_v24 = vld [vmem:[#allocation16 + $0x1c0] sm:$0xff] }
0x165c   : > { %9190 = vmatmul.mubr.msk.f32.vlgmr.msra.gmra.mxu0 %vm700_vm1, %v11586_v35  ;;  %9191 = vmatmul.mubr.msk.f32.vlgmr.msra.gmra.mxu1 %vm700_vm1, %v11586_v35 }
0x165d   : > { %3660 = vmatprep.subr.mxu0 %v3258_v49  ;;  %3731 = vmatprep.subr.mxu1 %v3260_v50  ;;  %v3944_v49 = vld [vmem:[#allocation16 + $0x40] sm:$0xff] }
0x165e   : > { %3661 = vmatpush1.msra.mxu0 %v3257_v51  ;;  %3732 = vmatpush1.msra.mxu1 %v3259_v52  ;;  %v3976_v50 = vld [vmem:[#allocation16 + $0x140] sm:$0xff]  ;;  %v3959_v51 = vld [vmem:[#allocation16 + $0xb8] sm:$0xff] }
0x165f   : > { %3662 = vmatprep.subr.mxu0 %v3242_v40  ;;  %3733 = vmatprep.subr.mxu1 %v3244_v53  ;;  %v3991_v52 = vld [vmem:[#allocation16 + $0x1b8] sm:$0xff] }
0x1660   : > { %3663 = vmatpush1.msra.mxu0 %v3241_v54  ;;  %3734 = vmatpush1.msra.mxu1 %v3243_v55  ;;  %v3943_v40 = vld [vmem:[#allocation16 + $0x38] sm:$0xff]  ;;  %v3958_v54 = vld [vmem:[#allocation16 + $0xb0] sm:$0xff] }
0x1661   : > { %3664 = vmatprep.subr.mxu0 %v3226_v56  ;;  %3735 = vmatprep.subr.mxu1 %v3228_v34  ;;  %v3975_v53 = vld [vmem:[#allocation16 + $0x138] sm:$0xff]  ;;  %v3990_v55 = vld [vmem:[#allocation16 + $0x1b0] sm:$0xff] }
0x1662   : > { %3665 = vmatpush1.msra.mxu0 %v3225_v57  ;;  %3736 = vmatpush1.msra.mxu1 %v3227_v58  ;;  %v3942_v56 = vld [vmem:[#allocation16 + $0x30] sm:$0xff]  ;;  %v3957_v57 = vld [vmem:[#allocation16 + $0xa8] sm:$0xff] }
0x1663   : > { %3666 = vmatprep.subr.mxu0 %v3210_v59  ;;  %3737 = vmatprep.subr.mxu1 %v3212_v60  ;;  %v3974_v34 = vld [vmem:[#allocation16 + $0x130] sm:$0xff]  ;;  %v3989_v58 = vld [vmem:[#allocation16 + $0x1a8] sm:$0xff] }
0x1664   : > { %3667 = vmatpush1.msra.mxu0 %v3209_v61  ;;  %3700 = vmatprep.mubr.f32.mxu0 %v10952_v0  ;;  %v3941_v59 = vld [vmem:[#allocation16 + $0x28] sm:$0xff]  ;;  %v3956_v61 = vld [vmem:[#allocation16 + $0xa0] sm:$0xff] }
0x1665   : > { %3738 = vmatpush1.msra.mxu1 %v3211_v62  ;;  %3771 = vmatprep.mubr.f32.mxu1 %v10952_v0  ;;  %v3973_v60 = vld [vmem:[#allocation16 + $0x128] sm:$0xff]  ;;  %v3988_v62 = vld [vmem:[#allocation16 + $0x1a0] sm:$0xff] }
0x1666   : > { %9192 = vmatmul.mubr.msk.f32.vlgmr.msra.gmra.mxu0 %vm700_vm1, %v11586_v35  ;;  %9193 = vmatmul.mubr.msk.f32.vlgmr.msra.gmra.mxu1 %vm700_vm1, %v11586_v35 }
0x1667   : > { %3802 = vmatprep.subr.mxu0 %v3262_v63  ;;  %3873 = vmatprep.subr.mxu1 %v3264_v9  ;;  %v3940_v63 = vld [vmem:[#allocation16 + $0x20] sm:$0xff] }
0x1668   : > { %3803 = vmatpush1.msra.mxu0 %v3261_v1  ;;  %3874 = vmatpush1.msra.mxu1 %v3263_v2  ;;  %v3972_v9 = vld [vmem:[#allocation16 + $0x120] sm:$0xff]  ;;  %v3955_v1 = vld [vmem:[#allocation16 + $0x98] sm:$0xff] }
0x1669   : > { %3804 = vmatprep.subr.mxu0 %v3246_v3  ;;  %3875 = vmatprep.subr.mxu1 %v3248_v4  ;;  %v3987_v2 = vld [vmem:[#allocation16 + $0x198] sm:$0xff] }
0x166a   : > { %3805 = vmatpush1.msra.mxu0 %v3245_v5  ;;  %3876 = vmatpush1.msra.mxu1 %v3247_v6  ;;  %v3939_v3 = vld [vmem:[#allocation16 + $0x18] sm:$0xff]  ;;  %v3954_v5 = vld [vmem:[#allocation16 + $0x90] sm:$0xff] }
0x166b   : > { %3806 = vmatprep.subr.mxu0 %v3230_v7  ;;  %3877 = vmatprep.subr.mxu1 %v3232_v8  ;;  %v3971_v4 = vld [vmem:[#allocation16 + $0x118] sm:$0xff]  ;;  %v3986_v6 = vld [vmem:[#allocation16 + $0x190] sm:$0xff] }
0x166c   : > { %3807 = vmatpush1.msra.mxu0 %v3229_v10  ;;  %3878 = vmatpush1.msra.mxu1 %v3231_v16  ;;  %v3938_v7 = vld [vmem:[#allocation16 + $0x10] sm:$0xff]  ;;  %v3953_v10 = vld [vmem:[#allocation16 + $0x88] sm:$0xff] }
0x166d   : > { %3808 = vmatprep.subr.mxu0 %v3214_v11  ;;  %3879 = vmatprep.subr.mxu1 %v3216_v12  ;;  %v3970_v8 = vld [vmem:[#allocation16 + $0x110] sm:$0xff]  ;;  %v3985_v16 = vld [vmem:[#allocation16 + $0x188] sm:$0xff] }
0x166e   : > { %3809 = vmatpush1.msra.mxu0 %v3213_v13  ;;  %3842 = vmatprep.mubr.f32.mxu0 %v10952_v0  ;;  %v3937_v11 = vld [vmem:[#allocation16 + $0x8] sm:$0xff]  ;;  %v3952_v13 = vld [vmem:[#allocation16 + $0x80] sm:$0xff] }
0x166f   : > { %3880 = vmatpush1.msra.mxu1 %v3215_v14  ;;  %3913 = vmatprep.mubr.f32.mxu1 %v10952_v0  ;;  %v3969_v12 = vld [vmem:[#allocation16 + $0x108] sm:$0xff]  ;;  %v3984_v14 = vld [vmem:[#allocation16 + $0x180] sm:$0xff] }
0x1670   : > { %9194 = vmatmul.mubr.msk.f32.vlgmr.msra.gmra.mxu0 %vm700_vm1, %v11586_v35  ;;  %9195 = vmatmul.mubr.msk.f32.vlgmr.msra.gmra.mxu1 %vm700_vm1, %v11586_v35 }
0x1671   : > { %9350 = vmatprep.subr.mxu0 %v3967_v15  ;;  %9385 = vmatprep.subr.mxu1 %v3999_v17  ;;  %v3936_v15 = vld [vmem:[#allocation16] sm:$0xff] }
0x1672   : > { %9351 = vmatpush3.msra.mxu0 %v3951_v20  ;;  %9386 = vmatpush3.msra.mxu1 %v3983_v22  ;;  %v3968_v17 = vld [vmem:[#allocation16 + $0x100] sm:$0xff]  ;;  %v4031_v20 = vld [vmem:[#allocation16 + $0x2f8] sm:$0xff] }
0x1673   : > { %9352 = vmatprep.subr.mxu0 %v3966_v23  ;;  %9387 = vmatprep.subr.mxu1 %v3998_v25  ;;  %v4063_v22 = vld [vmem:[#allocation16 + $0x3f8] sm:$0xff]  ;;  %v3269_v23 = vlaneseq }
0x1674   : > { %9353 = vmatpush3.msra.mxu0 %v3950_v26  ;;  %9388 = vmatpush3.msra.mxu1 %v3982_v27 }
0x1675   : > { %9354 = vmatprep.subr.mxu0 %v3965_v18  ;;  %9389 = vmatprep.subr.mxu1 %v3997_v19  ;;  %v11610_v25 = vshrl.u32 %v3269_v23, 7  ;;  %v11618_v18 = vld [vmem:[#allocation14] sm:$0xff] }
0x1676   : > { %9355 = vmatpush3.msra.mxu0 %v3949_v28  ;;  %9390 = vmatpush3.msra.mxu1 %v3981_v30  ;;  %v4056_v23 = vld [vmem:[#allocation16 + $0x3c0] sm:$0xff] }
0x1677   : > { %9356 = vmatprep.subr.mxu0 %v3964_v32  ;;  %9391 = vmatprep.subr.mxu1 %v3996_v33  ;;  %v11613_v26 = vsub.s32 0, %v11610_v25  ;;  %v11616_v27 = vsub.s32 2, %v11610_v25  ;;  %v11621_v19 = vsub.s32 1, %v11610_v25  ;;  %v11624_v28 = vsub.s32 3, %v11610_v25 }
0x1678   : > { %9357 = vmatpush3.msra.mxu0 %v3948_v21  ;;  %9392 = vmatpush3.msra.mxu1 %v3980_v29 }
0x1679   : > { %9358 = vmatprep.subr.mxu0 %v3963_v36  ;;  %9393 = vmatprep.subr.mxu1 %v3995_v37  ;;  %v3272_v30 = vrot.slane %v11618_v18, %v11613_v26  ;;  %v3280_v32 = vrot.slane %v11618_v18, %v11616_v27  ;;  %v3276_v33 = vrot.slane %v11618_v18, %v11621_v19 }
0x167a   : > { %9359 = vmatpush3.msra.mxu0 %v3947_v38  ;;  %9394 = vmatpush3.msra.mxu1 %v3979_v39  ;;  %v3284_v21 = vrot.slane %v11618_v18, %v11624_v28 }
0x167b   : > { %9360 = vmatprep.subr.mxu0 %v3962_v41  ;;  %9395 = vmatprep.subr.mxu1 %v3994_v42 }
0x167c   : > { %9361 = vmatpush3.msra.mxu0 %v3946_v43  ;;  %9396 = vmatpush3.msra.mxu1 %v3978_v44  ;;  %v11635_v44 = vsub.s32 5, %v11610_v25 }
0x167d   : > { %9362 = vmatprep.subr.mxu0 %v3961_v45  ;;  %9397 = vmatprep.subr.mxu1 %v3993_v31  ;;  %v11638_v45 = vsub.s32 7, %v11610_v25 }
0x167e   : > { %9363 = vmatpush3.msra.mxu0 %v3945_v46  ;;  %9398 = vmatpush3.msra.mxu1 %v3977_v47 }
0x167f   : > { %9364 = vmatprep.subr.mxu0 %v3960_v48  ;;  %9399 = vmatprep.subr.mxu1 %v3992_v24  ;;  %v4015_v24 = vld [vmem:[#allocation16 + $0x278] sm:$0xff] }
0x1680   : > { %9365 = vmatpush3.msra.mxu0 %v3944_v49  ;;  %9400 = vmatpush3.msra.mxu1 %v3976_v50  ;;  %v4047_v49 = vld [vmem:[#allocation16 + $0x378] sm:$0xff]  ;;  %v4030_v50 = vld [vmem:[#allocation16 + $0x2f0] sm:$0xff] }
0x1681   : > { %9366 = vmatprep.subr.mxu0 %v3959_v51  ;;  %9401 = vmatprep.subr.mxu1 %v3991_v52  ;;  %v4062_v51 = vld [vmem:[#allocation16 + $0x3f0] sm:$0xff]  ;;  %v3292_v52 = vrot.slane %v11618_v18, %v11635_v44 }
0x1682   : > { %9367 = vmatpush3.msra.mxu0 %v3943_v40  ;;  %9402 = vmatpush3.msra.mxu1 %v3975_v53  ;;  %v3300_v40 = vrot.slane %v11618_v18, %v11638_v45  ;;  %v4014_v53 = vld [vmem:[#allocation16 + $0x270] sm:$0xff] }
0x1683   : > { %9368 = vmatprep.subr.mxu0 %v3958_v54  ;;  %9403 = vmatprep.subr.mxu1 %v3990_v55  ;;  %v4046_v54 = vld [vmem:[#allocation16 + $0x370] sm:$0xff] }
0x1684   : > { %9369 = vmatpush3.msra.mxu0 %v3942_v56  ;;  %9404 = vmatpush3.msra.mxu1 %v3974_v34  ;;  %v4029_v34 = vld [vmem:[#allocation16 + $0x2e8] sm:$0xff] }
0x1685   : > { %9370 = vmatprep.subr.mxu0 %v3957_v57  ;;  %9405 = vmatprep.subr.mxu1 %v3989_v58  ;;  %v4061_v57 = vld [vmem:[#allocation16 + $0x3e8] sm:$0xff] }
0x1686   : > { %9371 = vmatpush3.msra.mxu0 %v3941_v59  ;;  %9406 = vmatpush3.msra.mxu1 %v3973_v60  ;;  %v4013_v58 = vld [vmem:[#allocation16 + $0x268] sm:$0xff] }
0x1687   : > { %9372 = vmatprep.subr.mxu0 %v3956_v61  ;;  %9407 = vmatprep.subr.mxu1 %v3988_v62  ;;  %v4045_v59 = vld [vmem:[#allocation16 + $0x368] sm:$0xff]  ;;  %v4028_v62 = vld [vmem:[#allocation16 + $0x2e0] sm:$0xff] }
0x1688   : > { %9373 = vmatpush3.msra.mxu0 %v3940_v63  ;;  %9408 = vmatpush3.msra.mxu1 %v3972_v9  ;;  %v4060_v63 = vld [vmem:[#allocation16 + $0x3e0] sm:$0xff] }
0x1689   : > { %9374 = vmatprep.subr.mxu0 %v3955_v1  ;;  %9409 = vmatprep.subr.mxu1 %v3987_v2  ;;  %v4012_v2 = vld [vmem:[#allocation16 + $0x260] sm:$0xff] }
0x168a   : > { %9375 = vmatpush3.msra.mxu0 %v3939_v3  ;;  %9410 = vmatpush3.msra.mxu1 %v3971_v4  ;;  %v4044_v3 = vld [vmem:[#allocation16 + $0x360] sm:$0xff] }
0x168b   : > { %9376 = vmatprep.subr.mxu0 %v3954_v5  ;;  %9411 = vmatprep.subr.mxu1 %v3986_v6  ;;  %v4027_v6 = vld [vmem:[#allocation16 + $0x2d8] sm:$0xff] }
0x168c   : > { %9377 = vmatpush3.msra.mxu0 %v3938_v7  ;;  %9412 = vmatpush3.msra.mxu1 %v3970_v8  ;;  %v4059_v7 = vld [vmem:[#allocation16 + $0x3d8] sm:$0xff] }
0x168d   : > { %9378 = vmatprep.subr.mxu0 %v3953_v10  ;;  %9413 = vmatprep.subr.mxu1 %v3985_v16  ;;  %v4011_v8 = vld [vmem:[#allocation16 + $0x258] sm:$0xff]  ;;  %v4026_v16 = vld [vmem:[#allocation16 + $0x2d0] sm:$0xff] }
0x168e   : > { %9379 = vmatpush3.msra.mxu0 %v3937_v11  ;;  %9414 = vmatpush3.msra.mxu1 %v3969_v12  ;;  %v4043_v10 = vld [vmem:[#allocation16 + $0x358] sm:$0xff]  ;;  %v4058_v11 = vld [vmem:[#allocation16 + $0x3d0] sm:$0xff] }
0x168f   : > { %9380 = vmatprep.subr.mxu0 %v3952_v13  ;;  %9415 = vmatprep.subr.mxu1 %v3984_v14  ;;  %v4010_v12 = vld [vmem:[#allocation16 + $0x250] sm:$0xff]  ;;  %v4025_v14 = vld [vmem:[#allocation16 + $0x2c8] sm:$0xff] }
0x1690   : > { %9381 = vmatpush3.msra.mxu0 %v3936_v15  ;;  %9416 = vmatpush3.msra.mxu1 %v3968_v17  ;;  %v4042_v13 = vld [vmem:[#allocation16 + $0x350] sm:$0xff]  ;;  %v4057_v15 = vld [vmem:[#allocation16 + $0x3c8] sm:$0xff] }
0x1691   : > { %9420 = vmatprep.subr.mxu0 %v4031_v20  ;;  %9455 = vmatprep.subr.mxu1 %v4063_v22  ;;  %v4009_v17 = vld [vmem:[#allocation16 + $0x248] sm:$0xff]  ;;  %v4024_v22 = vld [vmem:[#allocation16 + $0x2c0] sm:$0xff] }
0x1692   : > { %v4041_v20 = vld [vmem:[#allocation16 + $0x348] sm:$0xff] }
0x1713   : > { %v3418_v29 = vpop.f32.mrf.mxu0  ;;  %v3489_v36 = vpop.f32.mrf.mxu1 }
0x1714   : > { %v3419_v37 = vadd.f32 %v3418_v29, %v3272_v30  ;;  %v3490_v38 = vadd.f32 %v3489_v36, %v3280_v32  ;;  %v4008_v30 = vld [vmem:[#allocation16 + $0x240] sm:$0xff]  ;;  %v4007_v29 = vld [vmem:[#allocation16 + $0x238] sm:$0xff] }
0x1715   : > { %v3420_v39 = vpop.f32.mrf.mxu0  ;;  %v3491_v41 = vpop.f32.mrf.mxu1  ;;  %v4040_v32 = vld [vmem:[#allocation16 + $0x340] sm:$0xff]  ;;  %v4039_v36 = vld [vmem:[#allocation16 + $0x338] sm:$0xff] }
0x1716   : > { %v3421_v42 = vadd.f32 %v3420_v39, %v3276_v33  ;;  %v3492_v43 = vadd.f32 %v3491_v41, %v3284_v21  ;;  %v3920_v47 = vmax.f32 %v3419_v37, 0.0  ;;  %v3922_v48 = vmax.f32 %v3490_v38, 0.0  ;;  %v4023_v33 = vld [vmem:[#allocation16 + $0x2b8] sm:$0xff]  ;;  %v4022_v37 = vld [vmem:[#allocation16 + $0x2b0] sm:$0xff] }
0x1717   : > { %v4055_v21 = vld [vmem:[#allocation16 + $0x3b8] sm:$0xff]  ;;  %v4054_v38 = vld [vmem:[#allocation16 + $0x3b0] sm:$0xff] }
0x1718   : > { %v3921_v31 = vmax.f32 %v3421_v42, 0.0  ;;  %v3923_v46 = vmax.f32 %v3492_v43, 0.0  ;;  %v4006_v39 = vld [vmem:[#allocation16 + $0x230] sm:$0xff]  ;;  %v4021_v42 = vld [vmem:[#allocation16 + $0x2a8] sm:$0xff] }
0x1719   : > { %v4038_v41 = vld [vmem:[#allocation16 + $0x330] sm:$0xff]  ;;  %v4053_v43 = vld [vmem:[#allocation16 + $0x3a8] sm:$0xff] }
0x171a   : > { %4263 = vmatprep.mubr.f32.mxu0 %v3921_v31  ;;  %4333 = vmatprep.mubr.f32.mxu1 %v3923_v46  ;;  %v11649_v31 = vsub.s32 4, %v11610_v25  ;;  %v11652_v46 = vsub.s32 6, %v11610_v25 }
0x171b   : > { %4264 = vmatmul.mubr.f32.vlgmr.msra.gmra.mxu0 %v3920_v47  ;;  %4334 = vmatmul.mubr.f32.vlgmr.msra.gmra.mxu1 %v3922_v48  ;;  %v4005_v47 = vld [vmem:[#allocation16 + $0x228] sm:$0xff] }
0x171c   : > { %v11644_v55 = vpop.f32.mrf.mxu0  ;;  %v11646_v56 = vpop.f32.mrf.mxu1  ;;  %9421 = vmatpush3.msra.mxu0 %v4015_v24  ;;  %9456 = vmatpush3.msra.mxu1 %v4047_v49  ;;  %v4037_v48 = vld [vmem:[#allocation16 + $0x328] sm:$0xff]  ;;  %v4020_v24 = vld [vmem:[#allocation16 + $0x2a0] sm:$0xff]  ;;  %v3288_v25 = vrot.slane %v11618_v18, %v11649_v31 }
0x171d   : > { %9422 = vmatprep.subr.mxu0 %v4030_v50  ;;  %9457 = vmatprep.subr.mxu1 %v4062_v51  ;;  %v4052_v49 = vld [vmem:[#allocation16 + $0x3a0] sm:$0xff] }
0x171e   : > { %v3562_v60 = vpop.f32.mrf.mxu0  ;;  %v3633_v61 = vpop.f32.mrf.mxu1  ;;  %9423 = vmatpush3.msra.mxu0 %v4014_v53  ;;  %9458 = vmatpush3.msra.mxu1 %v4046_v54  ;;  %v4004_v50 = vld [vmem:[#allocation16 + $0x220] sm:$0xff]  ;;  %v4051_v53 = vld [vmem:[#allocation16 + $0x398] sm:$0xff]  ;;  %v3296_v54 = vrot.slane %v11618_v18, %v11652_v46 }
0x171f   : > { %v3563_v9 = vadd.f32 %v3562_v60, %v3292_v52  ;;  %v3634_v1 = vadd.f32 %v3633_v61, %v3300_v40  ;;  %9424 = vmatprep.subr.mxu0 %v4029_v34  ;;  %9459 = vmatprep.subr.mxu1 %v4061_v57  ;;  %v4036_v51 = vld [vmem:[#allocation16 + $0x320] sm:$0xff]  ;;  %v4019_v40 = vld [vmem:[#allocation16 + $0x298] sm:$0xff]  ;;  %v4018_v60 = vld [vmem:[#allocation16 + $0x290] sm:$0xff] }
0x1720   : > { %9425 = vmatpush3.msra.mxu0 %v4013_v58  ;;  %9460 = vmatpush3.msra.mxu1 %v4045_v59  ;;  %v4003_v57 = vld [vmem:[#allocation16 + $0x218] sm:$0xff]  ;;  %v11662_v59 = vld [vmem:[#allocation14 + $0x8] sm:$0xff]  ;;  %v4050_v61 = vld [vmem:[#allocation16 + $0x390] sm:$0xff] }
0x1721   : > { %v3925_v4 = vmax.f32 %v3563_v9, 0.0  ;;  %v3927_v5 = vmax.f32 %v3634_v1, 0.0  ;;  %9426 = vmatprep.subr.mxu0 %v4028_v62  ;;  %9461 = vmatprep.subr.mxu1 %v4060_v63  ;;  %v4035_v58 = vld [vmem:[#allocation16 + $0x318] sm:$0xff]  ;;  %v3308_v62 = vrot.slane %v11662_v59, %v11621_v19  ;;  %v4002_v63 = vld [vmem:[#allocation16 + $0x210] sm:$0xff]  ;;  %v3316_v1 = vrot.slane %v11662_v59, %v11624_v28 }
0x1722   : > { %9427 = vmatpush3.msra.mxu0 %v4012_v2  ;;  %9462 = vmatpush3.msra.mxu1 %v4044_v3  ;;  %v4034_v9 = vld [vmem:[#allocation16 + $0x310] sm:$0xff]  ;;  %v4017_v2 = vld [vmem:[#allocation16 + $0x288] sm:$0xff] }
0x1723   : > { %4403 = vmatprep.mubr.f32.mxu0 %v3925_v4  ;;  %4473 = vmatprep.mubr.f32.mxu1 %v3927_v5  ;;  %v4049_v3 = vld [vmem:[#allocation16 + $0x388] sm:$0xff]  ;;  %v3561_v4 = vadd.f32 %v11644_v55, %v3288_v25  ;;  %v3632_v5 = vadd.f32 %v11646_v56, %v3296_v54  ;;  %v4095_v56 = vld [vmem:[#allocation16 + $0x4f8] sm:$0xff]  ;;  %v4106_v25 = vld [vmem:[#allocation16 + $0x550] sm:$0xff] }
0x1724   : > { %9428 = vmatprep.subr.mxu0 %v4027_v6  ;;  %9463 = vmatprep.subr.mxu1 %v4059_v7  ;;  %v4001_v7 = vld [vmem:[#allocation16 + $0x208] sm:$0xff] }
0x1725   : > { %9429 = vmatpush3.msra.mxu0 %v4011_v8  ;;  %9464 = vmatpush3.msra.mxu1 %v4043_v10  ;;  %v4033_v8 = vld [vmem:[#allocation16 + $0x308] sm:$0xff]  ;;  %v4016_v10 = vld [vmem:[#allocation16 + $0x280] sm:$0xff]  ;;  %v3924_v55 = vmax.f32 %v3561_v4, 0.0  ;;  %v4086_v4 = vld [vmem:[#allocation16 + $0x4b0] sm:$0xff] }
0x1726   : > { %9430 = vmatprep.subr.mxu0 %v4026_v16  ;;  %9465 = vmatprep.subr.mxu1 %v4058_v11  ;;  %v11654_v52 = vpop.f32.mrf.mxu0  ;;  %v11660_v34 = vpop.f32.mrf.mxu1  ;;  %v4048_v16 = vld [vmem:[#allocation16 + $0x380] sm:$0xff]  ;;  %v4089_v54 = vld [vmem:[#allocation16 + $0x4c8] sm:$0xff] }
0x1727   : > { %9431 = vmatpush3.msra.mxu0 %v4010_v12  ;;  %9466 = vmatpush3.msra.mxu1 %v4042_v13  ;;  %v4000_v12 = vld [vmem:[#allocation16 + $0x200] sm:$0xff] }
0x1728   : > { %9432 = vmatprep.subr.mxu0 %v4025_v14  ;;  %9467 = vmatprep.subr.mxu1 %v4057_v15  ;;  %v3704_v18 = vpop.f32.mrf.mxu0  ;;  %v3775_v6 = vpop.f32.mrf.mxu1  ;;  %v4032_v13 = vld [vmem:[#allocation16 + $0x300] sm:$0xff]  ;;  %v3926_v15 = vmax.f32 %v3632_v5, 0.0  ;;  %v4118_v5 = vld [vmem:[#allocation16 + $0x5b0] sm:$0xff] }
0x1729   : > { %9433 = vmatpush3.msra.mxu0 %v4009_v17  ;;  %9468 = vmatpush3.msra.mxu1 %v4041_v20  ;;  %v3705_v11 = vadd.f32 %v3704_v18, %v3308_v62  ;;  %v3776_v14 = vadd.f32 %v3775_v6, %v3316_v1  ;;  %v4127_v17 = vld [vmem:[#allocation16 + $0x5f8] sm:$0xff]  ;;  %v4120_v62 = vld [vmem:[#allocation16 + $0x5c0] sm:$0xff]  ;;  %v4070_v6 = vld [vmem:[#allocation16 + $0x430] sm:$0xff] }
0x172a   : > { %9434 = vmatprep.subr.mxu0 %v4024_v22  ;;  %9469 = vmatprep.subr.mxu1 %v4056_v23  ;;  %v4079_v20 = vld [vmem:[#allocation16 + $0x478] sm:$0xff] }
0x172b   : > { %9435 = vmatpush3.msra.mxu0 %v4008_v30  ;;  %9470 = vmatpush3.msra.mxu1 %v4040_v32  ;;  %v3929_v22 = vmax.f32 %v3705_v11, 0.0  ;;  %v4111_v23 = vld [vmem:[#allocation16 + $0x578] sm:$0xff]  ;;  %v3931_v30 = vmax.f32 %v3776_v14, 0.0  ;;  %v4094_v32 = vld [vmem:[#allocation16 + $0x4f0] sm:$0xff]  ;;  %v4101_v11 = vld [vmem:[#allocation16 + $0x528] sm:$0xff] }
0x172c   : > { %9436 = vmatprep.subr.mxu0 %v4023_v33  ;;  %9471 = vmatprep.subr.mxu1 %v4055_v21  ;;  %v4126_v33 = vld [vmem:[#allocation16 + $0x5f0] sm:$0xff]  ;;  %v4087_v18 = vld [vmem:[#allocation16 + $0x4b8] sm:$0xff]  ;;  %v4068_v14 = vld [vmem:[#allocation16 + $0x420] sm:$0xff] }
0x172d   : > { %9437 = vmatpush3.msra.mxu0 %v4007_v29  ;;  %9472 = vmatpush3.msra.mxu1 %v4039_v36  ;;  %v4078_v21 = vld [vmem:[#allocation16 + $0x470] sm:$0xff]  ;;  %v4093_v36 = vld [vmem:[#allocation16 + $0x4e8] sm:$0xff]  ;;  %v4119_v1 = vld [vmem:[#allocation16 + $0x5b8] sm:$0xff] }
0x172e   : > { %9438 = vmatprep.subr.mxu0 %v4022_v37  ;;  %9473 = vmatprep.subr.mxu1 %v4054_v38  ;;  %v4110_v29 = vld [vmem:[#allocation16 + $0x570] sm:$0xff]  ;;  %v4125_v37 = vld [vmem:[#allocation16 + $0x5e8] sm:$0xff] }
0x172f   : > { %9439 = vmatpush3.msra.mxu0 %v4006_v39  ;;  %9474 = vmatpush3.msra.mxu1 %v4038_v41  ;;  %v4077_v38 = vld [vmem:[#allocation16 + $0x468] sm:$0xff]  ;;  %v4092_v41 = vld [vmem:[#allocation16 + $0x4e0] sm:$0xff] }
0x1730   : > { %9440 = vmatprep.subr.mxu0 %v4021_v42  ;;  %9475 = vmatprep.subr.mxu1 %v4053_v43  ;;  %v4109_v39 = vld [vmem:[#allocation16 + $0x568] sm:$0xff]  ;;  %v4124_v42 = vld [vmem:[#allocation16 + $0x5e0] sm:$0xff] }
0x1731   : > { %9441 = vmatpush3.msra.mxu0 %v4005_v47  ;;  %9476 = vmatpush3.msra.mxu1 %v4037_v48  ;;  %v4076_v43 = vld [vmem:[#allocation16 + $0x460] sm:$0xff]  ;;  %v4091_v48 = vld [vmem:[#allocation16 + $0x4d8] sm:$0xff] }
0x1732   : > { %9442 = vmatprep.subr.mxu0 %v4020_v24  ;;  %9477 = vmatprep.subr.mxu1 %v4052_v49  ;;  %v4108_v47 = vld [vmem:[#allocation16 + $0x560] sm:$0xff]  ;;  %v4123_v24 = vld [vmem:[#allocation16 + $0x5d8] sm:$0xff] }
0x1733   : > { %9443 = vmatpush3.msra.mxu0 %v4004_v50  ;;  %9478 = vmatpush3.msra.mxu1 %v4036_v51  ;;  %v4075_v49 = vld [vmem:[#allocation16 + $0x458] sm:$0xff]  ;;  %v4090_v51 = vld [vmem:[#allocation16 + $0x4d0] sm:$0xff] }
0x1734   : > { %9444 = vmatprep.subr.mxu0 %v4019_v40  ;;  %9479 = vmatprep.subr.mxu1 %v4051_v53  ;;  %v4107_v50 = vld [vmem:[#allocation16 + $0x558] sm:$0xff]  ;;  %v4122_v40 = vld [vmem:[#allocation16 + $0x5d0] sm:$0xff] }
0x1735   : > { %9445 = vmatpush3.msra.mxu0 %v4003_v57  ;;  %9480 = vmatpush3.msra.mxu1 %v4035_v58  ;;  %v4074_v53 = vld [vmem:[#allocation16 + $0x450] sm:$0xff]  ;;  %v4121_v57 = vld [vmem:[#allocation16 + $0x5c8] sm:$0xff] }
0x1736   : > { %9446 = vmatprep.subr.mxu0 %v4018_v60  ;;  %9481 = vmatprep.subr.mxu1 %v4050_v61  ;;  %v4073_v58 = vld [vmem:[#allocation16 + $0x448] sm:$0xff]  ;;  %v4088_v61 = vld [vmem:[#allocation16 + $0x4c0] sm:$0xff] }
0x1737   : > { %9447 = vmatpush3.msra.mxu0 %v4002_v63  ;;  %9482 = vmatpush3.msra.mxu1 %v4034_v9  ;;  %v4105_v60 = vld [vmem:[#allocation16 + $0x548] sm:$0xff]  ;;  %v4072_v63 = vld [vmem:[#allocation16 + $0x440] sm:$0xff] }
0x1738   : > { %9448 = vmatprep.subr.mxu0 %v4017_v2  ;;  %9483 = vmatprep.subr.mxu1 %v4049_v3  ;;  %v4104_v9 = vld [vmem:[#allocation16 + $0x540] sm:$0xff]  ;;  %v4071_v2 = vld [vmem:[#allocation16 + $0x438] sm:$0xff] }
0x1739   : > { %9449 = vmatpush3.msra.mxu0 %v4001_v7  ;;  %9484 = vmatpush3.msra.mxu1 %v4033_v8  ;;  %v4103_v3 = vld [vmem:[#allocation16 + $0x538] sm:$0xff]  ;;  %v4102_v7 = vld [vmem:[#allocation16 + $0x530] sm:$0xff]  ;;  %v4085_v8 = vld [vmem:[#allocation16 + $0x4a8] sm:$0xff] }
0x173a   : > { %9450 = vmatprep.subr.mxu0 %v4016_v10  ;;  %9485 = vmatprep.subr.mxu1 %v4048_v16  ;;  %v4117_v10 = vld [vmem:[#allocation16 + $0x5a8] sm:$0xff] }
0x173b   : > { %9451 = vmatpush3.msra.mxu0 %v4000_v12  ;;  %9486 = vmatpush3.msra.mxu1 %v4032_v13  ;;  %v4069_v16 = vld [vmem:[#allocation16 + $0x428] sm:$0xff]  ;;  %v4084_v12 = vld [vmem:[#allocation16 + $0x4a0] sm:$0xff] }
0x173c   : > { %4404 = vmatmul.mubr.f32.vlgmr.msra.gmra.mxu0 %v3924_v55  ;;  %4474 = vmatmul.mubr.f32.vlgmr.msra.gmra.mxu1 %v3926_v15  ;;  %v4116_v13 = vld [vmem:[#allocation16 + $0x5a0] sm:$0xff]  ;;  %v11670_v15 = vpop.f32.mrf.mxu0 }
0x173d   : > { %9490 = vmatprep.subr.mxu0 %v4095_v56  ;;  %9525 = vmatprep.subr.mxu1 %v4127_v17  ;;  %v4100_v55 = vld [vmem:[#allocation16 + $0x520] sm:$0xff]  ;;  %v4083_v56 = vld [vmem:[#allocation16 + $0x498] sm:$0xff] }
0x173e   : > { %9491 = vmatpush3.msra.mxu0 %v4079_v20  ;;  %4543 = vmatprep.mubr.f32.mxu0 %v3929_v22  ;;  %v4115_v17 = vld [vmem:[#allocation16 + $0x598] sm:$0xff]  ;;  %v3304_v20 = vrot.slane %v11662_v59, %v11613_v26  ;;  %v3312_v22 = vrot.slane %v11662_v59, %v11616_v27 }
0x173f   : > { %9526 = vmatpush3.msra.mxu1 %v4111_v23  ;;  %4613 = vmatprep.mubr.f32.mxu1 %v3931_v30  ;;  %v11676_v23 = vpop.f32.mrf.mxu1  ;;  %v4067_v30 = vld [vmem:[#allocation16 + $0x418] sm:$0xff] }
0x1740   : > { %9492 = vmatprep.subr.mxu0 %v4094_v32  ;;  %9527 = vmatprep.subr.mxu1 %v4126_v33  ;;  %v4099_v32 = vld [vmem:[#allocation16 + $0x518] sm:$0xff]  ;;  %v4082_v33 = vld [vmem:[#allocation16 + $0x490] sm:$0xff] }
0x1741   : > { %9493 = vmatpush3.msra.mxu0 %v4078_v21  ;;  %9528 = vmatpush3.msra.mxu1 %v4110_v29  ;;  %v4114_v21 = vld [vmem:[#allocation16 + $0x590] sm:$0xff]  ;;  %v3324_v29 = vrot.slane %v11662_v59, %v11635_v44 }
0x1742   : > { %9494 = vmatprep.subr.mxu0 %v4093_v36  ;;  %9529 = vmatprep.subr.mxu1 %v4125_v37  ;;  %v4066_v36 = vld [vmem:[#allocation16 + $0x410] sm:$0xff] }
0x1743   : > { %9495 = vmatpush3.msra.mxu0 %v4077_v38  ;;  %9530 = vmatpush3.msra.mxu1 %v4109_v39  ;;  %v4098_v37 = vld [vmem:[#allocation16 + $0x510] sm:$0xff]  ;;  %v3846_v38 = vpop.f32.mrf.mxu0  ;;  %v3332_v39 = vrot.slane %v11662_v59, %v11638_v45 }
0x1744   : > { %9496 = vmatprep.subr.mxu0 %v4092_v41  ;;  %9531 = vmatprep.subr.mxu1 %v4124_v42  ;;  %v4081_v41 = vld [vmem:[#allocation16 + $0x488] sm:$0xff] }
0x1745   : > { %9497 = vmatpush3.msra.mxu0 %v4076_v43  ;;  %9532 = vmatpush3.msra.mxu1 %v4108_v47  ;;  %v4113_v42 = vld [vmem:[#allocation16 + $0x588] sm:$0xff]  ;;  %v3703_v43 = vadd.f32 %v11654_v52, %v3304_v20  ;;  %v3774_v47 = vadd.f32 %v11660_v34, %v3312_v22  ;;  %v4159_v34 = vld [vmem:[#allocation16 + $0x6f8] sm:$0xff]  ;;  %v4170_v20 = vld [vmem:[#allocation16 + $0x750] sm:$0xff] }
0x1746   : > { %9498 = vmatprep.subr.mxu0 %v4091_v48  ;;  %9533 = vmatprep.subr.mxu1 %v4123_v24  ;;  %v3917_v48 = vpop.f32.mrf.mxu1  ;;  %v4065_v24 = vld [vmem:[#allocation16 + $0x408] sm:$0xff] }
0x1747   : > { %9499 = vmatpush3.msra.mxu0 %v4075_v49  ;;  %9534 = vmatpush3.msra.mxu1 %v4107_v50  ;;  %v4097_v49 = vld [vmem:[#allocation16 + $0x508] sm:$0xff]  ;;  %v4080_v50 = vld [vmem:[#allocation16 + $0x480] sm:$0xff]  ;;  %v3928_v52 = vmax.f32 %v3703_v43, 0.0  ;;  %v4150_v43 = vld [vmem:[#allocation16 + $0x6b0] sm:$0xff] }
0x1748   : > { %9500 = vmatprep.subr.mxu0 %v4090_v51  ;;  %9535 = vmatprep.subr.mxu1 %v4122_v40  ;;  %v4112_v51 = vld [vmem:[#allocation16 + $0x580] sm:$0xff]  ;;  %v3847_v40 = vadd.f32 %v3846_v38, %v3324_v29  ;;  %v4153_v22 = vld [vmem:[#allocation16 + $0x6c8] sm:$0xff]  ;;  %v4151_v38 = vld [vmem:[#allocation16 + $0x6b8] sm:$0xff] }
0x1749   : > { %9501 = vmatpush3.msra.mxu0 %v4074_v53  ;;  %9536 = vmatpush3.msra.mxu1 %v4106_v25  ;;  %v4064_v53 = vld [vmem:[#allocation16 + $0x400] sm:$0xff] }
0x174a   : > { %9502 = vmatprep.subr.mxu0 %v4089_v54  ;;  %9537 = vmatprep.subr.mxu1 %v4121_v57  ;;  %v4096_v25 = vld [vmem:[#allocation16 + $0x500] sm:$0xff]  ;;  %v3918_v54 = vadd.f32 %v3917_v48, %v3332_v39  ;;  %v3930_v57 = vmax.f32 %v3774_v47, 0.0  ;;  %v4183_v39 = vld [vmem:[#allocation16 + $0x7b8] sm:$0xff]  ;;  %v4182_v47 = vld [vmem:[#allocation16 + $0x7b0] sm:$0xff] }
0x174b   : > { %9503 = vmatpush3.msra.mxu0 %v4073_v58  ;;  %9538 = vmatpush3.msra.mxu1 %v4105_v60  ;;  %v4191_v58 = vld [vmem:[#allocation16 + $0x7f8] sm:$0xff]  ;;  %v4184_v29 = vld [vmem:[#allocation16 + $0x7c0] sm:$0xff]  ;;  %v4134_v48 = vld [vmem:[#allocation16 + $0x630] sm:$0xff] }
0x174c   : > { %9504 = vmatprep.subr.mxu0 %v4088_v61  ;;  %9539 = vmatprep.subr.mxu1 %v4120_v62  ;;  %v4143_v60 = vld [vmem:[#allocation16 + $0x678] sm:$0xff]  ;;  %v3933_v61 = vmax.f32 %v3847_v40, 0.0  ;;  %v4165_v40 = vld [vmem:[#allocation16 + $0x728] sm:$0xff] }
0x174d   : > { %9505 = vmatpush3.msra.mxu0 %v4072_v63  ;;  %9540 = vmatpush3.msra.mxu1 %v4104_v9  ;;  %v4175_v62 = vld [vmem:[#allocation16 + $0x778] sm:$0xff]  ;;  %v3935_v63 = vmax.f32 %v3918_v54, 0.0  ;;  %v4158_v9 = vld [vmem:[#allocation16 + $0x6f0] sm:$0xff]  ;;  %v4132_v54 = vld [vmem:[#allocation16 + $0x620] sm:$0xff] }
0x174e   : > { %9506 = vmatprep.subr.mxu0 %v4087_v18  ;;  %9541 = vmatprep.subr.mxu1 %v4119_v1  ;;  %v4190_v18 = vld [vmem:[#allocation16 + $0x7f0] sm:$0xff] }
0x174f   : > { %9507 = vmatpush3.msra.mxu0 %v4071_v2  ;;  %9542 = vmatpush3.msra.mxu1 %v4103_v3  ;;  %v4142_v1 = vld [vmem:[#allocation16 + $0x670] sm:$0xff]  ;;  %v4157_v3 = vld [vmem:[#allocation16 + $0x6e8] sm:$0xff] }
0x1750   : > { %9508 = vmatprep.subr.mxu0 %v4086_v4  ;;  %9543 = vmatprep.subr.mxu1 %v4118_v5  ;;  %v4174_v2 = vld [vmem:[#allocation16 + $0x770] sm:$0xff]  ;;  %v4189_v4 = vld [vmem:[#allocation16 + $0x7e8] sm:$0xff] }
0x1751   : > { %9509 = vmatpush3.msra.mxu0 %v4070_v6  ;;  %9544 = vmatpush3.msra.mxu1 %v4102_v7  ;;  %v4141_v5 = vld [vmem:[#allocation16 + $0x668] sm:$0xff]  ;;  %v4156_v7 = vld [vmem:[#allocation16 + $0x6e0] sm:$0xff] }
0x1752   : > { %9510 = vmatprep.subr.mxu0 %v4085_v8  ;;  %9545 = vmatprep.subr.mxu1 %v4117_v10  ;;  %v4173_v6 = vld [vmem:[#allocation16 + $0x768] sm:$0xff]  ;;  %v4188_v8 = vld [vmem:[#allocation16 + $0x7e0] sm:$0xff] }
0x1753   : > { %9511 = vmatpush3.msra.mxu0 %v4069_v16  ;;  %9546 = vmatpush3.msra.mxu1 %v4101_v11  ;;  %v4140_v10 = vld [vmem:[#allocation16 + $0x660] sm:$0xff]  ;;  %v4155_v11 = vld [vmem:[#allocation16 + $0x6d8] sm:$0xff] }
0x1754   : > { %9512 = vmatprep.subr.mxu0 %v4084_v12  ;;  %9547 = vmatprep.subr.mxu1 %v4116_v13  ;;  %v4172_v16 = vld [vmem:[#allocation16 + $0x760] sm:$0xff]  ;;  %v4187_v12 = vld [vmem:[#allocation16 + $0x7d8] sm:$0xff] }
0x1755   : > { %9513 = vmatpush3.msra.mxu0 %v4068_v14  ;;  %9548 = vmatpush3.msra.mxu1 %v4100_v55  ;;  %v4139_v13 = vld [vmem:[#allocation16 + $0x658] sm:$0xff]  ;;  %v4154_v55 = vld [vmem:[#allocation16 + $0x6d0] sm:$0xff] }
0x1756   : > { %9514 = vmatprep.subr.mxu0 %v4083_v56  ;;  %9549 = vmatprep.subr.mxu1 %v4115_v17  ;;  %v4171_v14 = vld [vmem:[#allocation16 + $0x758] sm:$0xff]  ;;  %v4186_v56 = vld [vmem:[#allocation16 + $0x7d0] sm:$0xff] }
0x1757   : > { %9515 = vmatpush3.msra.mxu0 %v4067_v30  ;;  %9550 = vmatpush3.msra.mxu1 %v4099_v32  ;;  %v4138_v17 = vld [vmem:[#allocation16 + $0x650] sm:$0xff]  ;;  %v4185_v30 = vld [vmem:[#allocation16 + $0x7c8] sm:$0xff] }
0x1758   : > { %9516 = vmatprep.subr.mxu0 %v4082_v33  ;;  %9551 = vmatprep.subr.mxu1 %v4114_v21  ;;  %v4137_v32 = vld [vmem:[#allocation16 + $0x648] sm:$0xff]  ;;  %v4152_v21 = vld [vmem:[#allocation16 + $0x6c0] sm:$0xff] }
0x1759   : > { %9517 = vmatpush3.msra.mxu0 %v4066_v36  ;;  %9552 = vmatpush3.msra.mxu1 %v4098_v37  ;;  %v4169_v33 = vld [vmem:[#allocation16 + $0x748] sm:$0xff]  ;;  %v4136_v36 = vld [vmem:[#allocation16 + $0x640] sm:$0xff] }
0x175a   : > { %9518 = vmatprep.subr.mxu0 %v4081_v41  ;;  %9553 = vmatprep.subr.mxu1 %v4113_v42  ;;  %v4168_v37 = vld [vmem:[#allocation16 + $0x740] sm:$0xff]  ;;  %v4135_v41 = vld [vmem:[#allocation16 + $0x638] sm:$0xff] }
0x175b   : > { %9519 = vmatpush3.msra.mxu0 %v4065_v24  ;;  %9554 = vmatpush3.msra.mxu1 %v4097_v49  ;;  %v4167_v42 = vld [vmem:[#allocation16 + $0x738] sm:$0xff]  ;;  %v4166_v24 = vld [vmem:[#allocation16 + $0x730] sm:$0xff]  ;;  %v4149_v49 = vld [vmem:[#allocation16 + $0x6a8] sm:$0xff] }
0x175c   : > { %9520 = vmatprep.subr.mxu0 %v4080_v50  ;;  %9555 = vmatprep.subr.mxu1 %v4112_v51  ;;  %v4181_v50 = vld [vmem:[#allocation16 + $0x7a8] sm:$0xff] }
0x175d   : > { %9521 = vmatpush3.msra.mxu0 %v4064_v53  ;;  %9556 = vmatpush3.msra.mxu1 %v4096_v25  ;;  %v4133_v51 = vld [vmem:[#allocation16 + $0x628] sm:$0xff]  ;;  %v4148_v53 = vld [vmem:[#allocation16 + $0x6a0] sm:$0xff] }
0x175e   : > { %4544 = vmatmul.mubr.f32.vlgmr.msra.gmra.mxu0 %v3928_v52  ;;  %4614 = vmatmul.mubr.f32.vlgmr.msra.gmra.mxu1 %v3930_v57  ;;  %v4180_v25 = vld [vmem:[#allocation16 + $0x7a0] sm:$0xff]  ;;  %v4147_v57 = vld [vmem:[#allocation16 + $0x698] sm:$0xff] }
0x175f   : > { %9560 = vmatprep.subr.mxu0 %v4159_v34  ;;  %9595 = vmatprep.subr.mxu1 %v4191_v58  ;;  %v4164_v52 = vld [vmem:[#allocation16 + $0x720] sm:$0xff]  ;;  %v4179_v34 = vld [vmem:[#allocation16 + $0x798] sm:$0xff]  ;;  %v3320_v58 = vrot.slane %v11662_v59, %v11649_v31 }
0x1760   : > { %9561 = vmatpush3.msra.mxu0 %v4143_v60  ;;  %4683 = vmatprep.mubr.f32.mxu0 %v3933_v61  ;;  %v3328_v60 = vrot.slane %v11662_v59, %v11652_v46  ;;  %v4131_v61 = vld [vmem:[#allocation16 + $0x618] sm:$0xff] }
0x1761   : > { %9596 = vmatpush3.msra.mxu1 %v4175_v62  ;;  %4753 = vmatprep.mubr.f32.mxu1 %v3935_v63  ;;  %v4163_v62 = vld [vmem:[#allocation16 + $0x718] sm:$0xff]  ;;  %v4146_v63 = vld [vmem:[#allocation16 + $0x690] sm:$0xff] }
0x1762   : > { %9562 = vmatprep.subr.mxu0 %v4158_v9  ;;  %9597 = vmatprep.subr.mxu1 %v4190_v18  ;;  %v4178_v9 = vld [vmem:[#allocation16 + $0x790] sm:$0xff]  ;;  %v3916_v59 = vadd.f32 %v11676_v23, %v3328_v60 }
0x1763   : > { %9563 = vmatpush3.msra.mxu0 %v4142_v1  ;;  %9598 = vmatpush3.msra.mxu1 %v4174_v2  ;;  %v4130_v18 = vld [vmem:[#allocation16 + $0x610] sm:$0xff]  ;;  %v4145_v2 = vld [vmem:[#allocation16 + $0x688] sm:$0xff] }
0x1764   : > { %9564 = vmatprep.subr.mxu0 %v4157_v3  ;;  %9599 = vmatprep.subr.mxu1 %v4189_v4  ;;  %v4162_v1 = vld [vmem:[#allocation16 + $0x710] sm:$0xff]  ;;  %v4177_v3 = vld [vmem:[#allocation16 + $0x788] sm:$0xff]  ;;  %v3845_v4 = vadd.f32 %v11670_v15, %v3320_v58 }
0x1765   : > { %9565 = vmatpush3.msra.mxu0 %v4141_v5  ;;  %9600 = vmatpush3.msra.mxu1 %v4173_v6  ;;  %v4129_v5 = vld [vmem:[#allocation16 + $0x608] sm:$0xff] }
0x1766   : > { %9566 = vmatprep.subr.mxu0 %v4156_v7  ;;  %9601 = vmatprep.subr.mxu1 %v4188_v8  ;;  %v4161_v6 = vld [vmem:[#allocation16 + $0x708] sm:$0xff]  ;;  %v4144_v7 = vld [vmem:[#allocation16 + $0x680] sm:$0xff] }
0x1767   : > { %9567 = vmatpush3.msra.mxu0 %v4140_v10  ;;  %9602 = vmatpush3.msra.mxu1 %v4172_v16  ;;  %v4176_v8 = vld [vmem:[#allocation16 + $0x780] sm:$0xff] }
0x1768   : > { %9568 = vmatprep.subr.mxu0 %v4155_v11  ;;  %9603 = vmatprep.subr.mxu1 %v4187_v12  ;;  %v4128_v10 = vld [vmem:[#allocation16 + $0x600] sm:$0xff]  ;;  %v3932_v11 = vmax.f32 %v3845_v4, 0.0  ;;  %v3934_v12 = vmax.f32 %v3916_v59, 0.0  ;;  %v4798_v4 = vld [vmem:[#allocation7 + $0xa8] sm:$0xff]  ;;  %v4792_v59 = vld [vmem:[#allocation7 + $0x80] sm:$0xff] }
0x1769   : > { %9569 = vmatpush3.msra.mxu0 %v4139_v13  ;;  %9604 = vmatpush3.msra.mxu1 %v4171_v14  ;;  %v4160_v16 = vld [vmem:[#allocation16 + $0x700] sm:$0xff] }
0x176a   : > { %9570 = vmatprep.subr.mxu0 %v4154_v55  ;;  %9605 = vmatprep.subr.mxu1 %v4186_v56  ;;  %v9196_v56 = vld [vmem:[#allocation17] ss:$0 sm:$0xff] }
0x176b   : > { %9571 = vmatpush3.msra.mxu0 %v4138_v17  ;;  %9606 = vmatpush3.msra.mxu1 %v4170_v20 }
0x176c   : > { %9572 = vmatprep.subr.mxu0 %v4153_v22  ;;  %9607 = vmatprep.subr.mxu1 %v4185_v30 }
0x176d   : > { %9573 = vmatpush3.msra.mxu0 %v4137_v32  ;;  %9608 = vmatpush3.msra.mxu1 %v4169_v33 }
0x176e   : > { %9574 = vmatprep.subr.mxu0 %v4152_v21  ;;  %9609 = vmatprep.subr.mxu1 %v4184_v29 }
0x176f   : > { %9575 = vmatpush3.msra.mxu0 %v4136_v36  ;;  %9610 = vmatpush3.msra.mxu1 %v4168_v37 }
0x1770   : > { %9576 = vmatprep.subr.mxu0 %v4151_v38  ;;  %9611 = vmatprep.subr.mxu1 %v4183_v39 }
0x1771   : > { %9577 = vmatpush3.msra.mxu0 %v4135_v41  ;;  %9612 = vmatpush3.msra.mxu1 %v4167_v42 }
0x1772   : > { %9578 = vmatprep.subr.mxu0 %v4150_v43  ;;  %9613 = vmatprep.subr.mxu1 %v4182_v47 }
0x1773   : > { %9579 = vmatpush3.msra.mxu0 %v4134_v48  ;;  %9614 = vmatpush3.msra.mxu1 %v4166_v24 }
0x1774   : > { %9580 = vmatprep.subr.mxu0 %v4149_v49  ;;  %9615 = vmatprep.subr.mxu1 %v4181_v50 }
0x1775   : > { %9581 = vmatpush3.msra.mxu0 %v4133_v51  ;;  %9616 = vmatpush3.msra.mxu1 %v4165_v40 }
0x1776   : > { %9582 = vmatprep.subr.mxu0 %v4148_v53  ;;  %9617 = vmatprep.subr.mxu1 %v4180_v25 }
0x1777   : > { %9583 = vmatpush3.msra.mxu0 %v4132_v54  ;;  %9618 = vmatpush3.msra.mxu1 %v4164_v52 }
0x1778   : > { %9584 = vmatprep.subr.mxu0 %v4147_v57  ;;  %9619 = vmatprep.subr.mxu1 %v4179_v34 }
0x1779   : > { %9585 = vmatpush3.msra.mxu0 %v4131_v61  ;;  %9620 = vmatpush3.msra.mxu1 %v4163_v62 }
0x177a   : > { %9586 = vmatprep.subr.mxu0 %v4146_v63  ;;  %9621 = vmatprep.subr.mxu1 %v4178_v9 }
0x177b   : > { %9587 = vmatpush3.msra.mxu0 %v4130_v18  ;;  %9622 = vmatpush3.msra.mxu1 %v4162_v1  ;;  %v4795_v18 = vld [vmem:[#allocation7 + $0x98] sm:$0xff] }
0x177c   : > { %9588 = vmatprep.subr.mxu0 %v4145_v2  ;;  %9623 = vmatprep.subr.mxu1 %v4177_v3  ;;  %v4800_v1 = vld [vmem:[#allocation7 + $0xb8] sm:$0xff]  ;;  %v4794_v2 = vld [vmem:[#allocation7 + $0x90] sm:$0xff]  ;;  %v4793_v3 = vld [vmem:[#allocation7 + $0x88] sm:$0xff] }
0x177d   : > { %9589 = vmatpush3.msra.mxu0 %v4129_v5  ;;  %9624 = vmatpush3.msra.mxu1 %v4161_v6  ;;  %v4797_v5 = vld [vmem:[#allocation7 + $0xa0] sm:$0xff] }
0x177e   : > { %9590 = vmatprep.subr.mxu0 %v4144_v7  ;;  %9625 = vmatprep.subr.mxu1 %v4176_v8 }
0x177f   : > { %9591 = vmatpush3.msra.mxu0 %v4128_v10  ;;  %9626 = vmatpush3.msra.mxu1 %v4160_v16  ;;  %v9199_v16 = vld [vmem:[%s12095_s12 + $0x2] ss:$0 sm:$0xff] }
0x1780   : > { %4684 = vmatmul.mubr.f32.vlgmr.msra.gmra.mxu0 %v3932_v11  ;;  %4754 = vmatmul.mubr.f32.vlgmr.msra.gmra.mxu1 %v3934_v12  ;;  %v9200_v12 = vld [vmem:[%s12096_s13 + $0x2] ss:$0 sm:$0xff] }
0x1781   : > { %10174 = vmatprep.subr.mxu0 %v10952_v0  ;;  %10185 = vmatprep.subr.mxu1 %v10952_v0 }
0x1782   : > { %10182 = vmatprep.mubr.msk.f32.mxu0 %vm10953_vm0, %v10952_v0  ;;  %10193 = vmatprep.mubr.msk.f32.mxu1 %vm10953_vm0, %v10952_v0 }
0x1783   : > { %10175 = vmatpush3.msra.mxu0 %v4795_v18  ;;  %10186 = vmatpush3.msra.mxu1 %v4800_v1 }
0x1784   : > { %10176 = vmatprep.subr.mxu0 %v10952_v0  ;;  %10187 = vmatprep.subr.mxu1 %v10952_v0 }
0x1785   : > { %10177 = vmatpush3.msra.mxu0 %v4794_v2 }
0x1786   : > { %10178 = vmatprep.subr.mxu0 %v10952_v0 }
0x1787   : > { %10179 = vmatpush3.msra.mxu0 %v4793_v3 }
0x1788   : > { %10180 = vmatprep.subr.mxu0 %v10952_v0 }
0x1789   : > { %10181 = vmatpush3.msra.mxu0 %v4792_v59  ;;  %v4808_v59 = vld [vmem:[#allocation7 + $0xe8] sm:$0xff] }
0x178a   : > { %10196 = vmatprep.subr.mxu0 %v10952_v0 }
0x17db   : > { %v9382_v15 = vpop.f32.mrf.mxu0  ;;  %v9417_v13 = vpop.f32.mrf.mxu1 }
0x17dd   : > { %v9383_v23 = vpop.f32.mrf.mxu0  ;;  %v9418_v17 = vpop.f32.mrf.mxu1 }
0x17de   : > { %v9384_v55 = vadd.f32 %v9383_v23, %v9382_v15  ;;  %v9419_v33 = vadd.f32 %v9418_v17, %v9417_v13  ;;  %v4805_v13 = vld [vmem:[#allocation7 + $0xd8] sm:$0xff]  ;;  %v9201_v17 = vld [vmem:[#allocation8 + $0x4] ss:$0 sm:$0xff] }
0x17e0   : > { %v4266_v22 = vadd.f32 %v9384_v55, %v9196_v56  ;;  %v4803_v55 = vld [vmem:[#allocation7 + $0xc8] sm:$0xff]  ;;  %v4802_v56 = vld [vmem:[#allocation7 + $0xc0] sm:$0xff] }
0x17e2   : > { %v4336_v29 = vadd.f32 %v9419_v33, %v4266_v22 }
0x17fc   : > { %v9452_v14 = vpop.f32.mrf.mxu0  ;;  %v9487_v30 = vpop.f32.mrf.mxu1 }
0x17fe   : > { %v9453_v20 = vpop.f32.mrf.mxu0  ;;  %v9488_v36 = vpop.f32.mrf.mxu1 }
0x17ff   : > { %v9454_v21 = vadd.f32 %v9453_v20, %v9452_v14  ;;  %v9489_v41 = vadd.f32 %v9488_v36, %v9487_v30  ;;  %v4804_v14 = vld [vmem:[#allocation7 + $0xd0] sm:$0xff]  ;;  %v9203_v20 = vld [vmem:[#allocation8 + $0x5] ss:$0 sm:$0xff]  ;;  %v9205_v36 = vld [vmem:[#allocation8 + $0x6] ss:$0 sm:$0xff] }
0x1801   : > { %v4406_v38 = vadd.f32 %v9454_v21, %v4336_v29 }
0x1803   : > { %v4476_v43 = vadd.f32 %v9489_v41, %v4406_v38 }
0x181e   : > { %v9522_v32 = vpop.f32.mrf.mxu0  ;;  %v9557_v39 = vpop.f32.mrf.mxu1 }
0x1820   : > { %v9523_v37 = vpop.f32.mrf.mxu0  ;;  %v9558_v47 = vpop.f32.mrf.mxu1 }
0x1821   : > { %v9524_v42 = vadd.f32 %v9523_v37, %v9522_v32  ;;  %v9559_v50 = vadd.f32 %v9558_v47, %v9557_v39 }
0x1823   : > { %v4546_v48 = vadd.f32 %v9524_v42, %v4476_v43 }
0x1825   : > { %v4616_v53 = vadd.f32 %v9559_v50, %v4546_v48 }
0x1840   : > { %v9592_v24 = vpop.f32.mrf.mxu0  ;;  %v9627_v49 = vpop.f32.mrf.mxu1 }
0x1842   : > { %v9593_v51 = vpop.f32.mrf.mxu0  ;;  %v9628_v40 = vpop.f32.mrf.mxu1 }
0x1843   : > { %v9594_v25 = vadd.f32 %v9593_v51, %v9592_v24  ;;  %v9629_v52 = vadd.f32 %v9628_v40, %v9627_v49  ;;  %v11756_v49 = vld [vmem:[%s11374_s17] ss:$0 sm:$0xff]  ;;  %s12153_s17 = sld [smem:[#allocation38_spill]] }
0x1845   : > { %v4686_v54 = vadd.f32 %v9594_v25, %v4616_v53 }
0x1847   : > { %v4756_v57 = vadd.f32 %v9629_v52, %v4686_v54 }
0x1849   : > { %v4759_v34 = vadd.f32 %v4756_v57, %v11586_v35  ;;  %v4799_v35 = vld [vmem:[#allocation7 + $0xb0] sm:$0xff]  ;;  %s8918_s7 = scalar_lea.hbm %s12153_s17, %s9269_s5 }
0x184a   : > { %10188 = vmatpush3.msra.mxu1 %v4799_v35 }
0x184b   : > { %v4764_v58 = vsel %vm700_vm1, %v4759_v34, 0.0  ;;  %10189 = vmatprep.subr.mxu1 %v10952_v0 }
0x184c   : > { %4765 = vadd.xlane.f32.xlu0 %v4764_v58  ;;  %10190 = vmatpush3.msra.mxu1 %v4798_v4 }
0x184d   : > { %10191 = vmatprep.subr.mxu1 %v10952_v0 }
0x184e   : > { %10192 = vmatpush3.msra.mxu1 %v4797_v5 }
0x184f   : > { %10207 = vmatprep.subr.mxu1 %v10952_v0 }
0x18d5   : > { %v4766_v60 = vpop.xlane.xlu0 %4765 }
0x18d6   : > { %v4767_v61 = vmul.f32 0.03125, %v4766_v60 }
0x18d8   : > { %v4768_v62 = vsub.f32 %v4759_v34, %v4767_v61 }
0x18da   : > { %v4769_v63 = vmul.f32 %v4768_v62, %v4768_v62 }
0x18dc   : > { %v4770_v9 = vsel %vm700_vm1, %v4769_v63, 0.0 }
0x18dd   : > { %4771 = vadd.xlane.f32.xlu0 %v4770_v9 }
0x1966   : > { %v4772_v6 = vpop.xlane.xlu0 %4771 }
0x1967   : > { %v4773_v7 = vmul.f32 0.03125, %v4772_v6 }
0x1969   : > { %v4774_v8 = vadd.f32 1e-05, %v4773_v7 }
0x196b   : > { %10539 = vrsqrt.f32 %v4774_v8 }
0x1978   : > { %v10540_v10 = vpop.eup %10539 }
0x1979   : > { %v4776_v11 = vmul.f32 %v10540_v10, %v4768_v62  ;;  %v4807_v10 = vld [vmem:[#allocation7 + $0xe0] sm:$0xff] }
0x197b   : > { %v4783_v15 = vmul.f32 %v9199_v16, %v4776_v11 }
0x197d   : > { %v11713_v23 = vadd.f32 %v9200_v12, %v4783_v15 }
0x197f   : > { %10183 = vmatmul.mubr.msk.f32.vlgmr.msra.gmra.mxu0 %vm700_vm1, %v11713_v23  ;;  %10194 = vmatmul.mubr.msk.f32.vlgmr.msra.gmra.mxu1 %vm700_vm1, %v11713_v23 }
0x1980   : > { %10197 = vmatpush3.msra.mxu0 %v4805_v13  ;;  %10204 = vmatprep.mubr.msk.f32.mxu0 %vm10953_vm0, %v10952_v0 }
0x1981   : > { %10198 = vmatprep.subr.mxu0 %v10952_v0  ;;  %10209 = vmatprep.mubr.msk.f32.mxu1 %vm10953_vm0, %v10952_v0 }
0x1982   : > { %10199 = vmatpush3.msra.mxu0 %v4804_v14 }
0x1983   : > { %10200 = vmatprep.subr.mxu0 %v10952_v0 }
0x1984   : > { %10201 = vmatpush3.msra.mxu0 %v4803_v55 }
0x1985   : > { %10202 = vmatprep.subr.mxu0 %v10952_v0 }
0x1986   : > { %10203 = vmatpush3.msra.mxu0 %v4802_v56 }
0x1987   : > { %10205 = vmatmul.mubr.msk.f32.vlgmr.msra.gmra.mxu0 %vm700_vm1, %v11713_v23  ;;  %10217 = vmatprep.subr.mxu0 %v10952_v0 }
0x1988   : > { %10219 = vmatprep.mubr.msk.f32.mxu0 %vm10953_vm0, %v10952_v0 }
0x1a3f   : > { %v4894_v22 = vpop.f32.mrf.mxu0  ;;  %v4970_v30 = vpop.f32.mrf.mxu1 }
0x1a40   : > { %v11731_v32 = vadd.f32 %v9201_v17, %v4894_v22  ;;  %v11733_v33 = vadd.f32 %v9203_v20, %v4970_v30 }
0x1a41   : > { %v10184_v21 = vpop.f32.mrf.mxu0  ;;  %v10195_v29 = vpop.f32.mrf.mxu1 }
0x1a42   : > { %5215 = vrot.lane.b32.xlu0 %v11733_v33, %s10954_s27  ;;  %10208 = vmatpush3.xpose.msk.msra.mxu1 %vm926_vm2, %v11733_v33 }
0x1a43   : > { %5213 = vrot.lane.b32.xlu1 %v11731_v32, %s10954_s27  ;;  %10212 = vmatprep.subr.mxu1 %v10952_v0 }
0x1a45   : > { %10210 = vmatmul.mubr.msk.f32.vlgmr.msra.gmra.mxu1 %vm926_vm2, %v11731_v32 }
0x1a46   : > { %10214 = vmatprep.mubr.msk.f32.mxu1 %vm10953_vm0, %v10952_v0 }
0x1a47   : > { %v5046_v37 = vpop.f32.mrf.mxu0 }
0x1a48   : > { %v11746_v38 = vadd.f32 %v9205_v36, %v5046_v37 }
0x1a49   : > { %v10206_v39 = vpop.f32.mrf.mxu0 }
0x1a4a   : > { %10213 = vmatpush3.msra.mxu1 %v11746_v38 }
0x1a4b   : > { %10222 = vmatprep.subr.mxu1 %v10952_v0 }
0x1ab4   : > { %v5216_v41 = vpop.permute.xlu0 %5215 }
0x1ab5   : > { %10218 = vmatpush3.xpose.msk.msra.mxu0 %vm926_vm2, %v5216_v41  ;;  %v5214_v42 = vpop.permute.xlu1 %5213 }
0x1ab6   : > { %10227 = vmatprep.subr.mxu0 %v10952_v0 }
0x1ab8   : > { %10220 = vmatmul.mubr.msk.f32.vlgmr.msra.gmra.mxu0 %vm926_vm2, %v5214_v42 }
0x1ab9   : > { %10229 = vmatprep.mubr.msk.f32.mxu0 %vm10953_vm0, %v10952_v0  ;;  %10228 = vmatpush3.msra.mxu0 %v4808_v59 }
0x1aba   : > { %10237 = vmatprep.subr.mxu0 %v10952_v0 }
0x1b05   : > { %v5122_v43 = vpop.f32.mrf.mxu1 }
0x1b06   : > { %v5126_v47 = vmul.f32 0.35355338, %v5122_v43 }
0x1b07   : > { %v10211_v48 = vpop.f32.mrf.mxu1 }
0x1b08   : > { %v5127_v24 = vfloor.f32 %v5126_v47 }
0x1b0a   : > { %v5128_v50 = vadd.f32 %v11756_v49, %v5127_v24 }
0x1b0c   : > { %v5129_v51 = vsel %vm926_vm2, %v5128_v50, -inf }
0x1b0d   : > { %5130 = vmax.xlane.f32.xlu0 %v5129_v51 }
0x1b78   : > { %v5287_v40 = vpop.f32.mrf.mxu0 }
0x1b79   : > { %v5291_v53 = vmul.f32 0.35355338, %v5287_v40 }
0x1b7a   : > { %v10221_v25 = vpop.f32.mrf.mxu0 }
0x1b7b   : > { %v5292_v54 = vfloor.f32 %v5291_v53 }
0x1b7d   : > { %v5293_v52 = vadd.f32 %v11756_v49, %v5292_v54 }
0x1b7f   : > { %v5294_v57 = vsel %vm926_vm2, %v5293_v52, -inf }
0x1b80   : > { %5295 = vmax.xlane.f32.xlu1 %v5294_v57 }
0x1b91   : > { %5530 = vrot.lane.b32.xlu1 %v11733_v33, %s10955_s14 }
0x1b96   : > { %v5131_v34 = vpop.xlane.xlu0 %5130 }
0x1b97   : > { %v5132_v58 = vsub.f32 %v5128_v50, %v5131_v34 }
0x1b99   : > { %v5133_v60 = vmul.f32 1.442695, %v5132_v58 }
0x1b9b   : > { %10541 = vpow2.f32 %v5133_v60 }
0x1ba8   : > { %v10542_v61 = vpop.eup %10541 }
0x1ba9   : > { %v5135_v62 = vsel %vm926_vm2, %v10542_v61, 0.0 }
0x1baa   : > { %5136 = vadd.xlane.f32.xlu0 %v5135_v62 }
0x1c09   : > { %v5296_v63 = vpop.xlane.xlu1 %5295 }
0x1c0a   : > { %v5297_v9 = vsub.f32 %v5293_v52, %v5296_v63 }
0x1c0c   : > { %v5298_v18 = vmul.f32 1.442695, %v5297_v9 }
0x1c0d   : > { %v5531_v15 = vpop.permute.xlu1 %5530 }
0x1c0e   : > { %10543 = vpow2.f32 %v5298_v18 }
0x1c1b   : > { %v10544_v1 = vpop.eup %10543 }
0x1c1c   : > { %v5300_v2 = vsel %vm926_vm2, %v10544_v1, 0.0 }
0x1c1d   : > { %5301 = vadd.xlane.f32.xlu0 %v5300_v2 }
0x1c33   : > { %v5137_v35 = vpop.xlane.xlu0 %5136  ;;  %5306 = vrot.lane.b32.xlu0 %v11746_v38, %s10954_s27 }
0x1c34   : > { %10545 = vrcp.f32 %v5137_v35 }
0x1c37   : > { %5528 = vrot.lane.b32.xlu0 %v11731_v32, %s10955_s14 }
0x1c41   : > { %v10546_v3 = vpop.eup %10545 }
0x1c42   : > { %v5139_v4 = vmul.f32 %v10546_v3, %v10542_v61 }
0x1c44   : > { %10215 = vmatmul.mubr.msk.f32.vlgmr.msra.gmra.mxu1 %vm926_vm2, %v5139_v4  ;;  %v4810_v4 = vld [vmem:[#allocation7 + $0xf8] sm:$0xff] }
0x1c45   : > { %10224 = vmatprep.mubr.msk.f32.mxu1 %vm10953_vm0, %v10952_v0 }
0x1ca6   : > { %v5302_v5 = vpop.xlane.xlu0 %5301 }
0x1ca7   : > { %10547 = vrcp.f32 %v5302_v5 }
0x1caa   : > { %v5307_v6 = vpop.permute.xlu0 %5306 }
0x1cab   : > { %10223 = vmatpush3.msra.mxu1 %v5307_v6 }
0x1cac   : > { %10232 = vmatprep.subr.mxu1 %v10952_v0 }
0x1cae   : > { %v5529_v14 = vpop.permute.xlu0 %5528 }
0x1cb4   : > { %v10548_v7 = vpop.eup %10547 }
0x1cb5   : > { %v5304_v8 = vmul.f32 %v10548_v7, %v10544_v1 }
0x1cb7   : > { %10225 = vmatmul.mubr.msk.f32.vlgmr.msra.gmra.mxu1 %vm926_vm2, %v5304_v8  ;;  %v9223_v8 = vld [vmem:[#allocation8 + $0x7] ss:$0 sm:$0xff] }
0x1cb8   : > { %10233 = vmatpush3.msra.mxu1 %v4807_v10  ;;  %10234 = vmatprep.mubr.msk.f32.mxu1 %vm10953_vm0, %v10952_v0 }
0x1cb9   : > { %10242 = vmatprep.subr.mxu1 %v10952_v0 }
0x1d04   : > { %v5209_v16 = vpop.f32.mrf.mxu1 }
0x1d05   : > { %10235 = vmatmul.mubr.msk.f32.vlgmr.msra.gmra.mxu1 %vm926_vm2, %v5209_v16 }
0x1d06   : > { %v10216_v11 = vpop.f32.mrf.mxu1  ;;  %10244 = vmatprep.mubr.msk.f32.mxu1 %vm10953_vm0, %v10952_v0 }
0x1d77   : > { %v5378_v12 = vpop.f32.mrf.mxu1 }
0x1d78   : > { %10230 = vmatmul.mubr.msk.f32.vlgmr.msra.gmra.mxu0 %vm926_vm2, %v5378_v12 }
0x1d79   : > { %10238 = vmatpush3.xpose.msk.msra.mxu0 %vm926_vm2, %v5531_v15  ;;  %v10226_v13 = vpop.f32.mrf.mxu1  ;;  %10239 = vmatprep.mubr.msk.f32.mxu0 %vm10953_vm0, %v10952_v0 }
0x1d7a   : > { %10247 = vmatprep.subr.mxu0 %v10952_v0 }
0x1d7c   : > { %10240 = vmatmul.mubr.msk.f32.vlgmr.msra.gmra.mxu0 %vm926_vm2, %v5529_v14 }
0x1d7d   : > { %10249 = vmatprep.mubr.msk.f32.mxu0 %vm10953_vm0, %v10952_v0 }
0x1dc5   : > { %v5524_v55 = vpop.f32.mrf.mxu1 }
0x1dc7   : > { %v10236_v56 = vpop.f32.mrf.mxu1 }
0x1e38   : > { %v5451_v17 = vpop.f32.mrf.mxu0 }
0x1e39   : > { %v5525_v1 = vadd.f32 %v5524_v55, %v5451_v17 }
0x1e3a   : > { %v10231_v20 = vpop.f32.mrf.mxu0 }
0x1e3c   : > { %v5602_v22 = vpop.f32.mrf.mxu0 }
0x1e3d   : > { %v5606_v30 = vmul.f32 0.35355338, %v5602_v22  ;;  %v6060_v22 = vld [vmem:[#allocation10 + $0xb8] sm:$0xff] }
0x1e3e   : > { %v10241_v21 = vpop.f32.mrf.mxu0 }
0x1e3f   : > { %v5607_v29 = vfloor.f32 %v5606_v30  ;;  %v6059_v30 = vld [vmem:[#allocation10 + $0xb0] sm:$0xff]  ;;  %v6055_v21 = vld [vmem:[#allocation10 + $0x98] sm:$0xff] }
0x1e41   : > { %v5608_v36 = vadd.f32 %v11756_v49, %v5607_v29  ;;  %v6057_v29 = vld [vmem:[#allocation10 + $0xa0] sm:$0xff] }
0x1e43   : > { %v5609_v37 = vsel %vm926_vm2, %v5608_v36, -inf }
0x1e44   : > { %5610 = vmax.xlane.f32.xlu0 %v5609_v37  ;;  %v6053_v37 = vld [vmem:[#allocation10 + $0x88] sm:$0xff] }
0x1e5a   : > { %5620 = vrot.lane.b32.xlu0 %v11746_v38, %s10955_s14 }
0x1e5e   : > { %5770 = vrot.lane.b32.xlu0 %v11731_v32, %s10956_s24 }
0x1ecd   : > { %v5611_v39 = vpop.xlane.xlu0 %5610 }
0x1ece   : > { %v5612_v41 = vsub.f32 %v5608_v36, %v5611_v39  ;;  %v6054_v36 = vld [vmem:[#allocation10 + $0x90] sm:$0xff] }
0x1ecf   : > { %v10580_v39 = vld [vmem:[%s570_s25] sm:$0xff] }
0x1ed0   : > { %v5613_v42 = vmul.f32 1.442695, %v5612_v41  ;;  %v6052_v41 = vld [vmem:[#allocation10 + $0x80] sm:$0xff] }
0x1ed1   : > { %v5621_v43 = vpop.permute.xlu0 %5620 }
0x1ed2   : > { %10549 = vpow2.f32 %v5613_v42  ;;  %10243 = vmatpush3.msra.mxu1 %v5621_v43 }
0x1ed3   : > { %10252 = vmatprep.subr.mxu1 %v10952_v0 }
0x1ed5   : > { %v5771_v40 = vpop.permute.xlu0 %5770 }
0x1edf   : > { %v10550_v47 = vpop.eup %10549 }
0x1ee0   : > { %v5615_v48 = vsel %vm926_vm2, %v10550_v47, 0.0 }
0x1ee1   : > { %5616 = vadd.xlane.f32.xlu1 %v5615_v48 }
0x1ef2   : > { %5772 = vrot.lane.b32.xlu1 %v11733_v33, %s10956_s24  ;;  %v4809_v33 = vld [vmem:[#allocation7 + $0xf0] sm:$0xff] }
0x1ef3   : > { %10248 = vmatpush3.msra.mxu0 %v4809_v33  ;;  %v9230_v33 = vld [vmem:[#allocation11 + $0x5] ss:$0 sm:$0xff] }
0x1ef4   : > { %10257 = vmatprep.subr.mxu0 %v10952_v0 }
0x1f6a   : > { %v5617_v24 = vpop.xlane.xlu1 %5616 }
0x1f6b   : > { %10551 = vrcp.f32 %v5617_v24  ;;  %v9226_v24 = vld [vmem:[%s12095_s12 + $0x3] ss:$0 sm:$0xff] }
0x1f6e   : > { %v5773_v32 = vpop.permute.xlu1 %5772 }
0x1f78   : > { %v10552_v50 = vpop.eup %10551 }
0x1f79   : > { %v5619_v51 = vmul.f32 %v10552_v50, %v10550_v47 }
0x1f7b   : > { %10245 = vmatmul.mubr.msk.f32.vlgmr.msra.gmra.mxu1 %vm926_vm2, %v5619_v51  ;;  %v9227_v51 = vld [vmem:[%s12096_s13 + $0x3] ss:$0 sm:$0xff] }
0x1f7c   : > { %10253 = vmatpush3.xpose.msk.msra.mxu1 %vm926_vm2, %v5773_v32  ;;  %10254 = vmatprep.mubr.msk.f32.mxu1 %vm10953_vm0, %v10952_v0 }
0x1f7d   : > { %10262 = vmatprep.subr.mxu1 %v10952_v0 }
0x1f7f   : > { %10255 = vmatmul.mubr.msk.f32.vlgmr.msra.gmra.mxu1 %vm926_vm2, %v5771_v40 }
0x1f80   : > { %10264 = vmatprep.mubr.msk.f32.mxu1 %vm10953_vm0, %v10952_v0  ;;  %10263 = vmatpush3.msra.mxu1 %v4810_v4 }
0x1f81   : > { %10278 = vmatprep.subr.mxu1 %v10952_v0 }
0x203b   : > { %v5692_v53 = vpop.f32.mrf.mxu1 }
0x203c   : > { %10250 = vmatmul.mubr.msk.f32.vlgmr.msra.gmra.mxu0 %vm926_vm2, %v5692_v53 }
0x203d   : > { %v10246_v25 = vpop.f32.mrf.mxu1  ;;  %10259 = vmatprep.mubr.msk.f32.mxu0 %vm10953_vm0, %v10952_v0 }
0x203f   : > { %v5844_v54 = vpop.f32.mrf.mxu1 }
0x2040   : > { %v5848_v52 = vmul.f32 0.35355338, %v5844_v54 }
0x2041   : > { %v10256_v57 = vpop.f32.mrf.mxu1 }
0x2042   : > { %v5849_v34 = vfloor.f32 %v5848_v52  ;;  %v6065_v52 = vld [vmem:[#allocation10 + $0xd8] sm:$0xff]  ;;  %v6064_v57 = vld [vmem:[#allocation10 + $0xd0] sm:$0xff] }
0x2044   : > { %v5850_v58 = vadd.f32 %v11756_v49, %v5849_v34  ;;  %v6063_v34 = vld [vmem:[#allocation10 + $0xc8] sm:$0xff] }
0x2046   : > { %v5851_v60 = vsel %vm926_vm2, %v5850_v58, -inf }
0x2047   : > { %5852 = vmax.xlane.f32.xlu1 %v5851_v60 }
0x20d0   : > { %v5853_v61 = vpop.xlane.xlu1 %5852 }
0x20d1   : > { %v5854_v62 = vsub.f32 %v5850_v58, %v5853_v61  ;;  %v6062_v58 = vld [vmem:[#allocation10 + $0xc0] sm:$0xff] }
0x20d2   : > { %v9228_v61 = vld [vmem:[#allocation11 + $0x4] ss:$0 sm:$0xff] }
0x20d3   : > { %v5855_v63 = vmul.f32 1.442695, %v5854_v62 }
0x20d5   : > { %10553 = vpow2.f32 %v5855_v63 }
0x20e2   : > { %v10554_v9 = vpop.eup %10553 }
0x20e3   : > { %v5857_v18 = vsel %vm926_vm2, %v10554_v9, 0.0 }
0x20e4   : > { %5858 = vadd.xlane.f32.xlu0 %v5857_v18  ;;  %v9232_v18 = vld [vmem:[#allocation11 + $0x6] ss:$0 sm:$0xff] }
0x20fa   : > { %5862 = vrot.lane.b32.xlu0 %v11746_v38, %s10956_s24 }
0x20fc   : > { %v5765_v2 = vpop.f32.mrf.mxu0 }
0x20fd   : > { %v5769_v35 = vadd.f32 %v5765_v2, %v5525_v1 }
0x20fe   : > { %v10251_v3 = vpop.f32.mrf.mxu0 }
0x216d   : > { %v5859_v49 = vpop.xlane.xlu0 %5858 }
0x216e   : > { %10555 = vrcp.f32 %v5859_v49 }
0x2171   : > { %v5863_v59 = vpop.permute.xlu0 %5862 }
0x2172   : > { %10258 = vmatpush3.msra.mxu0 %v5863_v59 }
0x2173   : > { %10267 = vmatprep.subr.mxu0 %v10952_v0 }
0x217b   : > { %v10556_v5 = vpop.eup %10555 }
0x217c   : > { %v5861_v6 = vmul.f32 %v10556_v5, %v10554_v9 }
0x217e   : > { %10260 = vmatmul.mubr.msk.f32.vlgmr.msra.gmra.mxu0 %vm926_vm2, %v5861_v6  ;;  %v11885_v6 = vld [vmem:[%s11509_s20] ss:$0 sm:$0xff] }
0x217f   : > { %10275 = vmatprep.mubr.msk.f32.mxu0 %vm10953_vm0, %v10952_v0  ;;  %10268 = vmatpush3.msra.mxu0 %v6055_v21 }
0x2180   : > { %10269 = vmatprep.subr.mxu0 %v10952_v0 }
0x2181   : > { %10270 = vmatpush3.msra.mxu0 %v6054_v36 }
0x2182   : > { %10271 = vmatprep.subr.mxu0 %v10952_v0 }
0x2183   : > { %10272 = vmatpush3.msra.mxu0 %v6053_v37 }
0x2184   : > { %10273 = vmatprep.subr.mxu0 %v10952_v0 }
0x2185   : > { %10274 = vmatpush3.msra.mxu0 %v6052_v41  ;;  %v6068_v41 = vld [vmem:[#allocation10 + $0xe8] sm:$0xff] }
0x2186   : > { %10289 = vmatprep.subr.mxu0 %v10952_v0 }
0x223e   : > { %v5934_v38 = vpop.f32.mrf.mxu0 }
0x223f   : > { %10265 = vmatmul.mubr.msk.f32.vlgmr.msra.gmra.mxu1 %vm926_vm2, %v5934_v38 }
0x2240   : > { %v10261_v7 = vpop.f32.mrf.mxu0  ;;  %10286 = vmatprep.mubr.msk.f32.mxu1 %vm10953_vm0, %v10952_v0  ;;  %10279 = vmatpush3.msra.mxu1 %v6060_v22 }
0x2241   : > { %10280 = vmatprep.subr.mxu1 %v10952_v0 }
0x2242   : > { %10281 = vmatpush3.msra.mxu1 %v6059_v30 }
0x2243   : > { %10282 = vmatprep.subr.mxu1 %v10952_v0 }
0x22ff   : > { %v6007_v10 = vpop.f32.mrf.mxu1 }
0x2300   : > { %v6011_v16 = vadd.f32 %v6007_v10, %v5769_v35 }
0x2301   : > { %v10266_v11 = vpop.f32.mrf.mxu1 }
0x2302   : > { %v6018_v12 = vadd.f32 %v9223_v8, %v6011_v16 }
0x2304   : > { %v6019_v15 = vadd.f32 %v6018_v12, %v11713_v23  ;;  %v6058_v23 = vld [vmem:[#allocation10 + $0xa8] sm:$0xff] }
0x2305   : > { %10283 = vmatpush3.msra.mxu1 %v6058_v23 }
0x2306   : > { %v6024_v13 = vsel %vm700_vm1, %v6019_v15, 0.0  ;;  %10284 = vmatprep.subr.mxu1 %v10952_v0 }
0x2307   : > { %6025 = vadd.xlane.f32.xlu1 %v6024_v13  ;;  %10285 = vmatpush3.msra.mxu1 %v6057_v29 }
0x2308   : > { %10287 = vmatmul.mubr.msk.f32.vlgmr.msra.gmra.mxu1 %vm700_vm1, %v10580_v39  ;;  %10300 = vmatprep.subr.mxu1 %v10952_v0 }
0x2309   : > { %10302 = vmatprep.mubr.msk.f32.mxu1 %vm10953_vm0, %v10952_v0 }
0x2390   : > { %v6026_v14 = vpop.xlane.xlu1 %6025 }
0x2391   : > { %v6027_v55 = vmul.f32 0.03125, %v6026_v14 }
0x2393   : > { %v6028_v56 = vsub.f32 %v6019_v15, %v6027_v55 }
0x2395   : > { %v6029_v17 = vmul.f32 %v6028_v56, %v6028_v56 }
0x2397   : > { %v6030_v20 = vsel %vm700_vm1, %v6029_v17, 0.0 }
0x2398   : > { %6031 = vadd.xlane.f32.xlu1 %v6030_v20 }
0x23c8   : > { %v6230_v53 = vpop.f32.mrf.mxu1 }
0x23c9   : > { %v11853_v25 = vadd.f32 %v9230_v33, %v6230_v53 }
0x23ca   : > { %v10288_v54 = vpop.f32.mrf.mxu1 }
0x23cb   : > { %6475 = vrot.lane.b32.xlu1 %v11853_v25, %s10954_s27  ;;  %10301 = vmatpush3.xpose.msk.msra.mxu1 %vm926_vm2, %v11853_v25 }
0x23cc   : > { %10305 = vmatprep.subr.mxu1 %v10952_v0 }
0x2421   : > { %v6032_v42 = vpop.xlane.xlu1 %6031 }
0x2422   : > { %v6033_v43 = vmul.f32 0.03125, %v6032_v42 }
0x2424   : > { %v6034_v47 = vadd.f32 1e-05, %v6033_v43 }
0x2426   : > { %10557 = vrsqrt.f32 %v6034_v47 }
0x2433   : > { %v10558_v48 = vpop.eup %10557 }
0x2434   : > { %v6036_v50 = vmul.f32 %v10558_v48, %v6028_v56  ;;  %v6067_v48 = vld [vmem:[#allocation10 + $0xe0] sm:$0xff] }
0x2436   : > { %v6043_v32 = vmul.f32 %v9226_v24, %v6036_v50 }
0x2438   : > { %v11847_v40 = vadd.f32 %v9227_v51, %v6043_v32 }
0x243a   : > { %10276 = vmatmul.mubr.msk.f32.vlgmr.msra.gmra.mxu0 %vm700_vm1, %v11847_v40 }
0x243b   : > { %10297 = vmatprep.mubr.msk.f32.mxu0 %vm10953_vm0, %v10952_v0  ;;  %10290 = vmatpush3.msra.mxu0 %v6065_v52 }
0x243c   : > { %10291 = vmatprep.subr.mxu0 %v10952_v0 }
0x243d   : > { %10292 = vmatpush3.msra.mxu0 %v6064_v57  ;;  %v6476_v60 = vpop.permute.xlu1 %6475 }
0x243e   : > { %10293 = vmatprep.subr.mxu0 %v10952_v0 }
0x243f   : > { %10294 = vmatpush3.msra.mxu0 %v6063_v34 }
0x2440   : > { %10295 = vmatprep.subr.mxu0 %v10952_v0 }
0x2441   : > { %10296 = vmatpush3.msra.mxu0 %v6062_v58 }
0x2442   : > { %10298 = vmatmul.mubr.msk.f32.vlgmr.msra.gmra.mxu0 %vm700_vm1, %v10580_v39  ;;  %10310 = vmatprep.subr.mxu0 %v10952_v0 }
0x2443   : > { %10312 = vmatprep.mubr.msk.f32.mxu0 %vm10953_vm0, %v10952_v0  ;;  %10311 = vmatpush3.xpose.msk.msra.mxu0 %vm926_vm2, %v6476_v60 }
0x2444   : > { %10320 = vmatprep.subr.mxu0 %v10952_v0 }
0x24fa   : > { %v6154_v62 = vpop.f32.mrf.mxu0 }
0x24fb   : > { %v11869_v63 = vadd.f32 %v9228_v61, %v6154_v62 }
0x24fc   : > { %v10277_v9 = vpop.f32.mrf.mxu0 }
0x24fd   : > { %6473 = vrot.lane.b32.xlu0 %v11869_v63, %s10954_s27  ;;  %10303 = vmatmul.mubr.msk.f32.vlgmr.msra.gmra.mxu1 %vm926_vm2, %v11869_v63 }
0x24fe   : > { %10307 = vmatprep.mubr.msk.f32.mxu1 %vm10953_vm0, %v10952_v0 }
0x2502   : > { %v6306_v1 = vpop.f32.mrf.mxu0 }
0x2503   : > { %v11877_v2 = vadd.f32 %v9232_v18, %v6306_v1 }
0x2504   : > { %v10299_v35 = vpop.f32.mrf.mxu0 }
0x2505   : > { %10306 = vmatpush3.msra.mxu1 %v11877_v2 }
0x2506   : > { %10315 = vmatprep.subr.mxu1 %v10952_v0 }
0x256f   : > { %v6474_v3 = vpop.permute.xlu0 %6473 }
0x2570   : > { %10313 = vmatmul.mubr.msk.f32.vlgmr.msra.gmra.mxu0 %vm926_vm2, %v6474_v3 }
0x2571   : > { %10322 = vmatprep.mubr.msk.f32.mxu0 %vm10953_vm0, %v10952_v0  ;;  %10321 = vmatpush3.msra.mxu0 %v6068_v41 }
0x2572   : > { %10330 = vmatprep.subr.mxu0 %v10952_v0 }
0x25bd   : > { %v6382_v4 = vpop.f32.mrf.mxu1 }
0x25be   : > { %v6386_v49 = vmul.f32 0.35355338, %v6382_v4 }
0x25bf   : > { %v10304_v59 = vpop.f32.mrf.mxu1 }
0x25c0   : > { %v6387_v5 = vfloor.f32 %v6386_v49 }
0x25c2   : > { %v6388_v38 = vadd.f32 %v11885_v6, %v6387_v5 }
0x25c4   : > { %v6389_v7 = vsel %vm926_vm2, %v6388_v38, -inf }
0x25c5   : > { %6390 = vmax.xlane.f32.xlu0 %v6389_v7 }
0x2630   : > { %v6547_v8 = vpop.f32.mrf.mxu0 }
0x2631   : > { %v6551_v10 = vmul.f32 0.35355338, %v6547_v8  ;;  %v6069_v8 = vld [vmem:[#allocation10 + $0xf0] sm:$0xff] }
0x2632   : > { %v10314_v16 = vpop.f32.mrf.mxu0 }
0x2633   : > { %v6552_v11 = vfloor.f32 %v6551_v10 }
0x2635   : > { %v6553_v12 = vadd.f32 %v11885_v6, %v6552_v11 }
0x2637   : > { %v6554_v15 = vsel %vm926_vm2, %v6553_v12, -inf }
0x2638   : > { %6555 = vmax.xlane.f32.xlu1 %v6554_v15 }
0x2649   : > { %6566 = vrot.lane.b32.xlu1 %v11877_v2, %s10954_s27  ;;  %s10846_s27 = scalar_lea.vmem %s8921_s28, 128 }
0x264a   : > { %p10847_p6 = scmp.ne.s32.totalorder %s8921_s28, %s10846_s27 }
0x264c   : > { %p10848_p7 = pnand %p10847_p6, %p12154_p2 }
0x264d   : > { %6788 = vrot.lane.b32.xlu1 %v11869_v63, %s10955_s14 }
0x264e   : > { %v6391_v13 = vpop.xlane.xlu0 %6390  ;;  %p10849_p3 = pneg %p10848_p7 }
0x264f   : > { %v6392_v14 = vsub.f32 %v6388_v38, %v6391_v13 }
0x2651   : > { %v6393_v55 = vmul.f32 1.442695, %v6392_v14 }
0x2653   : > { %10559 = vpow2.f32 %v6393_v55 }
0x2660   : > { %v10560_v56 = vpop.eup %10559 }
0x2661   : > { %v6395_v17 = vsel %vm926_vm2, %v10560_v56, 0.0 }
0x2662   : > { %6396 = vadd.xlane.f32.xlu0 %v6395_v17 }
0x26c1   : > { %v6556_v20 = vpop.xlane.xlu1 %6555 }
0x26c2   : > { %v6557_v22 = vsub.f32 %v6553_v12, %v6556_v20 }
0x26c4   : > { %v6558_v30 = vmul.f32 1.442695, %v6557_v22 }
0x26c5   : > { %v6567_v39 = vpop.permute.xlu1 %6566 }
0x26c6   : > { %10561 = vpow2.f32 %v6558_v30 }
0x26c9   : > { %v6789_v53 = vpop.permute.xlu1 %6788 }
0x26d3   : > { %v10562_v23 = vpop.eup %10561 }
0x26d4   : > { %v6560_v21 = vsel %vm926_vm2, %v10562_v23, 0.0 }
0x26d5   : > { %6561 = vadd.xlane.f32.xlu0 %v6560_v21 }
0x26eb   : > { %v6397_v29 = vpop.xlane.xlu0 %6396  ;;  %6790 = vrot.lane.b32.xlu0 %v11853_v25, %s10955_s14 }
0x26ec   : > { %10563 = vrcp.f32 %v6397_v29 }
0x26f9   : > { %v10564_v36 = vpop.eup %10563 }
0x26fa   : > { %v6399_v37 = vmul.f32 %v10564_v36, %v10560_v56 }
0x26fc   : > { %10308 = vmatmul.mubr.msk.f32.vlgmr.msra.gmra.mxu1 %vm926_vm2, %v6399_v37  ;;  %v6070_v37 = vld [vmem:[#allocation10 + $0xf8] sm:$0xff] }
0x26fd   : > { %10316 = vmatpush3.msra.mxu1 %v6567_v39  ;;  %10317 = vmatprep.mubr.msk.f32.mxu1 %vm10953_vm0, %v10952_v0 }
0x26fe   : > { %10325 = vmatprep.subr.mxu1 %v10952_v0 }
0x275e   : > { %v6562_v42 = vpop.xlane.xlu0 %6561 }
0x275f   : > { %10565 = vrcp.f32 %v6562_v42 }
0x2762   : > { %v6791_v32 = vpop.permute.xlu0 %6790 }
0x276c   : > { %v10566_v43 = vpop.eup %10565 }
0x276d   : > { %v6564_v47 = vmul.f32 %v10566_v43, %v10562_v23 }
0x276f   : > { %10318 = vmatmul.mubr.msk.f32.vlgmr.msra.gmra.mxu1 %vm926_vm2, %v6564_v47  ;;  %v9250_v47 = vld [vmem:[#allocation11 + $0x7] ss:$0 sm:$0xff] }
0x2770   : > { %10326 = vmatpush3.msra.mxu1 %v6067_v48  ;;  %10327 = vmatprep.mubr.msk.f32.mxu1 %vm10953_vm0, %v10952_v0 }
0x2771   : > { %10335 = vmatprep.subr.mxu1 %v10952_v0 }
0x27bc   : > { %v6469_v24 = vpop.f32.mrf.mxu1 }
0x27bd   : > { %10328 = vmatmul.mubr.msk.f32.vlgmr.msra.gmra.mxu1 %vm926_vm2, %v6469_v24 }
0x27be   : > { %v10309_v50 = vpop.f32.mrf.mxu1  ;;  %10337 = vmatprep.mubr.msk.f32.mxu1 %vm10953_vm0, %v10952_v0 }
0x282f   : > { %v6638_v51 = vpop.f32.mrf.mxu1 }
0x2830   : > { %10323 = vmatmul.mubr.msk.f32.vlgmr.msra.gmra.mxu0 %vm926_vm2, %v6638_v51 }
0x2831   : > { %10331 = vmatpush3.xpose.msk.msra.mxu0 %vm926_vm2, %v6791_v32  ;;  %v10319_v33 = vpop.f32.mrf.mxu1  ;;  %10332 = vmatprep.mubr.msk.f32.mxu0 %vm10953_vm0, %v10952_v0 }
0x2832   : > { %10340 = vmatprep.subr.mxu0 %v10952_v0 }
0x2834   : > { %10333 = vmatmul.mubr.msk.f32.vlgmr.msra.gmra.mxu0 %vm926_vm2, %v6789_v53 }
0x2835   : > { %10342 = vmatprep.mubr.msk.f32.mxu0 %vm10953_vm0, %v10952_v0  ;;  %10341 = vmatpush3.msra.mxu0 %v6069_v8 }
0x2836   : > { %10350 = vmatprep.subr.mxu0 %v10952_v0 }
0x287d   : > { %v6784_v54 = vpop.f32.mrf.mxu1 }
0x287f   : > { %v10329_v52 = vpop.f32.mrf.mxu1 }
0x28f0   : > { %v6711_v57 = vpop.f32.mrf.mxu0 }
0x28f1   : > { %v6785_v21 = vadd.f32 %v6784_v54, %v6711_v57 }
0x28f2   : > { %v10324_v34 = vpop.f32.mrf.mxu0 }
0x28f4   : > { %v6862_v58 = vpop.f32.mrf.mxu0 }
0x28f5   : > { %v6866_v60 = vmul.f32 0.35355338, %v6862_v58  ;;  %v7361_v58 = vld [vmem:[#allocation13 + $0x388] sm:$0xff] }
0x28f6   : > { %v10334_v61 = vpop.f32.mrf.mxu0 }
0x28f7   : > { %v6867_v62 = vfloor.f32 %v6866_v60  ;;  %v7363_v60 = vld [vmem:[#allocation13 + $0x398] sm:$0xff]  ;;  %v7360_v61 = vld [vmem:[#allocation13 + $0x380] sm:$0xff] }
0x28f9   : > { %v6868_v9 = vadd.f32 %v11885_v6, %v6867_v62  ;;  %v7362_v62 = vld [vmem:[#allocation13 + $0x390] sm:$0xff] }
0x28fb   : > { %v6869_v18 = vsel %vm926_vm2, %v6868_v9, -inf }
0x28fc   : > { %6870 = vmax.xlane.f32.xlu1 %v6869_v18  ;;  %v7344_v18 = vld [vmem:[#allocation13 + $0x300] sm:$0xff] }
0x290d   : > { %7032 = vrot.lane.b32.xlu1 %v11853_v25, %s10956_s24 }
0x2911   : > { %7030 = vrot.lane.b32.xlu1 %v11869_v63, %s10956_s24 }
0x2985   : > { %v6871_v1 = vpop.xlane.xlu1 %6870 }
0x2986   : > { %v6872_v35 = vsub.f32 %v6868_v9, %v6871_v1  ;;  %v7345_v9 = vld [vmem:[#allocation13 + $0x308] sm:$0xff]  ;;  %v7346_v1 = vld [vmem:[#allocation13 + $0x310] sm:$0xff] }
0x2988   : > { %v6873_v3 = vmul.f32 1.442695, %v6872_v35  ;;  %v7329_v35 = vld [vmem:[#allocation13 + $0x288] sm:$0xff] }
0x2989   : > { %v7033_v38 = vpop.permute.xlu1 %7032 }
0x298a   : > { %10567 = vpow2.f32 %v6873_v3  ;;  %v7331_v3 = vld [vmem:[#allocation13 + $0x298] sm:$0xff] }
0x298d   : > { %v7031_v7 = vpop.permute.xlu1 %7030 }
0x2997   : > { %v10568_v4 = vpop.eup %10567 }
0x2998   : > { %v6875_v49 = vsel %vm926_vm2, %v10568_v4, 0.0 }
0x2999   : > { %6876 = vadd.xlane.f32.xlu0 %v6875_v49  ;;  %v7330_v49 = vld [vmem:[#allocation13 + $0x290] sm:$0xff] }
0x29af   : > { %6880 = vrot.lane.b32.xlu0 %v11877_v2, %s10955_s14  ;;  %s10957_s14 = smov [#allocation19]  }
0x2a22   : > { %v6877_v59 = vpop.xlane.xlu0 %6876 }
0x2a23   : > { %10569 = vrcp.f32 %v6877_v59  ;;  %v7313_v59 = vld [vmem:[#allocation13 + $0x208] sm:$0xff] }
0x2a26   : > { %v6881_v5 = vpop.permute.xlu0 %6880 }
0x2a27   : > { %10336 = vmatpush3.msra.mxu1 %v6881_v5  ;;  %v7315_v5 = vld [vmem:[#allocation13 + $0x218] sm:$0xff] }
0x2a28   : > { %10345 = vmatprep.subr.mxu1 %v10952_v0 }
0x2a30   : > { %v10570_v25 = vpop.eup %10569 }
0x2a31   : > { %v6879_v63 = vmul.f32 %v10570_v25, %v10568_v4  ;;  %v7328_v4 = vld [vmem:[#allocation13 + $0x280] sm:$0xff] }
0x2a32   : > { %v7312_v25 = vld [vmem:[#allocation13 + $0x200] sm:$0xff] }
0x2a33   : > { %10338 = vmatmul.mubr.msk.f32.vlgmr.msra.gmra.mxu1 %vm926_vm2, %v6879_v63  ;;  %v7365_v63 = vld [vmem:[#allocation13 + $0x3a8] sm:$0xff] }
0x2a34   : > { %10346 = vmatpush3.xpose.msk.msra.mxu1 %vm926_vm2, %v7033_v38  ;;  %10347 = vmatprep.mubr.msk.f32.mxu1 %vm10953_vm0, %v10952_v0  ;;  %v7314_v38 = vld [vmem:[#allocation13 + $0x210] sm:$0xff] }
0x2a35   : > { %10355 = vmatprep.subr.mxu1 %v10952_v0 }
0x2a37   : > { %10348 = vmatmul.mubr.msk.f32.vlgmr.msra.gmra.mxu1 %vm926_vm2, %v7031_v7  ;;  %v7367_v7 = vld [vmem:[#allocation13 + $0x3b8] sm:$0xff] }
0x2a38   : > { %10357 = vmatprep.mubr.msk.f32.mxu1 %vm10953_vm0, %v10952_v0  ;;  %10356 = vmatpush3.msra.mxu1 %v6070_v37  ;;  %v7317_v37 = vld [vmem:[#allocation13 + $0x228] sm:$0xff] }
0x2a39   : > { %7559 = vmatprep.subr.mxu1 %v7363_v60  ;;  %v7322_v60 = vld [vmem:[#allocation13 + $0x250] sm:$0xff] }
0x2af3   : > { %v6952_v10 = vpop.f32.mrf.mxu1 }
0x2af4   : > { %10343 = vmatmul.mubr.msk.f32.vlgmr.msra.gmra.mxu0 %vm926_vm2, %v6952_v10 }
0x2af5   : > { %v10339_v16 = vpop.f32.mrf.mxu1  ;;  %10352 = vmatprep.mubr.msk.f32.mxu0 %vm10953_vm0, %v10952_v0 }
0x2af7   : > { %v7104_v11 = vpop.f32.mrf.mxu1 }
0x2af8   : > { %v7108_v12 = vmul.f32 0.35355338, %v7104_v11 }
0x2af9   : > { %v10349_v15 = vpop.f32.mrf.mxu1 }
0x2afa   : > { %v7109_v13 = vfloor.f32 %v7108_v12  ;;  %v9253_v12 = vld [vmem:[%s12095_s12 + $0x4] ss:$0 sm:$0xff] }
0x2afc   : > { %v7110_v14 = vadd.f32 %v11885_v6, %v7109_v13  ;;  %v9254_v13 = vld [vmem:[%s12096_s13 + $0x4] ss:$0 sm:$0xff] }
0x2afe   : > { %v7111_v55 = vsel %vm926_vm2, %v7110_v14, -inf }
0x2aff   : > { %7112 = vmax.xlane.f32.xlu0 %v7111_v55 }
0x2b15   : > { %7122 = vrot.lane.b32.xlu0 %v11877_v2, %s10956_s24  ;;  %s10850_s24 = sshll.u32 %s10957_s14, 4  ;;  %s10851_s24 = int_to_ptr.vmem [resolvable:$false] %s10850_s24 }
0x2b16   : > { %s10852_s19 = scalar_lea.vmem %s10851_s24, 256  ;;  %p10853_p5 = scmp.lt.s32.totalorder %s8921_s28, %s10851_s24 }
0x2b17   : > { %p10854_p8 = scmp.lt.s32.totalorder %s10852_s19, %s10846_s27 }
0x2b19   : > { %p10855_p10 = por %p10854_p8, %p10853_p5 }
0x2b1b   : > { %p10856_p11 = pnand %p10855_p10, %p10849_p3 }
0x2b88   : > { %v7113_v56 = vpop.xlane.xlu0 %7112 }
0x2b89   : > { %v7114_v17 = vsub.f32 %v7110_v14, %v7113_v56  ;;  %v7364_v56 = vld [vmem:[#allocation13 + $0x3a0] sm:$0xff] }
0x2b8b   : > { %v7115_v20 = vmul.f32 1.442695, %v7114_v17  ;;  %v7366_v17 = vld [vmem:[#allocation13 + $0x3b0] sm:$0xff] }
0x2b8c   : > { %v7123_v22 = vpop.permute.xlu0 %7122 }
0x2b8d   : > { %10571 = vpow2.f32 %v7115_v20  ;;  %10351 = vmatpush3.msra.mxu0 %v7123_v22  ;;  %v7349_v20 = vld [vmem:[#allocation13 + $0x328] sm:$0xff]  ;;  %v7351_v22 = vld [vmem:[#allocation13 + $0x338] sm:$0xff] }
0x2b8e   : > { %7488 = vmatprep.subr.mxu0 %v7361_v58  ;;  %v7320_v58 = vld [vmem:[#allocation13 + $0x240] sm:$0xff] }
0x2b9a   : > { %v10572_v30 = vpop.eup %10571 }
0x2b9b   : > { %v7117_v23 = vsel %vm926_vm2, %v10572_v30, 0.0 }
0x2b9c   : > { %7118 = vadd.xlane.f32.xlu1 %v7117_v23  ;;  %v7350_v23 = vld [vmem:[#allocation13 + $0x330] sm:$0xff] }
0x2bb4   : > { %v7025_v29 = vpop.f32.mrf.mxu0 }
0x2bb5   : > { %v7029_v36 = vadd.f32 %v7025_v29, %v6785_v21  ;;  %v7333_v21 = vld [vmem:[#allocation13 + $0x2a8] sm:$0xff]  ;;  %v7335_v29 = vld [vmem:[#allocation13 + $0x2b8] sm:$0xff] }
0x2bb6   : > { %v10344_v6 = vpop.f32.mrf.mxu0 }
0x2bb7   : > { %v7334_v6 = vld [vmem:[#allocation13 + $0x2b0] sm:$0xff] }
0x2c25   : > { %v7119_v39 = vpop.xlane.xlu1 %7118 }
0x2c26   : > { %10573 = vrcp.f32 %v7119_v39  ;;  %v7319_v39 = vld [vmem:[#allocation13 + $0x238] sm:$0xff] }
0x2c33   : > { %v10574_v41 = vpop.eup %10573 }
0x2c34   : > { %v7121_v2 = vmul.f32 %v10574_v41, %v10572_v30  ;;  %v7348_v30 = vld [vmem:[#allocation13 + $0x320] sm:$0xff] }
0x2c35   : > { %v7316_v41 = vld [vmem:[#allocation13 + $0x220] sm:$0xff] }
0x2c36   : > { %10353 = vmatmul.mubr.msk.f32.vlgmr.msra.gmra.mxu0 %vm926_vm2, %v7121_v2  ;;  %v7318_v2 = vld [vmem:[#allocation13 + $0x230] sm:$0xff] }
0x2c37   : > { %7528 = vmatprep.mubr.f32.mxu0 %v10952_v0  ;;  %7489 = vmatpush1.msra.mxu0 %v7360_v61  ;;  %v7373_v61 = vld [vmem:[#allocation13 + $0x3e8] sm:$0xff] }
0x2c38   : > { %7490 = vmatprep.subr.mxu0 %v7345_v9  ;;  %v7372_v9 = vld [vmem:[#allocation13 + $0x3e0] sm:$0xff] }
0x2c39   : > { %7491 = vmatpush1.msra.mxu0 %v7344_v18  ;;  %v7357_v18 = vld [vmem:[#allocation13 + $0x368] sm:$0xff] }
0x2c3a   : > { %7492 = vmatprep.subr.mxu0 %v7329_v35  ;;  %v7356_v35 = vld [vmem:[#allocation13 + $0x360] sm:$0xff] }
0x2c3b   : > { %7493 = vmatpush1.msra.mxu0 %v7328_v4  ;;  %v7341_v4 = vld [vmem:[#allocation13 + $0x2e8] sm:$0xff] }
0x2c3c   : > { %7494 = vmatprep.subr.mxu0 %v7313_v59  ;;  %v7340_v59 = vld [vmem:[#allocation13 + $0x2e0] sm:$0xff] }
0x2c3d   : > { %7495 = vmatpush1.msra.mxu0 %v7312_v25  ;;  %v7325_v25 = vld [vmem:[#allocation13 + $0x268] sm:$0xff] }
0x2c3e   : > { %7630 = vmatprep.subr.mxu0 %v7365_v63  ;;  %v7324_v63 = vld [vmem:[#allocation13 + $0x260] sm:$0xff] }
0x2cf6   : > { %v7194_v42 = vpop.f32.mrf.mxu0 }
0x2cf7   : > { %10358 = vmatmul.mubr.msk.f32.vlgmr.msra.gmra.mxu1 %vm926_vm2, %v7194_v42  ;;  %v7369_v42 = vld [vmem:[#allocation13 + $0x3c8] sm:$0xff] }
0x2cf8   : > { %v10354_v43 = vpop.f32.mrf.mxu0  ;;  %7599 = vmatprep.mubr.f32.mxu1 %v10952_v0  ;;  %7560 = vmatpush1.msra.mxu1 %v7362_v62  ;;  %v7375_v62 = vld [vmem:[#allocation13 + $0x3f8] sm:$0xff] }
0x2cf9   : > { %v7371_v43 = vld [vmem:[#allocation13 + $0x3d8] sm:$0xff] }
0x2db7   : > { %v7267_v48 = vpop.f32.mrf.mxu1 }
0x2db8   : > { %v7271_v24 = vadd.f32 %v7267_v48, %v7029_v36  ;;  %v7332_v36 = vld [vmem:[#allocation13 + $0x2a0] sm:$0xff]  ;;  %v7370_v48 = vld [vmem:[#allocation13 + $0x3d0] sm:$0xff] }
0x2db9   : > { %v10359_v50 = vpop.f32.mrf.mxu1 }
0x2dba   : > { %v7278_v51 = vadd.f32 %v9250_v47, %v7271_v24  ;;  %v7368_v47 = vld [vmem:[#allocation13 + $0x3c0] sm:$0xff]  ;;  %v7353_v24 = vld [vmem:[#allocation13 + $0x348] sm:$0xff]  ;;  %v7355_v50 = vld [vmem:[#allocation13 + $0x358] sm:$0xff] }
0x2dbc   : > { %v7279_v32 = vadd.f32 %v7278_v51, %v11847_v40  ;;  %v7347_v40 = vld [vmem:[#allocation13 + $0x318] sm:$0xff]  ;;  %v7352_v51 = vld [vmem:[#allocation13 + $0x340] sm:$0xff] }
0x2dbd   : > { %7561 = vmatprep.subr.mxu1 %v7347_v40  ;;  %v7374_v40 = vld [vmem:[#allocation13 + $0x3f0] sm:$0xff] }
0x2dbe   : > { %v7284_v33 = vsel %vm700_vm1, %v7279_v32, 0.0  ;;  %7562 = vmatpush1.msra.mxu1 %v7346_v1  ;;  %v7359_v1 = vld [vmem:[#allocation13 + $0x378] sm:$0xff] }
0x2dbf   : > { %7285 = vadd.xlane.f32.xlu1 %v7284_v33  ;;  %7563 = vmatprep.subr.mxu1 %v7331_v3  ;;  %v7337_v33 = vld [vmem:[#allocation13 + $0x2c8] sm:$0xff]  ;;  %v7358_v3 = vld [vmem:[#allocation13 + $0x370] sm:$0xff] }
0x2dc0   : > { %7564 = vmatpush1.msra.mxu1 %v7330_v49  ;;  %v7343_v49 = vld [vmem:[#allocation13 + $0x2f8] sm:$0xff] }
0x2dc1   : > { %7565 = vmatprep.subr.mxu1 %v7315_v5  ;;  %v7342_v5 = vld [vmem:[#allocation13 + $0x2f0] sm:$0xff] }
0x2dc2   : > { %7566 = vmatpush1.msra.mxu1 %v7314_v38  ;;  %v7327_v38 = vld [vmem:[#allocation13 + $0x278] sm:$0xff] }
0x2dc3   : > { %7701 = vmatprep.subr.mxu1 %v7367_v7  ;;  %v7326_v7 = vld [vmem:[#allocation13 + $0x270] sm:$0xff] }
0x2e48   : > { %v7286_v53 = vpop.xlane.xlu1 %7285 }
0x2e49   : > { %v7287_v54 = vmul.f32 0.03125, %v7286_v53  ;;  %v7339_v53 = vld [vmem:[#allocation13 + $0x2d8] sm:$0xff] }
0x2e4b   : > { %v7288_v52 = vsub.f32 %v7279_v32, %v7287_v54  ;;  %v7354_v32 = vld [vmem:[#allocation13 + $0x350] sm:$0xff]  ;;  %v7336_v54 = vld [vmem:[#allocation13 + $0x2c0] sm:$0xff] }
0x2e4d   : > { %v7289_v57 = vmul.f32 %v7288_v52, %v7288_v52 }
0x2e4f   : > { %v7290_v34 = vsel %vm700_vm1, %v7289_v57, 0.0  ;;  %v7321_v57 = vld [vmem:[#allocation13 + $0x248] sm:$0xff] }
0x2e50   : > { %7291 = vadd.xlane.f32.xlu1 %v7290_v34  ;;  %v7323_v34 = vld [vmem:[#allocation13 + $0x258] sm:$0xff] }
0x2ed9   : > { %v7292_v8 = vpop.xlane.xlu1 %7291 }
0x2eda   : > { %v7293_v10 = vmul.f32 0.03125, %v7292_v8  ;;  %v8080_v8 = vld [vmem:[#allocation16 + $0x8f8] sm:$0xff] }
0x2edc   : > { %v7294_v16 = vadd.f32 1e-05, %v7293_v10  ;;  %v8112_v10 = vld [vmem:[#allocation16 + $0x9f8] sm:$0xff] }
0x2ede   : > { %10575 = vrsqrt.f32 %v7294_v16  ;;  %v8064_v16 = vld [vmem:[#allocation16 + $0x878] sm:$0xff] }
0x2eeb   : > { %v10576_v11 = vpop.eup %10575 }
0x2eec   : > { %v7296_v15 = vmul.f32 %v10576_v11, %v7288_v52  ;;  %v7338_v52 = vld [vmem:[#allocation13 + $0x2d0] sm:$0xff]  ;;  %v8096_v11 = vld [vmem:[#allocation16 + $0x978] sm:$0xff] }
0x2eee   : > { %v7303_v14 = vmul.f32 %v9253_v12, %v7296_v15  ;;  %v8079_v12 = vld [vmem:[#allocation16 + $0x8f0] sm:$0xff] }
0x2eef   : > { %v8111_v15 = vld [vmem:[#allocation16 + $0x9f0] sm:$0xff] }
0x2ef0   : > { %v11959_v55 = vadd.f32 %v9254_v13, %v7303_v14  ;;  %v8063_v13 = vld [vmem:[#allocation16 + $0x870] sm:$0xff] }
0x2ef1   : > { %v8095_v14 = vld [vmem:[#allocation16 + $0x970] sm:$0xff] }
0x2ef2   : > { %9255 = vmatmul.mubr.msk.f32.vlgmr.msra.gmra.mxu0 %vm700_vm1, %v11959_v55  ;;  %9256 = vmatmul.mubr.msk.f32.vlgmr.msra.gmra.mxu1 %vm700_vm1, %v11959_v55 }
0x2ef3   : > { %7631 = vmatpush1.msra.mxu0 %v7364_v56  ;;  %7702 = vmatpush1.msra.mxu1 %v7366_v17  ;;  %v8078_v56 = vld [vmem:[#allocation16 + $0x8e8] sm:$0xff] }
0x2ef4   : > { %7632 = vmatprep.subr.mxu0 %v7349_v20  ;;  %7703 = vmatprep.subr.mxu1 %v7351_v22  ;;  %v8110_v17 = vld [vmem:[#allocation16 + $0x9e8] sm:$0xff]  ;;  %v8077_v22 = vld [vmem:[#allocation16 + $0x8e0] sm:$0xff] }
0x2ef5   : > { %7633 = vmatpush1.msra.mxu0 %v7348_v30  ;;  %7704 = vmatpush1.msra.mxu1 %v7350_v23  ;;  %v8094_v20 = vld [vmem:[#allocation16 + $0x968] sm:$0xff]  ;;  %v8109_v30 = vld [vmem:[#allocation16 + $0x9e0] sm:$0xff] }
0x2ef6   : > { %7634 = vmatprep.subr.mxu0 %v7333_v21  ;;  %7705 = vmatprep.subr.mxu1 %v7335_v29  ;;  %v8061_v23 = vld [vmem:[#allocation16 + $0x860] sm:$0xff]  ;;  %v8076_v29 = vld [vmem:[#allocation16 + $0x8d8] sm:$0xff] }
0x2ef7   : > { %7635 = vmatpush1.msra.mxu0 %v7332_v36  ;;  %7706 = vmatpush1.msra.mxu1 %v7334_v6  ;;  %v8093_v21 = vld [vmem:[#allocation16 + $0x960] sm:$0xff]  ;;  %v8108_v36 = vld [vmem:[#allocation16 + $0x9d8] sm:$0xff] }
0x2ef8   : > { %7636 = vmatprep.subr.mxu0 %v7317_v37  ;;  %7707 = vmatprep.subr.mxu1 %v7319_v39  ;;  %v8060_v6 = vld [vmem:[#allocation16 + $0x858] sm:$0xff]  ;;  %v8075_v39 = vld [vmem:[#allocation16 + $0x8d0] sm:$0xff] }
0x2ef9   : > { %7637 = vmatpush1.msra.mxu0 %v7316_v41  ;;  %7670 = vmatprep.mubr.f32.mxu0 %v10952_v0  ;;  %v8092_v37 = vld [vmem:[#allocation16 + $0x958] sm:$0xff]  ;;  %v8107_v41 = vld [vmem:[#allocation16 + $0x9d0] sm:$0xff] }
0x2efa   : > { %7708 = vmatpush1.msra.mxu1 %v7318_v2  ;;  %7741 = vmatprep.mubr.f32.mxu1 %v10952_v0  ;;  %v8059_v2 = vld [vmem:[#allocation16 + $0x850] sm:$0xff] }
0x2efb   : > { %9257 = vmatmul.mubr.msk.f32.vlgmr.msra.gmra.mxu0 %vm700_vm1, %v11959_v55  ;;  %9258 = vmatmul.mubr.msk.f32.vlgmr.msra.gmra.mxu1 %vm700_vm1, %v11959_v55 }
0x2efc   : > { %7772 = vmatprep.subr.mxu0 %v7369_v42  ;;  %7843 = vmatprep.subr.mxu1 %v7371_v43  ;;  %v8091_v42 = vld [vmem:[#allocation16 + $0x950] sm:$0xff]  ;;  %v8074_v43 = vld [vmem:[#allocation16 + $0x8c8] sm:$0xff] }
0x2efd   : > { %7773 = vmatpush1.msra.mxu0 %v7368_v47  ;;  %7844 = vmatpush1.msra.mxu1 %v7370_v48  ;;  %v8106_v47 = vld [vmem:[#allocation16 + $0x9c8] sm:$0xff] }
0x2efe   : > { %7774 = vmatprep.subr.mxu0 %v7353_v24  ;;  %7845 = vmatprep.subr.mxu1 %v7355_v50  ;;  %v8058_v48 = vld [vmem:[#allocation16 + $0x848] sm:$0xff]  ;;  %v8073_v50 = vld [vmem:[#allocation16 + $0x8c0] sm:$0xff] }
0x2eff   : > { %7775 = vmatpush1.msra.mxu0 %v7352_v51  ;;  %7846 = vmatpush1.msra.mxu1 %v7354_v32  ;;  %v8090_v24 = vld [vmem:[#allocation16 + $0x948] sm:$0xff]  ;;  %v8105_v51 = vld [vmem:[#allocation16 + $0x9c0] sm:$0xff] }
0x2f00   : > { %7776 = vmatprep.subr.mxu0 %v7337_v33  ;;  %7847 = vmatprep.subr.mxu1 %v7339_v53  ;;  %v8057_v32 = vld [vmem:[#allocation16 + $0x840] sm:$0xff]  ;;  %v8072_v53 = vld [vmem:[#allocation16 + $0x8b8] sm:$0xff] }
0x2f01   : > { %7777 = vmatpush1.msra.mxu0 %v7336_v54  ;;  %7848 = vmatpush1.msra.mxu1 %v7338_v52  ;;  %v8089_v33 = vld [vmem:[#allocation16 + $0x940] sm:$0xff]  ;;  %v8104_v54 = vld [vmem:[#allocation16 + $0x9b8] sm:$0xff] }
0x2f02   : > { %7778 = vmatprep.subr.mxu0 %v7321_v57  ;;  %7849 = vmatprep.subr.mxu1 %v7323_v34  ;;  %v8056_v52 = vld [vmem:[#allocation16 + $0x838] sm:$0xff]  ;;  %v8071_v34 = vld [vmem:[#allocation16 + $0x8b0] sm:$0xff] }
0x2f03   : > { %7779 = vmatpush1.msra.mxu0 %v7320_v58  ;;  %7812 = vmatprep.mubr.f32.mxu0 %v10952_v0  ;;  %v8088_v57 = vld [vmem:[#allocation16 + $0x938] sm:$0xff]  ;;  %v8103_v58 = vld [vmem:[#allocation16 + $0x9b0] sm:$0xff] }
0x2f04   : > { %7850 = vmatpush1.msra.mxu1 %v7322_v60  ;;  %7883 = vmatprep.mubr.f32.mxu1 %v10952_v0  ;;  %v8055_v60 = vld [vmem:[#allocation16 + $0x830] sm:$0xff] }
0x2f05   : > { %9259 = vmatmul.mubr.msk.f32.vlgmr.msra.gmra.mxu0 %vm700_vm1, %v11959_v55  ;;  %9260 = vmatmul.mubr.msk.f32.vlgmr.msra.gmra.mxu1 %vm700_vm1, %v11959_v55 }
0x2f06   : > { %7914 = vmatprep.subr.mxu0 %v7373_v61  ;;  %7985 = vmatprep.subr.mxu1 %v7375_v62  ;;  %v8087_v61 = vld [vmem:[#allocation16 + $0x930] sm:$0xff]  ;;  %v8070_v62 = vld [vmem:[#allocation16 + $0x8a8] sm:$0xff] }
0x2f07   : > { %7915 = vmatpush1.msra.mxu0 %v7372_v9  ;;  %7986 = vmatpush1.msra.mxu1 %v7374_v40  ;;  %v8102_v9 = vld [vmem:[#allocation16 + $0x9a8] sm:$0xff] }
0x2f08   : > { %7916 = vmatprep.subr.mxu0 %v7357_v18  ;;  %7987 = vmatprep.subr.mxu1 %v7359_v1  ;;  %v8054_v40 = vld [vmem:[#allocation16 + $0x828] sm:$0xff]  ;;  %v8069_v1 = vld [vmem:[#allocation16 + $0x8a0] sm:$0xff] }
0x2f09   : > { %7917 = vmatpush1.msra.mxu0 %v7356_v35  ;;  %7988 = vmatpush1.msra.mxu1 %v7358_v3  ;;  %v8086_v18 = vld [vmem:[#allocation16 + $0x928] sm:$0xff]  ;;  %v8101_v35 = vld [vmem:[#allocation16 + $0x9a0] sm:$0xff] }
0x2f0a   : > { %7918 = vmatprep.subr.mxu0 %v7341_v4  ;;  %7989 = vmatprep.subr.mxu1 %v7343_v49  ;;  %v8053_v3 = vld [vmem:[#allocation16 + $0x820] sm:$0xff]  ;;  %v8068_v49 = vld [vmem:[#allocation16 + $0x898] sm:$0xff] }
0x2f0b   : > { %7919 = vmatpush1.msra.mxu0 %v7340_v59  ;;  %7990 = vmatpush1.msra.mxu1 %v7342_v5  ;;  %v8085_v4 = vld [vmem:[#allocation16 + $0x920] sm:$0xff]  ;;  %v8100_v59 = vld [vmem:[#allocation16 + $0x998] sm:$0xff] }
0x2f0c   : > { %7920 = vmatprep.subr.mxu0 %v7325_v25  ;;  %7991 = vmatprep.subr.mxu1 %v7327_v38  ;;  %v8052_v5 = vld [vmem:[#allocation16 + $0x818] sm:$0xff]  ;;  %v8067_v38 = vld [vmem:[#allocation16 + $0x890] sm:$0xff] }
0x2f0d   : > { %7921 = vmatpush1.msra.mxu0 %v7324_v63  ;;  %7954 = vmatprep.mubr.f32.mxu0 %v10952_v0  ;;  %v8084_v25 = vld [vmem:[#allocation16 + $0x918] sm:$0xff]  ;;  %v8099_v63 = vld [vmem:[#allocation16 + $0x990] sm:$0xff] }
0x2f0e   : > { %7992 = vmatpush1.msra.mxu1 %v7326_v7  ;;  %8025 = vmatprep.mubr.f32.mxu1 %v10952_v0  ;;  %v8062_v0 = vld [vmem:[#allocation16 + $0x868] sm:$0xff]  ;;  %v8051_v7 = vld [vmem:[#allocation16 + $0x810] sm:$0xff] }
0x2f0f   : > { %9261 = vmatmul.mubr.msk.f32.vlgmr.msra.gmra.mxu0 %vm700_vm1, %v11959_v55  ;;  %9262 = vmatmul.mubr.msk.f32.vlgmr.msra.gmra.mxu1 %vm700_vm1, %v11959_v55 }
0x2f10   : > { %9708 = vmatprep.subr.mxu0 %v8080_v8  ;;  %9743 = vmatprep.subr.mxu1 %v8112_v10  ;;  %v8083_v8 = vld [vmem:[#allocation16 + $0x910] sm:$0xff]  ;;  %v8066_v10 = vld [vmem:[#allocation16 + $0x888] sm:$0xff] }
0x2f11   : > { %9709 = vmatpush3.msra.mxu0 %v8064_v16  ;;  %9744 = vmatpush3.msra.mxu1 %v8096_v11  ;;  %v8098_v16 = vld [vmem:[#allocation16 + $0x988] sm:$0xff] }
0x2f12   : > { %9710 = vmatprep.subr.mxu0 %v8079_v12  ;;  %9745 = vmatprep.subr.mxu1 %v8111_v15  ;;  %v8050_v11 = vld [vmem:[#allocation16 + $0x808] sm:$0xff]  ;;  %v8065_v15 = vld [vmem:[#allocation16 + $0x880] sm:$0xff] }
0x2f13   : > { %9711 = vmatpush3.msra.mxu0 %v8063_v13  ;;  %9746 = vmatpush3.msra.mxu1 %v8095_v14  ;;  %v8082_v12 = vld [vmem:[#allocation16 + $0x908] sm:$0xff]  ;;  %v8097_v13 = vld [vmem:[#allocation16 + $0x980] sm:$0xff] }
0x2f14   : > { %9712 = vmatprep.subr.mxu0 %v8078_v56  ;;  %9747 = vmatprep.subr.mxu1 %v8110_v17  ;;  %v8049_v14 = vld [vmem:[#allocation16 + $0x800] sm:$0xff]  ;;  %v8144_v17 = vld [vmem:[#allocation16 + $0xaf8] sm:$0xff] }
0x2f15   : > { %9713 = vmatpush3.msra.mxu0 %v8062_v0  ;;  %9748 = vmatpush3.msra.mxu1 %v8094_v20  ;;  %v8081_v56 = vld [vmem:[#allocation16 + $0x900] sm:$0xff]  ;;  %v8176_v0 = vld [vmem:[#allocation16 + $0xbf8] sm:$0xff]  ;;  %v11983_v20 = vld [vmem:[#allocation14 + $0x10] sm:$0xff] }
0x2f16   : > { %9714 = vmatprep.subr.mxu0 %v8077_v22  ;;  %9749 = vmatprep.subr.mxu1 %v8109_v30  ;;  %v7384_v22 = vrot.slane %v11983_v20, %v11613_v26  ;;  %v7392_v30 = vrot.slane %v11983_v20, %v11616_v27 }
0x2f17   : > { %9715 = vmatpush3.msra.mxu0 %v8061_v23  ;;  %9750 = vmatpush3.msra.mxu1 %v8093_v21  ;;  %v7388_v23 = vrot.slane %v11983_v20, %v11621_v19  ;;  %v7396_v21 = vrot.slane %v11983_v20, %v11624_v28 }
0x2f18   : > { %9716 = vmatprep.subr.mxu0 %v8076_v29  ;;  %9751 = vmatprep.subr.mxu1 %v8108_v36 }
0x2f19   : > { %9717 = vmatpush3.msra.mxu0 %v8060_v6  ;;  %9752 = vmatpush3.msra.mxu1 %v8092_v37 }
0x2f1a   : > { %9718 = vmatprep.subr.mxu0 %v8075_v39  ;;  %9753 = vmatprep.subr.mxu1 %v8107_v41 }
0x2f1b   : > { %9719 = vmatpush3.msra.mxu0 %v8059_v2  ;;  %9754 = vmatpush3.msra.mxu1 %v8091_v42 }
0x2f1c   : > { %9720 = vmatprep.subr.mxu0 %v8074_v43  ;;  %9755 = vmatprep.subr.mxu1 %v8106_v47 }
0x2f1d   : > { %9721 = vmatpush3.msra.mxu0 %v8058_v48  ;;  %9756 = vmatpush3.msra.mxu1 %v8090_v24 }
0x2f1e   : > { %9722 = vmatprep.subr.mxu0 %v8073_v50  ;;  %9757 = vmatprep.subr.mxu1 %v8105_v51  ;;  %v8128_v50 = vld [vmem:[#allocation16 + $0xa78] sm:$0xff] }
0x2f1f   : > { %9723 = vmatpush3.msra.mxu0 %v8057_v32  ;;  %9758 = vmatpush3.msra.mxu1 %v8089_v33  ;;  %v8160_v51 = vld [vmem:[#allocation16 + $0xb78] sm:$0xff]  ;;  %v8143_v32 = vld [vmem:[#allocation16 + $0xaf0] sm:$0xff] }
0x2f20   : > { %9724 = vmatprep.subr.mxu0 %v8072_v53  ;;  %9759 = vmatprep.subr.mxu1 %v8104_v54  ;;  %v8175_v33 = vld [vmem:[#allocation16 + $0xbf0] sm:$0xff]  ;;  %v7404_v53 = vrot.slane %v11983_v20, %v11635_v44  ;;  %v7412_v54 = vrot.slane %v11983_v20, %v11638_v45 }
0x2f21   : > { %9725 = vmatpush3.msra.mxu0 %v8056_v52  ;;  %9760 = vmatpush3.msra.mxu1 %v8088_v57  ;;  %v8127_v52 = vld [vmem:[#allocation16 + $0xa70] sm:$0xff] }
0x2f22   : > { %9726 = vmatprep.subr.mxu0 %v8071_v34  ;;  %9761 = vmatprep.subr.mxu1 %v8103_v58  ;;  %v8159_v57 = vld [vmem:[#allocation16 + $0xb70] sm:$0xff] }
0x2f23   : > { %9727 = vmatpush3.msra.mxu0 %v8055_v60  ;;  %9762 = vmatpush3.msra.mxu1 %v8087_v61  ;;  %v8142_v60 = vld [vmem:[#allocation16 + $0xae8] sm:$0xff] }
0x2f24   : > { %9728 = vmatprep.subr.mxu0 %v8070_v62  ;;  %9763 = vmatprep.subr.mxu1 %v8102_v9  ;;  %v8174_v61 = vld [vmem:[#allocation16 + $0xbe8] sm:$0xff] }
0x2f25   : > { %9729 = vmatpush3.msra.mxu0 %v8054_v40  ;;  %9764 = vmatpush3.msra.mxu1 %v8086_v18  ;;  %v8126_v62 = vld [vmem:[#allocation16 + $0xa68] sm:$0xff] }
0x2f26   : > { %9730 = vmatprep.subr.mxu0 %v8069_v1  ;;  %9765 = vmatprep.subr.mxu1 %v8101_v35  ;;  %v8158_v9 = vld [vmem:[#allocation16 + $0xb68] sm:$0xff]  ;;  %v8141_v1 = vld [vmem:[#allocation16 + $0xae0] sm:$0xff] }
0x2f27   : > { %9731 = vmatpush3.msra.mxu0 %v8053_v3  ;;  %9766 = vmatpush3.msra.mxu1 %v8085_v4  ;;  %v8173_v35 = vld [vmem:[#allocation16 + $0xbe0] sm:$0xff] }
0x2f28   : > { %9732 = vmatprep.subr.mxu0 %v8068_v49  ;;  %9767 = vmatprep.subr.mxu1 %v8100_v59  ;;  %v8125_v49 = vld [vmem:[#allocation16 + $0xa60] sm:$0xff] }
0x2f29   : > { %9733 = vmatpush3.msra.mxu0 %v8052_v5  ;;  %9768 = vmatpush3.msra.mxu1 %v8084_v25  ;;  %v8157_v59 = vld [vmem:[#allocation16 + $0xb60] sm:$0xff] }
0x2f2a   : > { %9734 = vmatprep.subr.mxu0 %v8067_v38  ;;  %9769 = vmatprep.subr.mxu1 %v8099_v63  ;;  %v8140_v38 = vld [vmem:[#allocation16 + $0xad8] sm:$0xff] }
0x2f2b   : > { %9735 = vmatpush3.msra.mxu0 %v8051_v7  ;;  %9770 = vmatpush3.msra.mxu1 %v8083_v8  ;;  %v8172_v63 = vld [vmem:[#allocation16 + $0xbd8] sm:$0xff] }
0x2f2c   : > { %9736 = vmatprep.subr.mxu0 %v8066_v10  ;;  %9771 = vmatprep.subr.mxu1 %v8098_v16  ;;  %v8124_v7 = vld [vmem:[#allocation16 + $0xa58] sm:$0xff]  ;;  %v8139_v10 = vld [vmem:[#allocation16 + $0xad0] sm:$0xff] }
0x2f2d   : > { %9737 = vmatpush3.msra.mxu0 %v8050_v11  ;;  %9772 = vmatpush3.msra.mxu1 %v8082_v12  ;;  %v8156_v8 = vld [vmem:[#allocation16 + $0xb58] sm:$0xff]  ;;  %v8171_v16 = vld [vmem:[#allocation16 + $0xbd0] sm:$0xff] }
0x2f2e   : > { %9738 = vmatprep.subr.mxu0 %v8065_v15  ;;  %9773 = vmatprep.subr.mxu1 %v8097_v13  ;;  %v8123_v11 = vld [vmem:[#allocation16 + $0xa50] sm:$0xff]  ;;  %v8138_v15 = vld [vmem:[#allocation16 + $0xac8] sm:$0xff] }
0x2f2f   : > { %9739 = vmatpush3.msra.mxu0 %v8049_v14  ;;  %9774 = vmatpush3.msra.mxu1 %v8081_v56  ;;  %v8155_v12 = vld [vmem:[#allocation16 + $0xb50] sm:$0xff]  ;;  %v8170_v13 = vld [vmem:[#allocation16 + $0xbc8] sm:$0xff] }
0x2f30   : > { %9778 = vmatprep.subr.mxu0 %v8144_v17  ;;  %9813 = vmatprep.subr.mxu1 %v8176_v0  ;;  %v8122_v14 = vld [vmem:[#allocation16 + $0xa48] sm:$0xff]  ;;  %v8137_v17 = vld [vmem:[#allocation16 + $0xac0] sm:$0xff] }
0x2f31   : > { %v8154_v56 = vld [vmem:[#allocation16 + $0xb48] sm:$0xff]  ;;  %v8169_v0 = vld [vmem:[#allocation16 + $0xbc0] sm:$0xff] }
0x2fb2   : > { %v7530_v29 = vpop.f32.mrf.mxu0  ;;  %v7601_v36 = vpop.f32.mrf.mxu1 }
0x2fb3   : > { %v7531_v6 = vadd.f32 %v7530_v29, %v7384_v22  ;;  %v7602_v37 = vadd.f32 %v7601_v36, %v7392_v30  ;;  %v8121_v22 = vld [vmem:[#allocation16 + $0xa40] sm:$0xff]  ;;  %v8120_v29 = vld [vmem:[#allocation16 + $0xa38] sm:$0xff] }
0x2fb4   : > { %v7532_v39 = vpop.f32.mrf.mxu0  ;;  %v7603_v41 = vpop.f32.mrf.mxu1  ;;  %v8153_v30 = vld [vmem:[#allocation16 + $0xb40] sm:$0xff]  ;;  %v8152_v36 = vld [vmem:[#allocation16 + $0xb38] sm:$0xff] }
0x2fb5   : > { %v7533_v2 = vadd.f32 %v7532_v39, %v7388_v23  ;;  %v7604_v42 = vadd.f32 %v7603_v41, %v7396_v21  ;;  %v8032_v48 = vmax.f32 %v7531_v6, 0.0  ;;  %v8034_v24 = vmax.f32 %v7602_v37, 0.0  ;;  %v8136_v23 = vld [vmem:[#allocation16 + $0xab8] sm:$0xff]  ;;  %v8135_v6 = vld [vmem:[#allocation16 + $0xab0] sm:$0xff] }
0x2fb6   : > { %v8168_v21 = vld [vmem:[#allocation16 + $0xbb8] sm:$0xff]  ;;  %v8167_v37 = vld [vmem:[#allocation16 + $0xbb0] sm:$0xff] }
0x2fb7   : > { %v8033_v43 = vmax.f32 %v7533_v2, 0.0  ;;  %v8035_v47 = vmax.f32 %v7604_v42, 0.0  ;;  %v8119_v39 = vld [vmem:[#allocation16 + $0xa30] sm:$0xff]  ;;  %v8134_v2 = vld [vmem:[#allocation16 + $0xaa8] sm:$0xff] }
0x2fb8   : > { %v8151_v41 = vld [vmem:[#allocation16 + $0xb30] sm:$0xff]  ;;  %v8166_v42 = vld [vmem:[#allocation16 + $0xba8] sm:$0xff] }
0x2fb9   : > { %8377 = vmatprep.mubr.f32.mxu0 %v8033_v43  ;;  %8447 = vmatprep.mubr.f32.mxu1 %v8035_v47  ;;  %v8118_v43 = vld [vmem:[#allocation16 + $0xa28] sm:$0xff] }
0x2fba   : > { %8378 = vmatmul.mubr.f32.vlgmr.msra.gmra.mxu0 %v8032_v48  ;;  %8448 = vmatmul.mubr.f32.vlgmr.msra.gmra.mxu1 %v8034_v24  ;;  %v8150_v47 = vld [vmem:[#allocation16 + $0xb28] sm:$0xff]  ;;  %v8133_v48 = vld [vmem:[#allocation16 + $0xaa0] sm:$0xff] }
0x2fbb   : > { %v11997_v34 = vpop.f32.mrf.mxu0  ;;  %v11999_v58 = vpop.f32.mrf.mxu1  ;;  %9779 = vmatpush3.msra.mxu0 %v8128_v50  ;;  %9814 = vmatpush3.msra.mxu1 %v8160_v51  ;;  %v8165_v24 = vld [vmem:[#allocation16 + $0xba0] sm:$0xff] }
0x2fbc   : > { %9780 = vmatprep.subr.mxu0 %v8143_v32  ;;  %9815 = vmatprep.subr.mxu1 %v8175_v33  ;;  %v8117_v50 = vld [vmem:[#allocation16 + $0xa20] sm:$0xff]  ;;  %v8132_v33 = vld [vmem:[#allocation16 + $0xa98] sm:$0xff] }
0x2fbd   : > { %v7674_v40 = vpop.f32.mrf.mxu0  ;;  %v7745_v18 = vpop.f32.mrf.mxu1  ;;  %9781 = vmatpush3.msra.mxu0 %v8127_v52  ;;  %9816 = vmatpush3.msra.mxu1 %v8159_v57  ;;  %v8149_v51 = vld [vmem:[#allocation16 + $0xb20] sm:$0xff]  ;;  %v7408_v52 = vrot.slane %v11983_v20, %v11652_v46 }
0x2fbe   : > { %v7675_v3 = vadd.f32 %v7674_v40, %v7404_v53  ;;  %v7746_v4 = vadd.f32 %v7745_v18, %v7412_v54  ;;  %9782 = vmatprep.subr.mxu0 %v8142_v60  ;;  %9817 = vmatprep.subr.mxu1 %v8174_v61  ;;  %v8164_v53 = vld [vmem:[#allocation16 + $0xb98] sm:$0xff]  ;;  %v7400_v54 = vrot.slane %v11983_v20, %v11649_v31  ;;  %v8163_v40 = vld [vmem:[#allocation16 + $0xb90] sm:$0xff] }
0x2fbf   : > { %9783 = vmatpush3.msra.mxu0 %v8126_v62  ;;  %9818 = vmatpush3.msra.mxu1 %v8158_v9  ;;  %v8116_v60 = vld [vmem:[#allocation16 + $0xa18] sm:$0xff]  ;;  %v8131_v9 = vld [vmem:[#allocation16 + $0xa90] sm:$0xff] }
0x2fc0   : > { %v8037_v5 = vmax.f32 %v7675_v3, 0.0  ;;  %v8039_v25 = vmax.f32 %v7746_v4, 0.0  ;;  %9784 = vmatprep.subr.mxu0 %v8141_v1  ;;  %9819 = vmatprep.subr.mxu1 %v8173_v35  ;;  %v8148_v61 = vld [vmem:[#allocation16 + $0xb18] sm:$0xff]  ;;  %v8115_v1 = vld [vmem:[#allocation16 + $0xa10] sm:$0xff]  ;;  %v8130_v4 = vld [vmem:[#allocation16 + $0xa88] sm:$0xff] }
0x2fc1   : > { %9785 = vmatpush3.msra.mxu0 %v8125_v49  ;;  %9820 = vmatpush3.msra.mxu1 %v8157_v59  ;;  %v12009_v62 = vld [vmem:[#allocation14 + $0x18] sm:$0xff]  ;;  %v8147_v35 = vld [vmem:[#allocation16 + $0xb10] sm:$0xff]  ;;  %v8162_v49 = vld [vmem:[#allocation16 + $0xb88] sm:$0xff]  ;;  %v7673_v59 = vadd.f32 %v11997_v34, %v7400_v54 }
0x2fc2   : > { %8517 = vmatprep.mubr.f32.mxu0 %v8037_v5  ;;  %8587 = vmatprep.mubr.f32.mxu1 %v8039_v25  ;;  %v7420_v18 = vrot.slane %v12009_v62, %v11621_v19  ;;  %v7428_v3 = vrot.slane %v12009_v62, %v11624_v28  ;;  %v7744_v5 = vadd.f32 %v11999_v58, %v7408_v52  ;;  %v8114_v19 = vld [vmem:[#allocation16 + $0xa08] sm:$0xff]  ;;  %v8113_v28 = vld [vmem:[#allocation16 + $0xa00] sm:$0xff]  ;;  %v8208_v58 = vld [vmem:[#allocation16 + $0xcf8] sm:$0xff] }
0x2fc3   : > { %9786 = vmatprep.subr.mxu0 %v8140_v38  ;;  %9821 = vmatprep.subr.mxu1 %v8172_v63  ;;  %v8146_v38 = vld [vmem:[#allocation16 + $0xb08] sm:$0xff]  ;;  %v8129_v63 = vld [vmem:[#allocation16 + $0xa80] sm:$0xff]  ;;  %v8036_v34 = vmax.f32 %v7673_v59, 0.0  ;;  %v8215_v59 = vld [vmem:[#allocation16 + $0xd30] sm:$0xff] }
0x2fc4   : > { %9787 = vmatpush3.msra.mxu0 %v8124_v7  ;;  %9822 = vmatpush3.msra.mxu1 %v8156_v8  ;;  %v8161_v7 = vld [vmem:[#allocation16 + $0xb80] sm:$0xff]  ;;  %v8186_v54 = vld [vmem:[#allocation16 + $0xc48] sm:$0xff] }
0x2fc5   : > { %9788 = vmatprep.subr.mxu0 %v8139_v10  ;;  %9823 = vmatprep.subr.mxu1 %v8171_v16  ;;  %v12001_v32 = vpop.f32.mrf.mxu0  ;;  %v12007_v57 = vpop.f32.mrf.mxu1  ;;  %v8145_v10 = vld [vmem:[#allocation16 + $0xb00] sm:$0xff]  ;;  %v8218_v52 = vld [vmem:[#allocation16 + $0xd48] sm:$0xff] }
0x2fc6   : > { %9789 = vmatpush3.msra.mxu0 %v8123_v11  ;;  %9824 = vmatpush3.msra.mxu1 %v8155_v12  ;;  %v8038_v11 = vmax.f32 %v7744_v5, 0.0  ;;  %v8240_v12 = vld [vmem:[#allocation16 + $0xdf8] sm:$0xff]  ;;  %v8198_v5 = vld [vmem:[#allocation16 + $0xca8] sm:$0xff] }
0x2fc7   : > { %9790 = vmatprep.subr.mxu0 %v8138_v15  ;;  %9825 = vmatprep.subr.mxu1 %v8170_v13  ;;  %v7816_v20 = vpop.f32.mrf.mxu0  ;;  %v7887_v25 = vpop.f32.mrf.mxu1  ;;  %v8192_v15 = vld [vmem:[#allocation16 + $0xc78] sm:$0xff] }
0x2fc8   : > { %9791 = vmatpush3.msra.mxu0 %v8122_v14  ;;  %9826 = vmatpush3.msra.mxu1 %v8154_v56  ;;  %v7817_v8 = vadd.f32 %v7816_v20, %v7420_v18  ;;  %v7888_v16 = vadd.f32 %v7887_v25, %v7428_v3  ;;  %v8224_v14 = vld [vmem:[#allocation16 + $0xd78] sm:$0xff]  ;;  %v8199_v3 = vld [vmem:[#allocation16 + $0xcb0] sm:$0xff]  ;;  %v8230_v25 = vld [vmem:[#allocation16 + $0xda8] sm:$0xff] }
0x2fc9   : > { %9792 = vmatprep.subr.mxu0 %v8137_v17  ;;  %9827 = vmatprep.subr.mxu1 %v8169_v0  ;;  %v8207_v17 = vld [vmem:[#allocation16 + $0xcf0] sm:$0xff]  ;;  %v8200_v18 = vld [vmem:[#allocation16 + $0xcb8] sm:$0xff] }
0x2fca   : > { %9793 = vmatpush3.msra.mxu0 %v8121_v22  ;;  %9828 = vmatpush3.msra.mxu1 %v8153_v30  ;;  %v8041_v13 = vmax.f32 %v7817_v8, 0.0  ;;  %v8043_v56 = vmax.f32 %v7888_v16, 0.0  ;;  %v8239_v0 = vld [vmem:[#allocation16 + $0xdf0] sm:$0xff]  ;;  %v8216_v20 = vld [vmem:[#allocation16 + $0xd38] sm:$0xff]  ;;  %v8181_v8 = vld [vmem:[#allocation16 + $0xc20] sm:$0xff] }
0x2fcb   : > { %9794 = vmatprep.subr.mxu0 %v8136_v23  ;;  %9829 = vmatprep.subr.mxu1 %v8168_v21  ;;  %v8191_v22 = vld [vmem:[#allocation16 + $0xc70] sm:$0xff]  ;;  %v8206_v23 = vld [vmem:[#allocation16 + $0xce8] sm:$0xff]  ;;  %v8196_v16 = vld [vmem:[#allocation16 + $0xc98] sm:$0xff] }
0x2fcc   : > { %9795 = vmatpush3.msra.mxu0 %v8120_v29  ;;  %9830 = vmatpush3.msra.mxu1 %v8152_v36  ;;  %v8223_v30 = vld [vmem:[#allocation16 + $0xd70] sm:$0xff]  ;;  %v8238_v21 = vld [vmem:[#allocation16 + $0xde8] sm:$0xff] }
0x2fcd   : > { %9796 = vmatprep.subr.mxu0 %v8135_v6  ;;  %9831 = vmatprep.subr.mxu1 %v8167_v37  ;;  %v8190_v29 = vld [vmem:[#allocation16 + $0xc68] sm:$0xff]  ;;  %v8205_v6 = vld [vmem:[#allocation16 + $0xce0] sm:$0xff] }
0x2fce   : > { %9797 = vmatpush3.msra.mxu0 %v8119_v39  ;;  %9832 = vmatpush3.msra.mxu1 %v8151_v41  ;;  %v8222_v36 = vld [vmem:[#allocation16 + $0xd68] sm:$0xff]  ;;  %v8237_v37 = vld [vmem:[#allocation16 + $0xde0] sm:$0xff] }
0x2fcf   : > { %9798 = vmatprep.subr.mxu0 %v8134_v2  ;;  %9833 = vmatprep.subr.mxu1 %v8166_v42  ;;  %v8189_v39 = vld [vmem:[#allocation16 + $0xc60] sm:$0xff]  ;;  %v8204_v2 = vld [vmem:[#allocation16 + $0xcd8] sm:$0xff] }
0x2fd0   : > { %9799 = vmatpush3.msra.mxu0 %v8118_v43  ;;  %9834 = vmatpush3.msra.mxu1 %v8150_v47  ;;  %v8221_v41 = vld [vmem:[#allocation16 + $0xd60] sm:$0xff]  ;;  %v8236_v42 = vld [vmem:[#allocation16 + $0xdd8] sm:$0xff] }
0x2fd1   : > { %9800 = vmatprep.subr.mxu0 %v8133_v48  ;;  %9835 = vmatprep.subr.mxu1 %v8165_v24  ;;  %v8188_v43 = vld [vmem:[#allocation16 + $0xc58] sm:$0xff]  ;;  %v8203_v48 = vld [vmem:[#allocation16 + $0xcd0] sm:$0xff] }
0x2fd2   : > { %9801 = vmatpush3.msra.mxu0 %v8117_v50  ;;  %9836 = vmatpush3.msra.mxu1 %v8149_v51  ;;  %v8220_v47 = vld [vmem:[#allocation16 + $0xd58] sm:$0xff]  ;;  %v8235_v24 = vld [vmem:[#allocation16 + $0xdd0] sm:$0xff] }
0x2fd3   : > { %9802 = vmatprep.subr.mxu0 %v8132_v33  ;;  %9837 = vmatprep.subr.mxu1 %v8164_v53  ;;  %v8187_v50 = vld [vmem:[#allocation16 + $0xc50] sm:$0xff]  ;;  %v8202_v33 = vld [vmem:[#allocation16 + $0xcc8] sm:$0xff] }
0x2fd4   : > { %9803 = vmatpush3.msra.mxu0 %v8116_v60  ;;  %9838 = vmatpush3.msra.mxu1 %v8148_v61  ;;  %v8219_v51 = vld [vmem:[#allocation16 + $0xd50] sm:$0xff]  ;;  %v8234_v53 = vld [vmem:[#allocation16 + $0xdc8] sm:$0xff]  ;;  %v8201_v60 = vld [vmem:[#allocation16 + $0xcc0] sm:$0xff] }
0x2fd5   : > { %9804 = vmatprep.subr.mxu0 %v8131_v9  ;;  %9839 = vmatprep.subr.mxu1 %v8163_v40  ;;  %v8233_v61 = vld [vmem:[#allocation16 + $0xdc0] sm:$0xff] }
0x2fd6   : > { %9805 = vmatpush3.msra.mxu0 %v8115_v1  ;;  %9840 = vmatpush3.msra.mxu1 %v8147_v35  ;;  %v8185_v9 = vld [vmem:[#allocation16 + $0xc40] sm:$0xff]  ;;  %v8232_v1 = vld [vmem:[#allocation16 + $0xdb8] sm:$0xff] }
0x2fd7   : > { %9806 = vmatprep.subr.mxu0 %v8130_v4  ;;  %9841 = vmatprep.subr.mxu1 %v8162_v49  ;;  %v8217_v40 = vld [vmem:[#allocation16 + $0xd40] sm:$0xff]  ;;  %v8184_v35 = vld [vmem:[#allocation16 + $0xc38] sm:$0xff]  ;;  %v8231_v4 = vld [vmem:[#allocation16 + $0xdb0] sm:$0xff] }
0x2fd8   : > { %9807 = vmatpush3.msra.mxu0 %v8114_v19  ;;  %9842 = vmatpush3.msra.mxu1 %v8146_v38  ;;  %v8183_v49 = vld [vmem:[#allocation16 + $0xc30] sm:$0xff]  ;;  %v8182_v19 = vld [vmem:[#allocation16 + $0xc28] sm:$0xff] }
0x2fd9   : > { %9808 = vmatprep.subr.mxu0 %v8129_v63  ;;  %9843 = vmatprep.subr.mxu1 %v8161_v7  ;;  %v8214_v38 = vld [vmem:[#allocation16 + $0xd28] sm:$0xff]  ;;  %v8197_v63 = vld [vmem:[#allocation16 + $0xca0] sm:$0xff] }
0x2fda   : > { %9809 = vmatpush3.msra.mxu0 %v8113_v28  ;;  %9844 = vmatpush3.msra.mxu1 %v8145_v10  ;;  %v8229_v7 = vld [vmem:[#allocation16 + $0xda0] sm:$0xff]  ;;  %v12017_v10 = vpop.f32.mrf.mxu0 }
0x2fdb   : > { %8518 = vmatmul.mubr.f32.vlgmr.msra.gmra.mxu0 %v8036_v34  ;;  %8588 = vmatmul.mubr.f32.vlgmr.msra.gmra.mxu1 %v8038_v11  ;;  %v8213_v28 = vld [vmem:[#allocation16 + $0xd20] sm:$0xff]  ;;  %v8228_v34 = vld [vmem:[#allocation16 + $0xd98] sm:$0xff]  ;;  %v7416_v11 = vrot.slane %v12009_v62, %v11613_v26  ;;  %v8211_v26 = vld [vmem:[#allocation16 + $0xd10] sm:$0xff] }
0x2fdc   : > { %9848 = vmatprep.subr.mxu0 %v8208_v58  ;;  %9883 = vmatprep.subr.mxu1 %v8240_v12  ;;  %v7424_v58 = vrot.slane %v12009_v62, %v11616_v27  ;;  %v12023_v12 = vpop.f32.mrf.mxu1  ;;  %v7444_v27 = vrot.slane %v12009_v62, %v11638_v45  ;;  %v8177_v45 = vld [vmem:[#allocation16 + $0xc00] sm:$0xff] }
0x2fdd   : > { %9849 = vmatpush3.msra.mxu0 %v8192_v15  ;;  %8657 = vmatprep.mubr.f32.mxu0 %v8041_v13  ;;  %v8180_v15 = vld [vmem:[#allocation16 + $0xc18] sm:$0xff] }
0x2fde   : > { %9884 = vmatpush3.msra.mxu1 %v8224_v14  ;;  %8727 = vmatprep.mubr.f32.mxu1 %v8043_v56  ;;  %v8212_v13 = vld [vmem:[#allocation16 + $0xd18] sm:$0xff]  ;;  %v8195_v14 = vld [vmem:[#allocation16 + $0xc90] sm:$0xff] }
0x2fdf   : > { %9850 = vmatprep.subr.mxu0 %v8207_v17  ;;  %9885 = vmatprep.subr.mxu1 %v8239_v0  ;;  %v8227_v56 = vld [vmem:[#allocation16 + $0xd90] sm:$0xff]  ;;  %v7436_v17 = vrot.slane %v12009_v62, %v11635_v44  ;;  %v8178_v44 = vld [vmem:[#allocation16 + $0xc08] sm:$0xff] }
0x2fe0   : > { %9851 = vmatpush3.msra.mxu0 %v8191_v22  ;;  %9886 = vmatpush3.msra.mxu1 %v8223_v30  ;;  %v8179_v0 = vld [vmem:[#allocation16 + $0xc10] sm:$0xff]  ;;  %v7958_v22 = vpop.f32.mrf.mxu0  ;;  %v8194_v30 = vld [vmem:[#allocation16 + $0xc88] sm:$0xff] }
0x2fe1   : > { %9852 = vmatprep.subr.mxu0 %v8206_v23  ;;  %9887 = vmatprep.subr.mxu1 %v8238_v21  ;;  %v8226_v23 = vld [vmem:[#allocation16 + $0xd88] sm:$0xff]  ;;  %v7815_v21 = vadd.f32 %v12001_v32, %v7416_v11  ;;  %v8249_v11 = vld [vmem:[#allocation16 + $0xe40] sm:$0xff] }
0x2fe2   : > { %9853 = vmatpush3.msra.mxu0 %v8190_v29  ;;  %9888 = vmatpush3.msra.mxu1 %v8222_v36  ;;  %v7886_v29 = vadd.f32 %v12007_v57, %v7424_v58  ;;  %v8029_v36 = vpop.f32.mrf.mxu1  ;;  %v8272_v57 = vld [vmem:[#allocation16 + $0xef8] sm:$0xff]  ;;  %v8281_v58 = vld [vmem:[#allocation16 + $0xf40] sm:$0xff] }
0x2fe3   : > { %9854 = vmatprep.subr.mxu0 %v8205_v6  ;;  %9889 = vmatprep.subr.mxu1 %v8237_v37  ;;  %v8210_v6 = vld [vmem:[#allocation16 + $0xd08] sm:$0xff]  ;;  %v8193_v37 = vld [vmem:[#allocation16 + $0xc80] sm:$0xff]  ;;  %v8040_v32 = vmax.f32 %v7815_v21, 0.0 }
0x2fe4   : > { %9855 = vmatpush3.msra.mxu0 %v8189_v39  ;;  %9890 = vmatpush3.msra.mxu1 %v8221_v41  ;;  %v8225_v39 = vld [vmem:[#allocation16 + $0xd80] sm:$0xff]  ;;  %v7959_v41 = vadd.f32 %v7958_v22, %v7436_v17  ;;  %v8263_v17 = vld [vmem:[#allocation16 + $0xeb0] sm:$0xff]  ;;  %v8278_v21 = vld [vmem:[#allocation16 + $0xf28] sm:$0xff] }
0x2fe5   : > { %9856 = vmatprep.subr.mxu0 %v8204_v2  ;;  %9891 = vmatprep.subr.mxu1 %v8236_v42  ;;  %v8209_v2 = vld [vmem:[#allocation16 + $0xd00] sm:$0xff]  ;;  %v8030_v42 = vadd.f32 %v8029_v36, %v7444_v27  ;;  %v8279_v22 = vld [vmem:[#allocation16 + $0xf30] sm:$0xff]  ;;  %v8262_v27 = vld [vmem:[#allocation16 + $0xea8] sm:$0xff] }
0x2fe6   : > { %9857 = vmatpush3.msra.mxu0 %v8188_v43  ;;  %9892 = vmatpush3.msra.mxu1 %v8220_v47  ;;  %v8042_v43 = vmax.f32 %v7886_v29, 0.0  ;;  %v8304_v47 = vld [vmem:[#allocation16 + $0xff8] sm:$0xff]  ;;  %v8261_v29 = vld [vmem:[#allocation16 + $0xea0] sm:$0xff] }
0x2fe7   : > { %9858 = vmatprep.subr.mxu0 %v8203_v48  ;;  %9893 = vmatprep.subr.mxu1 %v8235_v24  ;;  %v8256_v48 = vld [vmem:[#allocation16 + $0xe78] sm:$0xff]  ;;  %v8045_v24 = vmax.f32 %v7959_v41, 0.0  ;;  %v8293_v36 = vld [vmem:[#allocation16 + $0xfa0] sm:$0xff]  ;;  %v7432_v41 = vrot.slane %v12009_v62, %v11649_v31 }
0x2fe8   : > { %9859 = vmatpush3.msra.mxu0 %v8187_v50  ;;  %9894 = vmatpush3.msra.mxu1 %v8219_v51  ;;  %v8288_v50 = vld [vmem:[#allocation16 + $0xf78] sm:$0xff]  ;;  %v8047_v51 = vmax.f32 %v8030_v42, 0.0 }
0x2fe9   : > { %9860 = vmatprep.subr.mxu0 %v8202_v33  ;;  %9895 = vmatprep.subr.mxu1 %v8234_v53  ;;  %v8271_v33 = vld [vmem:[#allocation16 + $0xef0] sm:$0xff]  ;;  %v8276_v42 = vld [vmem:[#allocation16 + $0xf18] sm:$0xff]  ;;  %v7957_v31 = vadd.f32 %v12017_v10, %v7432_v41 }
0x2fea   : > { %9861 = vmatpush3.msra.mxu0 %v8186_v54  ;;  %9896 = vmatpush3.msra.mxu1 %v8218_v52  ;;  %v8303_v53 = vld [vmem:[#allocation16 + $0xff0] sm:$0xff] }
0x2feb   : > { %9862 = vmatprep.subr.mxu0 %v8201_v60  ;;  %9897 = vmatprep.subr.mxu1 %v8233_v61  ;;  %v8255_v54 = vld [vmem:[#allocation16 + $0xe70] sm:$0xff]  ;;  %v8270_v60 = vld [vmem:[#allocation16 + $0xee8] sm:$0xff] }
0x2fec   : > { %9863 = vmatpush3.msra.mxu0 %v8185_v9  ;;  %9898 = vmatpush3.msra.mxu1 %v8217_v40  ;;  %v8287_v52 = vld [vmem:[#allocation16 + $0xf70] sm:$0xff]  ;;  %v8302_v61 = vld [vmem:[#allocation16 + $0xfe8] sm:$0xff] }
0x2fed   : > { %9864 = vmatprep.subr.mxu0 %v8200_v18  ;;  %9899 = vmatprep.subr.mxu1 %v8232_v1  ;;  %v8254_v9 = vld [vmem:[#allocation16 + $0xe68] sm:$0xff]  ;;  %v8269_v18 = vld [vmem:[#allocation16 + $0xee0] sm:$0xff] }
0x2fee   : > { %9865 = vmatpush3.msra.mxu0 %v8184_v35  ;;  %9900 = vmatpush3.msra.mxu1 %v8216_v20  ;;  %v8286_v40 = vld [vmem:[#allocation16 + $0xf68] sm:$0xff]  ;;  %v8301_v1 = vld [vmem:[#allocation16 + $0xfe0] sm:$0xff] }
0x2fef   : > { %9866 = vmatprep.subr.mxu0 %v8199_v3  ;;  %9901 = vmatprep.subr.mxu1 %v8231_v4  ;;  %v8253_v35 = vld [vmem:[#allocation16 + $0xe60] sm:$0xff]  ;;  %v8268_v3 = vld [vmem:[#allocation16 + $0xed8] sm:$0xff] }
0x2ff0   : > { %9867 = vmatpush3.msra.mxu0 %v8183_v49  ;;  %9902 = vmatpush3.msra.mxu1 %v8215_v59  ;;  %v8285_v20 = vld [vmem:[#allocation16 + $0xf60] sm:$0xff]  ;;  %v8300_v4 = vld [vmem:[#allocation16 + $0xfd8] sm:$0xff] }
0x2ff1   : > { %9868 = vmatprep.subr.mxu0 %v8198_v5  ;;  %9903 = vmatprep.subr.mxu1 %v8230_v25  ;;  %v8252_v49 = vld [vmem:[#allocation16 + $0xe58] sm:$0xff]  ;;  %v8267_v5 = vld [vmem:[#allocation16 + $0xed0] sm:$0xff] }
0x2ff2   : > { %9869 = vmatpush3.msra.mxu0 %v8182_v19  ;;  %9904 = vmatpush3.msra.mxu1 %v8214_v38  ;;  %v8284_v59 = vld [vmem:[#allocation16 + $0xf58] sm:$0xff]  ;;  %v8299_v25 = vld [vmem:[#allocation16 + $0xfd0] sm:$0xff] }
0x2ff3   : > { %9870 = vmatprep.subr.mxu0 %v8197_v63  ;;  %9905 = vmatprep.subr.mxu1 %v8229_v7  ;;  %v8251_v19 = vld [vmem:[#allocation16 + $0xe50] sm:$0xff]  ;;  %v8266_v63 = vld [vmem:[#allocation16 + $0xec8] sm:$0xff] }
0x2ff4   : > { %9871 = vmatpush3.msra.mxu0 %v8181_v8  ;;  %9906 = vmatpush3.msra.mxu1 %v8213_v28  ;;  %v8283_v38 = vld [vmem:[#allocation16 + $0xf50] sm:$0xff]  ;;  %v8298_v7 = vld [vmem:[#allocation16 + $0xfc8] sm:$0xff] }
0x2ff5   : > { %9872 = vmatprep.subr.mxu0 %v8196_v16  ;;  %9907 = vmatprep.subr.mxu1 %v8228_v34  ;;  %v8250_v8 = vld [vmem:[#allocation16 + $0xe48] sm:$0xff]  ;;  %v8265_v16 = vld [vmem:[#allocation16 + $0xec0] sm:$0xff] }
0x2ff6   : > { %9873 = vmatpush3.msra.mxu0 %v8180_v15  ;;  %9908 = vmatpush3.msra.mxu1 %v8212_v13  ;;  %v8282_v28 = vld [vmem:[#allocation16 + $0xf48] sm:$0xff]  ;;  %v8297_v34 = vld [vmem:[#allocation16 + $0xfc0] sm:$0xff]  ;;  %v8264_v15 = vld [vmem:[#allocation16 + $0xeb8] sm:$0xff] }
0x2ff7   : > { %9874 = vmatprep.subr.mxu0 %v8195_v14  ;;  %9909 = vmatprep.subr.mxu1 %v8227_v56  ;;  %v8296_v13 = vld [vmem:[#allocation16 + $0xfb8] sm:$0xff] }
0x2ff8   : > { %9875 = vmatpush3.msra.mxu0 %v8179_v0  ;;  %9910 = vmatpush3.msra.mxu1 %v8211_v26  ;;  %v8248_v14 = vld [vmem:[#allocation16 + $0xe38] sm:$0xff]  ;;  %v8295_v0 = vld [vmem:[#allocation16 + $0xfb0] sm:$0xff] }
0x2ff9   : > { %9876 = vmatprep.subr.mxu0 %v8194_v30  ;;  %9911 = vmatprep.subr.mxu1 %v8226_v23  ;;  %v8280_v56 = vld [vmem:[#allocation16 + $0xf38] sm:$0xff]  ;;  %v8247_v26 = vld [vmem:[#allocation16 + $0xe30] sm:$0xff]  ;;  %v8294_v30 = vld [vmem:[#allocation16 + $0xfa8] sm:$0xff] }
0x2ffa   : > { %9877 = vmatpush3.msra.mxu0 %v8178_v44  ;;  %9912 = vmatpush3.msra.mxu1 %v8210_v6  ;;  %v8246_v23 = vld [vmem:[#allocation16 + $0xe28] sm:$0xff]  ;;  %v8245_v44 = vld [vmem:[#allocation16 + $0xe20] sm:$0xff] }
0x2ffb   : > { %9878 = vmatprep.subr.mxu0 %v8193_v37  ;;  %9913 = vmatprep.subr.mxu1 %v8225_v39  ;;  %v8277_v6 = vld [vmem:[#allocation16 + $0xf20] sm:$0xff]  ;;  %v8260_v37 = vld [vmem:[#allocation16 + $0xe98] sm:$0xff] }
0x2ffc   : > { %9879 = vmatpush3.msra.mxu0 %v8177_v45  ;;  %9914 = vmatpush3.msra.mxu1 %v8209_v2  ;;  %v8292_v39 = vld [vmem:[#allocation16 + $0xf98] sm:$0xff]  ;;  %v7440_v45 = vrot.slane %v12009_v62, %v11652_v46  ;;  %v8242_v62 = vld [vmem:[#allocation16 + $0xe08] sm:$0xff] }
0x2ffd   : > { %8658 = vmatmul.mubr.f32.vlgmr.msra.gmra.mxu0 %v8040_v32  ;;  %8728 = vmatmul.mubr.f32.vlgmr.msra.gmra.mxu1 %v8042_v43  ;;  %v8244_v2 = vld [vmem:[#allocation16 + $0xe18] sm:$0xff]  ;;  %v8259_v32 = vld [vmem:[#allocation16 + $0xe90] sm:$0xff] }
0x2ffe   : > { %9918 = vmatprep.subr.mxu0 %v8272_v57  ;;  %9953 = vmatprep.subr.mxu1 %v8304_v47  ;;  %v8291_v43 = vld [vmem:[#allocation16 + $0xf90] sm:$0xff]  ;;  %v8028_v46 = vadd.f32 %v12023_v12, %v7440_v45 }
0x2fff   : > { %9919 = vmatpush3.msra.mxu0 %v8256_v48  ;;  %8797 = vmatprep.mubr.f32.mxu0 %v8045_v24  ;;  %v8243_v57 = vld [vmem:[#allocation16 + $0xe10] sm:$0xff]  ;;  %v8258_v48 = vld [vmem:[#allocation16 + $0xe88] sm:$0xff] }
0x3000   : > { %9954 = vmatpush3.msra.mxu1 %v8288_v50  ;;  %8867 = vmatprep.mubr.f32.mxu1 %v8047_v51  ;;  %v8275_v47 = vld [vmem:[#allocation16 + $0xf10] sm:$0xff]  ;;  %v8290_v24 = vld [vmem:[#allocation16 + $0xf88] sm:$0xff]  ;;  %v8257_v51 = vld [vmem:[#allocation16 + $0xe80] sm:$0xff] }
0x3001   : > { %9920 = vmatprep.subr.mxu0 %v8271_v33  ;;  %9955 = vmatprep.subr.mxu1 %v8303_v53  ;;  %v8274_v50 = vld [vmem:[#allocation16 + $0xf08] sm:$0xff]  ;;  %v8289_v33 = vld [vmem:[#allocation16 + $0xf80] sm:$0xff] }
0x3002   : > { %9921 = vmatpush3.msra.mxu0 %v8255_v54  ;;  %9956 = vmatpush3.msra.mxu1 %v8287_v52  ;;  %v8241_v53 = vld [vmem:[#allocation16 + $0xe00] sm:$0xff]  ;;  %v8044_v52 = vmax.f32 %v7957_v31, 0.0 }
0x3003   : > { %9922 = vmatprep.subr.mxu0 %v8270_v60  ;;  %9957 = vmatprep.subr.mxu1 %v8302_v61  ;;  %v8273_v54 = vld [vmem:[#allocation16 + $0xf00] sm:$0xff]  ;;  %v8046_v60 = vmax.f32 %v8028_v46, 0.0 }
0x3004   : > { %9923 = vmatpush3.msra.mxu0 %v8254_v9  ;;  %9958 = vmatpush3.msra.mxu1 %v8286_v40 }
0x3005   : > { %9924 = vmatprep.subr.mxu0 %v8269_v18  ;;  %9959 = vmatprep.subr.mxu1 %v8301_v1  ;;  %v9263_v18 = vld [vmem:[#allocation17 + $0x1] ss:$0 sm:$0xff] }
0x3006   : > { %9925 = vmatpush3.msra.mxu0 %v8253_v35  ;;  %9960 = vmatpush3.msra.mxu1 %v8285_v20 }
0x3007   : > { %9926 = vmatprep.subr.mxu0 %v8268_v3  ;;  %9961 = vmatprep.subr.mxu1 %v8300_v4 }
0x3008   : > { %9927 = vmatpush3.msra.mxu0 %v8252_v49  ;;  %9962 = vmatpush3.msra.mxu1 %v8284_v59 }
0x3009   : > { %9928 = vmatprep.subr.mxu0 %v8267_v5  ;;  %9963 = vmatprep.subr.mxu1 %v8299_v25 }
0x300a   : > { %9929 = vmatpush3.msra.mxu0 %v8251_v19  ;;  %9964 = vmatpush3.msra.mxu1 %v8283_v38 }
0x300b   : > { %9930 = vmatprep.subr.mxu0 %v8266_v63  ;;  %9965 = vmatprep.subr.mxu1 %v8298_v7 }
0x300c   : > { %9931 = vmatpush3.msra.mxu0 %v8250_v8  ;;  %9966 = vmatpush3.msra.mxu1 %v8282_v28 }
0x300d   : > { %9932 = vmatprep.subr.mxu0 %v8265_v16  ;;  %9967 = vmatprep.subr.mxu1 %v8297_v34 }
0x300e   : > { %9933 = vmatpush3.msra.mxu0 %v8249_v11  ;;  %9968 = vmatpush3.msra.mxu1 %v8281_v58 }
0x300f   : > { %9934 = vmatprep.subr.mxu0 %v8264_v15  ;;  %9969 = vmatprep.subr.mxu1 %v8296_v13 }
0x3010   : > { %9935 = vmatpush3.msra.mxu0 %v8248_v14  ;;  %9970 = vmatpush3.msra.mxu1 %v8280_v56 }
0x3011   : > { %9936 = vmatprep.subr.mxu0 %v8263_v17  ;;  %9971 = vmatprep.subr.mxu1 %v8295_v0 }
0x3012   : > { %9937 = vmatpush3.msra.mxu0 %v8247_v26  ;;  %9972 = vmatpush3.msra.mxu1 %v8279_v22 }
0x3013   : > { %9938 = vmatprep.subr.mxu0 %v8262_v27  ;;  %9973 = vmatprep.subr.mxu1 %v8294_v30 }
0x3014   : > { %9939 = vmatpush3.msra.mxu0 %v8246_v23  ;;  %9974 = vmatpush3.msra.mxu1 %v8278_v21 }
0x3015   : > { %9940 = vmatprep.subr.mxu0 %v8261_v29  ;;  %9975 = vmatprep.subr.mxu1 %v8293_v36 }
0x3016   : > { %9941 = vmatpush3.msra.mxu0 %v8245_v44  ;;  %9976 = vmatpush3.msra.mxu1 %v8277_v6 }
0x3017   : > { %9942 = vmatprep.subr.mxu0 %v8260_v37  ;;  %9977 = vmatprep.subr.mxu1 %v8292_v39 }
0x3018   : > { %9943 = vmatpush3.msra.mxu0 %v8244_v2  ;;  %9978 = vmatpush3.msra.mxu1 %v8276_v42  ;;  %v9267_v2 = vld [vmem:[%s12096_s13 + $0x5] ss:$0 sm:$0xff] }
0x3019   : > { %9944 = vmatprep.subr.mxu0 %v8259_v32  ;;  %9979 = vmatprep.subr.mxu1 %v8291_v43 }
0x301a   : > { %9945 = vmatpush3.msra.mxu0 %v8243_v57  ;;  %9980 = vmatpush3.msra.mxu1 %v8275_v47 }
0x301b   : > { %9946 = vmatprep.subr.mxu0 %v8258_v48  ;;  %9981 = vmatprep.subr.mxu1 %v8290_v24 }
0x301c   : > { %9947 = vmatpush3.msra.mxu0 %v8242_v62  ;;  %9982 = vmatpush3.msra.mxu1 %v8274_v50 }
0x301d   : > { %9948 = vmatprep.subr.mxu0 %v8257_v51  ;;  %9983 = vmatprep.subr.mxu1 %v8289_v33 }
0x301e   : > { %9949 = vmatpush3.msra.mxu0 %v8241_v53  ;;  %9984 = vmatpush3.msra.mxu1 %v8273_v54 }
0x301f   : > { %8798 = vmatmul.mubr.f32.vlgmr.msra.gmra.mxu0 %v8044_v52  ;;  %8868 = vmatmul.mubr.f32.vlgmr.msra.gmra.mxu1 %v8046_v60 }
0x307a   : > { %v9740_v10 = vpop.f32.mrf.mxu0  ;;  %v9775_v61 = vpop.f32.mrf.mxu1 }
0x307c   : > { %v9741_v12 = vpop.f32.mrf.mxu0  ;;  %v9776_v1 = vpop.f32.mrf.mxu1 }
0x307d   : > { %v9742_v40 = vadd.f32 %v9741_v12, %v9740_v10  ;;  %v9777_v49 = vadd.f32 %v9776_v1, %v9775_v61 }
0x307f   : > { %v8380_v20 = vadd.f32 %v9742_v40, %v9263_v18 }
0x3081   : > { %v8450_v5 = vadd.f32 %v9777_v49, %v8380_v20 }
0x309b   : > { %v9810_v9 = vpop.f32.mrf.mxu0  ;;  %v9845_v3 = vpop.f32.mrf.mxu1 }
0x309d   : > { %v9811_v35 = vpop.f32.mrf.mxu0  ;;  %v9846_v25 = vpop.f32.mrf.mxu1 }
0x309e   : > { %v9812_v59 = vadd.f32 %v9811_v35, %v9810_v9  ;;  %v9847_v7 = vadd.f32 %v9846_v25, %v9845_v3 }
0x30a0   : > { %v8520_v38 = vadd.f32 %v9812_v59, %v8450_v5 }
0x30a2   : > { %v8590_v28 = vadd.f32 %v9847_v7, %v8520_v38 }
0x30bd   : > { %v9880_v4 = vpop.f32.mrf.mxu0  ;;  %v9915_v63 = vpop.f32.mrf.mxu1 }
0x30bf   : > { %v9881_v19 = vpop.f32.mrf.mxu0  ;;  %v9916_v16 = vpop.f32.mrf.mxu1 }
0x30c0   : > { %v9882_v8 = vadd.f32 %v9881_v19, %v9880_v4  ;;  %v9917_v15 = vadd.f32 %v9916_v16, %v9915_v63 }
0x30c2   : > { %v8660_v34 = vadd.f32 %v9882_v8, %v8590_v28 }
0x30c4   : > { %v8730_v56 = vadd.f32 %v9917_v15, %v8660_v34 }
0x30df   : > { %v9950_v11 = vpop.f32.mrf.mxu0  ;;  %v9985_v58 = vpop.f32.mrf.mxu1 }
0x30e1   : > { %v9951_v13 = vpop.f32.mrf.mxu0  ;;  %v9986_v14 = vpop.f32.mrf.mxu1 }
0x30e2   : > { %v9952_v17 = vadd.f32 %v9951_v13, %v9950_v11  ;;  %v9987_v26 = vadd.f32 %v9986_v14, %v9985_v58 }
0x30e4   : > { %v8800_v0 = vadd.f32 %v9952_v17, %v8730_v56 }
0x30e6   : > { %v8870_v22 = vadd.f32 %v9987_v26, %v8800_v0 }
0x30e8   : > { %v8873_v27 = vadd.f32 %v8870_v22, %v11959_v55  ;;  %v9266_v55 = vld [vmem:[%s12095_s12 + $0x5] ss:$0 sm:$0xff] }
0x30ea   : > { %v8878_v30 = vsel %vm700_vm1, %v8873_v27, 0.0 }
0x30eb   : > { %8879 = vadd.xlane.f32.xlu1 %v8878_v30 }
0x3174   : > { %v8880_v23 = vpop.xlane.xlu1 %8879 }
0x3175   : > { %v8881_v21 = vmul.f32 0.03125, %v8880_v23 }
0x3177   : > { %v8882_v29 = vsub.f32 %v8873_v27, %v8881_v21 }
0x3179   : > { %v8883_v36 = vmul.f32 %v8882_v29, %v8882_v29 }
0x317b   : > { %v8884_v44 = vsel %vm700_vm1, %v8883_v36, 0.0 }
0x317c   : > { %8885 = vadd.xlane.f32.xlu1 %v8884_v44 }
0x3205   : > { %v8886_v6 = vpop.xlane.xlu1 %8885 }
0x3206   : > { %v8887_v37 = vmul.f32 0.03125, %v8886_v6 }
0x3208   : > { %v8888_v39 = vadd.f32 1e-05, %v8887_v37 }
0x320a   : > { %10577 = vrsqrt.f32 %v8888_v39 }
0x3217   : > { %v10578_v41 = vpop.eup %10577 }
0x3218   : > { %v8890_v45 = vmul.f32 %v10578_v41, %v8882_v29 }
0x321a   : > { %v8897_v42 = vmul.f32 %v9266_v55, %v8890_v45 }
0x321c   : > { %v8904_v32 = vadd.f32 %v9267_v2, %v8897_v42 }
0x321e   : > { %8905 = vst.msk [vmem:[%s657_s21] sm:$0xff] %vm700_vm1, %v8904_v32 }
0x321f   : > { %10859 = shalt.err (!%p10856_p11)
}
0x3220   : > { %s10860_s10 = scalar_lea.hbm %s8918_s7, 128  ;;  %s10864_s11 = scalar_lea.hbm %s12153_s17, 256 }
0x3221   : > { %p10861_p13 = scmp.ne.s32.totalorder %s8918_s7, %s10860_s10  ;;  %p10865_p9 = scmp.lt.s32.totalorder %s8918_s7, %s12153_s17 }
0x3222   : > { %p10866_p12 = scmp.lt.s32.totalorder %s10864_s11, %s10860_s10 }
0x3223   : > { %p10862_p0 = pnand %p10861_p13, %p12154_p2 }
0x3224   : > { %p10867_p1 = por %p10866_p12, %p10865_p9 }
0x3225   : > { %p10863_p4 = pneg %p10862_p0 }
0x3227   : > { %p10868_p6 = pnand %p10867_p1, %p10863_p4 }
0x3229   : > { %10871 = shalt.err (!%p10868_p6)
}
0x322a   : > { %10396 = dma.vmem_to_hbm [thread:$0]  (%p12154_p2), %s8921_s28, 128, %s8918_s7, %s8907_s6  }
0x322b PF: > { %s8932_s9 = sand.u32 1, %s10922_s29   ;;  %p12155_p7 = scmp.ne.s32.totalorder %s12138_s4, 0 }
0x322c   : > { %p12156_p3 = scmp.ge.s32.totalorder %s10934_s16, 2  ;;  %s8933_s5 = scalar_lea.sflag [#allocation4], %s8932_s9 }
0x322e   : > { %p10431_p5 = pnand %p12156_p3, %p12155_p7 }
0x3230   : > { %p10432_p8 = pneg %p10431_p5 }
0x3232   : > { %10917 = dma.done.wait (%p10432_p8), %s8933_s5, 128  }
0x3233   : > { %10919 = vsyncadd (%p10432_p8), %s8933_s5, 4294967168  ;;  %s12157_s21 = sld [smem:[#allocation28_spill]]  ;;  %p34_p10 = scmp.ge.s32.totalorder %s11166_s26, 4  }
0x3234   : > { %s12158_s29 = smov %s10926_s30  ;;  %s12159_s30 = smov %s10930_s15 }
0x3235   : > { %s12161_s16 = smov %s11166_s26  ;;  %36 = sbr.rel (!%p34_p10) target bundleno = 22 (0x16), region = 214 }
0x3239   : > { %s12160_s15 = smov %s12157_s21 }
0x323a   :  { %8938 = vsyncpa [#allocation3], 1 }
0x323b   :  { %8940 = vsyncpa [#allocation3 + $0x1], 1 }
0x323c   :  { %8941 = vsyncpa [#allocation6], 1 }
0x323d   :  { %8943 = vsyncpa [#allocation6 + $0x1], 1 }
0x323e   :  { %8944 = vsyncpa [#allocation9], 1 }
0x323f   :  { %8945 = vsyncpa [#allocation12], 1 }
0x3240   :  { %8946 = vsyncpa [#allocation15], 1 }
0x3241   :  { %8947 = vsyncpa [#allocation18], 1 }
0x3242   :  { %8948 = vsyncpa [#allocation4], 1 }
0x3243   :  { %8950 = vsyncpa [#allocation4 + $0x1], 1 }

</bundles_post_ra>
